<compile_context>
chip_gen: v5e
topology: v5e:2x2
jax: 0.10.0
libtpu: 0.0.40
codegen_flags: <defaults>
</compile_context>

<pallas_src>
import numpy as np
import jax
import jax.numpy as jnp
from jax.experimental import pallas as pl
from jax.experimental.pallas import tpu as pltpu

BN_EPS = 1e-5
F32 = jnp.float32
BF16 = jnp.bfloat16

W1_ROWS = 432      # 9 taps * 48 K-rows, bias at row 432
W2_ROWS = 1152     # 9 taps * 128 K-rows, bias at row 1152


# --------------------------- head slab layout (f32, 32 lanes) ----------------
_HS_ENTRIES = [
    ("Wp1p", 128, 32),                 # proj linear1, NCHW flatten folded into rows
    ("g1", 1, 32), ("b1", 1, 32),
    ("Wp2", 32, 32), ("g2", 1, 32), ("b2", 1, 32),
    ("Wp3", 32, 8),
    ("Wq1", 8, 4), ("gq1", 1, 4), ("bq1", 1, 4),
    ("Wq2", 4, 8), ("bq2", 1, 8),
]


def _hs_layout():
    offs, r = {}, 0
    for name, nr, nc in _HS_ENTRIES:
        offs[name] = (r, nr, nc)
        r += nr
    return offs, ((r + 7) // 8) * 8


# --------------------------- one-time parameter packing ----------------------
def pack_params(params):
    w1 = np.asarray(params["conv1_w"], np.float32)     # (kh, kw, cin=3, cout=16)
    w2 = np.asarray(params["conv2_w"], np.float32)     # (kh, kw, cin=16, cout=8)
    b1 = np.asarray(params["conv1_b"], np.float32)
    b2 = np.asarray(params["conv2_b"], np.float32)

    # Output-lane permutation: (j, c) -> (j % 2, j // 2, c) so 2x2 pooling over
    # columns becomes max of the two lane halves and the result is compacted.
    def parity_perm(nj, nc):
        src = np.empty(nj * nc, np.int64)
        half = (nj // 2) * nc
        for j in range(nj):
            for c in range(nc):
                src[(j % 2) * half + (j // 2) * nc + c] = j * nc + c
        return src

    src1 = parity_perm(16, 16)                          # 256 lanes
    src2 = parity_perm(8, 8)                            # 64 lanes

    w1e = np.concatenate([np.kron(np.eye(16, dtype=np.float32), w1[kh, kw])
                          for kh in range(3) for kw in range(3)], axis=0)[:, src1]
    w2e = np.concatenate([np.kron(np.eye(8, dtype=np.float32), w2[kh, kw])
                          for kh in range(3) for kw in range(3)], axis=0)[:, src2]
    b1e = np.tile(b1, 16)[src1]
    b2e = np.tile(b2, 8)[src2]

    w1s = np.zeros((448, 256), np.float32)
    w1s[:W1_ROWS] = w1e
    w1s[W1_ROWS] = b1e
    w2s = np.zeros((1168, 64), np.float32)
    w2s[:W2_ROWS] = w2e
    w2s[W2_ROWS] = b2e

    # Head slab: fold the PyTorch NCHW flatten (flat = c*16 + oi*4 + oj) into
    # proj_w1's rows; the kernel's feature lane order is oi*32 + oj*8 + c.
    srcf = np.empty(128, np.int64)
    for oi in range(4):
        for oj in range(4):
            for c in range(8):
                srcf[oi * 32 + oj * 8 + c] = c * 16 + oi * 4 + oj

    offs, rows = _hs_layout()
    vals = {
        "Wp1p": np.asarray(params["proj_w1"], np.float32)[srcf],
        "g1": params["proj_g1"], "b1": params["proj_b1"],
        "Wp2": params["proj_w2"], "g2": params["proj_g2"], "b2": params["proj_b2"],
        "Wp3": params["proj_w3"],
        "Wq1": params["pred_w1"], "gq1": params["pred_g1"], "bq1": params["pred_b1"],
        "Wq2": params["pred_w2"], "bq2": params["pred_b2"],
    }
    hs = np.zeros((rows, 32), np.float32)
    for name, (r0, nr, nc) in offs.items():
        hs[r0:r0 + nr, 0:nc] = np.asarray(vals[name], np.float32).reshape(nr, nc)

    return (jnp.asarray(w1s, BF16), jnp.asarray(w2s, BF16), jnp.asarray(hs, F32))


# --------------------------------- the kernel --------------------------------
def _make_kernel(B):
    HS, _ = _hs_layout()

    def rd(ref, name):
        r0, nr, nc = HS[name]
        return ref[r0:r0 + nr, 0:nc]

    def kernel(x0_ref, w1_ref, w2_ref, hs_ref, out_ref, cm_sc, hp_sc, cm2_sc):
        R1 = B * 18          # conv1 row space: (batch, out row) + 2 garbage rows/block
        R2 = B * 10          # conv2 row space: padded 10-row blocks

        # ---- conv1: 9 per-tap accumulating bf16 MXU matmuls (K = 48 each) ----
        acc1 = jnp.zeros((R1, 256), F32)
        for kh in range(3):
            for kw in range(3):
                t = kh * 3 + kw
                slab = x0_ref[kh:kh + R1, kw * 3:kw * 3 + 48].astype(BF16)
                acc1 = acc1 + jnp.dot(slab, w1_ref[t * 48:(t + 1) * 48, :],
                                      preferred_element_type=F32)
        y1 = acc1 + w1_ref[W1_ROWS:W1_ROWS + 1, :].astype(F32)   # lanes (parity, oj, c)

        # ---- pool1 columns: lane order (j%2, j//2, c) -> max of halves ----
        cm_sc[...] = jnp.maximum(y1[:, 0:128], y1[:, 128:256])   # (B*18, 128)

        # ---- pool1 rows + ReLU + zero-bordered 10x10 layout for conv2 ----
        # (borders & never-overwritten rows come from this single cheap fill)
        hp_sc[...] = jnp.zeros(hp_sc.shape, F32)
        for b in range(B):
            ev = cm_sc[pl.ds(b * 18, 8, stride=2), :]            # rows 0,2,...,14
            od = cm_sc[pl.ds(b * 18 + 1, 8, stride=2), :]        # rows 1,3,...,15
            hp_sc[b * 10 + 1:b * 10 + 9, 16:144] = jnp.maximum(jnp.maximum(ev, od), 0.0)

        # ---- conv2: 9 per-tap accumulating bf16 matmuls (K = 128 each) ----
        acc2 = jnp.zeros((R2, 64), F32)
        for kh in range(3):
            for kw in range(3):
                t = kh * 3 + kw
                slab = hp_sc[kh:kh + R2, kw * 16:kw * 16 + 128].astype(BF16)
                acc2 = acc2 + jnp.dot(slab, w2_ref[t * 128:(t + 1) * 128, :],
                                      preferred_element_type=F32)
        y2 = acc2 + w2_ref[W2_ROWS:W2_ROWS + 1, :].astype(F32)   # lanes (parity, oj2, c)

        # ---- pool2 columns + ReLU ----
        cm2_sc[...] = jnp.maximum(jnp.maximum(y2[:, 0:32], y2[:, 32:64]), 0.0)  # (B*10, 32)

        # ---- pool2 rows -> lane-dense (B, 128) flattened feature ----
        pieces = []
        for oi in range(4):
            ev = cm2_sc[pl.ds(2 * oi, B, stride=10), :]          # row 2*oi of every block
            od = cm2_sc[pl.ds(2 * oi + 1, B, stride=10), :]
            pieces.append(jnp.maximum(ev, od))                   # (B, 32), lanes (oj, c)
        feat = jnp.concatenate(pieces, axis=1)                   # (B, 128), lanes (oi, oj, c)

        # ---- projection / prediction heads (f32, training-mode BatchNorm) ----
        def bn(v, gamma=None, beta=None):
            mu = jnp.mean(v, axis=0, keepdims=True)
            var = jnp.mean((v - mu) ** 2, axis=0, keepdims=True)  # biased variance
            vh = (v - mu) * jax.lax.rsqrt(var + BN_EPS)
            return vh if gamma is None else vh * gamma + beta

        h = jnp.dot(feat, rd(hs_ref, "Wp1p"), preferred_element_type=F32)
        h = jnp.maximum(bn(h, rd(hs_ref, "g1"), rd(hs_ref, "b1")), 0.0)
        h = jnp.dot(h, rd(hs_ref, "Wp2"), preferred_element_type=F32)
        h = jnp.maximum(bn(h, rd(hs_ref, "g2"), rd(hs_ref, "b2")), 0.0)
        z = bn(jnp.dot(h, rd(hs_ref, "Wp3"), preferred_element_type=F32))
        q = jnp.dot(z, rd(hs_ref, "Wq1"), preferred_element_type=F32)
        q = jnp.maximum(bn(q, rd(hs_ref, "gq1"), rd(hs_ref, "bq1")), 0.0)
        p = jnp.dot(q, rd(hs_ref, "Wq2"), preferred_element_type=F32) + rd(hs_ref, "bq2")

        out_ref[:, 0:8] = z
        out_ref[:, 8:16] = p

    return kernel


def make_simsiam_forward(B):
    """Builds the jitted forward: (x_nchw, w1s_bf16, w2s_bf16, hs_f32) -> (z, p)."""
    kernel = _make_kernel(B)
    vmem = pl.BlockSpec(memory_space=pltpu.MemorySpace.VMEM)

    flops = (2 * (B * 18) * 48 * 256 * 9 + 2 * (B * 10) * 128 * 64 * 9
             + 2 * B * (128 * 32 + 32 * 32 + 32 * 8 + 8 * 4 + 4 * 8))
    bytes_accessed = ((B * 18 + 8) * 54 * 4 + 448 * 256 * 2 + 1168 * 64 * 2
                      + 216 * 32 * 4 + B * 16 * 4)

    pcall = pl.pallas_call(
        kernel,
        out_shape=jax.ShapeDtypeStruct((B, 16), F32),
        in_specs=[vmem, vmem, vmem, vmem],
        out_specs=vmem,
        scratch_shapes=[
            pltpu.VMEM((B * 18, 128), F32),        # pool1 column-max (strided row reads)
            pltpu.VMEM((B * 10 + 8, 160), F32),    # pooled conv1 output, zero-bordered 10x10
            pltpu.VMEM((B * 10, 32), F32),         # pool2 column-max
        ],
        compiler_params=pltpu.CompilerParams(vmem_limit_bytes=16 * 1024 * 1024),
        cost_estimate=pl.CostEstimate(flops=flops, transcendentals=128,
                                      bytes_accessed=bytes_accessed),
    )

    @jax.jit
    def forward(x_nchw, w1s, w2s, hs):
        # Wrapper glue (fuses into a single XLA fusion under jit): NCHW->NHWC,
        # conv1 zero padding, reshape to the (batch*row, col*channel) slab.
        x = jnp.transpose(x_nchw, (0, 2, 3, 1)).astype(F32)
        x = jnp.pad(x, ((0, 0), (1, 1), (1, 1), (0, 0)))
        x0 = jnp.pad(x.reshape(B * 18, 54), ((0, 8), (0, 0)))     # (B*18+8, 54)
        zp = pcall(x0, w1s, w2s, hs)
        z = jax.lax.stop_gradient(zp[:, 0:8])                     # z.detach()
        p = zp[:, 8:16]
        return z, p

    return forward


# --------------------------- parameter init (synthetic) ----------------------
def init_params(key):
    ks = jax.random.split(key, 10)
    s = 0.1
    return {
        "conv1_w": s * jax.random.normal(ks[0], (3, 3, 3, 16), F32),   # (kh, kw, cin, cout)
        "conv1_b": s * jax.random.normal(ks[1], (16,), F32),
        "conv2_w": s * jax.random.normal(ks[2], (3, 3, 16, 8), F32),
        "conv2_b": s * jax.random.normal(ks[3], (8,), F32),
        # SimSiamProjectionHead(128, 32, 8)
        "proj_w1": s * jax.random.normal(ks[4], (128, 32), F32),
        "proj_g1": jnp.ones((1, 32), F32), "proj_b1": jnp.zeros((1, 32), F32),
        "proj_w2": s * jax.random.normal(ks[5], (32, 32), F32),
        "proj_g2": jnp.ones((1, 32), F32), "proj_b2": jnp.zeros((1, 32), F32),
        "proj_w3": s * jax.random.normal(ks[6], (32, 8), F32),
        # SimSiamPredictionHead(8, 4, 8)
        "pred_w1": s * jax.random.normal(ks[7], (8, 4), F32),
        "pred_g1": jnp.ones((1, 4), F32), "pred_b1": jnp.zeros((1, 4), F32),
        "pred_w2": s * jax.random.normal(ks[8], (4, 8), F32),
        "pred_b2": s * jax.random.normal(ks[9], (1, 8), F32),
    }


# --------------- plain-JAX reference (for the numerical cross-check) ---------
def reference_forward(x_nchw, params, conv_dtype=jnp.float32):
    def conv(v, w, b):
        y = jax.lax.conv_general_dilated(
            v.astype(conv_dtype), w.astype(conv_dtype), (1, 1), ((1, 1), (1, 1)),
            dimension_numbers=("NHWC", "HWIO", "NHWC"),
            preferred_element_type=F32)
        return jnp.maximum(y + b.astype(conv_dtype).astype(F32), 0.0)

    def pool(v):
        return jax.lax.reduce_window(v, -jnp.inf, jax.lax.max,
                                     (1, 2, 2, 1), (1, 2, 2, 1), "VALID")

    def bn(v, g=None, b=None):
        mu = v.mean(0, keepdims=True)
        var = ((v - mu) ** 2).mean(0, keepdims=True)
        vh = (v - mu) * jax.lax.rsqrt(var + BN_EPS)
        return vh if g is None else vh * g + b

    x = jnp.transpose(x_nchw, (0, 2, 3, 1)).astype(F32)
    h = pool(conv(x, params["conv1_w"], params["conv1_b"]))
    h = pool(conv(h, params["conv2_w"], params["conv2_b"]))
    f = jnp.transpose(h, (0, 3, 1, 2)).reshape(x.shape[0], -1)            # NCHW flatten
    t = jnp.maximum(bn(f @ params["proj_w1"], params["proj_g1"], params["proj_b1"]), 0.0)
    t = jnp.maximum(bn(t @ params["proj_w2"], params["proj_g2"], params["proj_b2"]), 0.0)
    z = bn(t @ params["proj_w3"])
    q = jnp.maximum(bn(z @ params["pred_w1"], params["pred_g1"], params["pred_b1"]), 0.0)
    p = q @ params["pred_w2"] + params["pred_b2"]
    return z, p


if __name__ == "__main__":
    B = 4
    key = jax.random.PRNGKey(0)
    pkey, xkey = jax.random.split(key)
    params = init_params(pkey)
    x = jax.random.normal(xkey, (B, 3, 16, 16), F32)          # NCHW like PyTorch

    w1s, w2s, hs = pack_params(params)                        # one-time parameter prep
    forward = make_simsiam_forward(B)
    z, p = forward(x, w1s, w2s, hs)
    jax.block_until_ready((z, p))

    assert z.shape == (B, 8) and p.shape == (B, 8)
    assert z.dtype == F32 and p.dtype == F32

    # Cross-check against a reference that applies the same bf16 rounding at
    # the conv matmuls (the kernel intentionally uses bf16 conv weights /
    # activations with f32 accumulation; everything else is f32).
    z_ref, p_ref = reference_forward(x, params, conv_dtype=jnp.bfloat16)
    err = max(float(jnp.max(jnp.abs(z - z_ref))), float(jnp.max(jnp.abs(p - p_ref))))
    assert err < 2e-2, err
    print("KERNEL_OK")
</pallas_src>

<mosaic_0001>
module attributes {stable_mosaic.version = 11 : i64} {
  func.func @kernel(%arg0: memref<80x54xf32, #tpu.memory_space<vmem>>, %arg1: memref<448x256xbf16, #tpu.memory_space<vmem>>, %arg2: memref<1168x64xbf16, #tpu.memory_space<vmem>>, %arg3: memref<216x32xf32, #tpu.memory_space<vmem>>, %arg4: memref<4x16xf32, #tpu.memory_space<vmem>>, %arg5: memref<72x128xf32, #tpu.memory_space<vmem>>, %arg6: memref<48x160xf32, #tpu.memory_space<vmem>>, %arg7: memref<40x32xf32, #tpu.memory_space<vmem>>) attributes {dimension_semantics = [], scalar_prefetch = 0 : i64, scratch_operands = 3 : i64, tpu.core_type = #tpu.core_type<tc>} {
    %cst = arith.constant 0.000000e+00 : f32
    %0 = vector.broadcast %cst : f32 to vector<72x256xf32>
    %c0 = arith.constant 0 : index
    %c0_0 = arith.constant 0 : index
    %1 = vector.load %arg0[%c0, %c0_0] : memref<80x54xf32, #tpu.memory_space<vmem>>, vector<72x48xf32>
    %2 = arith.truncf %1 : vector<72x48xf32> to vector<72x48xbf16>
    %c0_1 = arith.constant 0 : index
    %c0_2 = arith.constant 0 : index
    %3 = vector.load %arg1[%c0_1, %c0_2] : memref<448x256xbf16, #tpu.memory_space<vmem>>, vector<48x256xbf16>
    %cst_3 = arith.constant dense<0.000000e+00> : vector<72x256xf32>
    %4 = tpu.matmul %2, %3, %cst_3 {dimension_numbers = #tpu.dot_dimension_numbers<[1], [0], [0], [1], [0, 0, 1, 1], [], []>} : vector<72x48xbf16>, vector<48x256xbf16>, vector<72x256xf32> -> vector<72x256xf32>
    %5 = arith.addf %0, %4 : vector<72x256xf32>
    %c0_4 = arith.constant 0 : index
    %c3 = arith.constant 3 : index
    %6 = vector.load %arg0[%c0_4, %c3] : memref<80x54xf32, #tpu.memory_space<vmem>>, vector<72x48xf32>
    %7 = arith.truncf %6 : vector<72x48xf32> to vector<72x48xbf16>
    %c48 = arith.constant 48 : index
    %c0_5 = arith.constant 0 : index
    %8 = vector.load %arg1[%c48, %c0_5] : memref<448x256xbf16, #tpu.memory_space<vmem>>, vector<48x256xbf16>
    %cst_6 = arith.constant dense<0.000000e+00> : vector<72x256xf32>
    %9 = tpu.matmul %7, %8, %cst_6 {dimension_numbers = #tpu.dot_dimension_numbers<[1], [0], [0], [1], [0, 0, 1, 1], [], []>} : vector<72x48xbf16>, vector<48x256xbf16>, vector<72x256xf32> -> vector<72x256xf32>
    %10 = arith.addf %5, %9 : vector<72x256xf32>
    %c0_7 = arith.constant 0 : index
    %c6 = arith.constant 6 : index
    %11 = vector.load %arg0[%c0_7, %c6] : memref<80x54xf32, #tpu.memory_space<vmem>>, vector<72x48xf32>
    %12 = arith.truncf %11 : vector<72x48xf32> to vector<72x48xbf16>
    %c96 = arith.constant 96 : index
    %c0_8 = arith.constant 0 : index
    %13 = vector.load %arg1[%c96, %c0_8] : memref<448x256xbf16, #tpu.memory_space<vmem>>, vector<48x256xbf16>
    %cst_9 = arith.constant dense<0.000000e+00> : vector<72x256xf32>
    %14 = tpu.matmul %12, %13, %cst_9 {dimension_numbers = #tpu.dot_dimension_numbers<[1], [0], [0], [1], [0, 0, 1, 1], [], []>} : vector<72x48xbf16>, vector<48x256xbf16>, vector<72x256xf32> -> vector<72x256xf32>
    %15 = arith.addf %10, %14 : vector<72x256xf32>
    %c1 = arith.constant 1 : index
    %c0_10 = arith.constant 0 : index
    %16 = vector.load %arg0[%c1, %c0_10] : memref<80x54xf32, #tpu.memory_space<vmem>>, vector<72x48xf32>
    %17 = arith.truncf %16 : vector<72x48xf32> to vector<72x48xbf16>
    %c144 = arith.constant 144 : index
    %c0_11 = arith.constant 0 : index
    %18 = vector.load %arg1[%c144, %c0_11] : memref<448x256xbf16, #tpu.memory_space<vmem>>, vector<48x256xbf16>
    %cst_12 = arith.constant dense<0.000000e+00> : vector<72x256xf32>
    %19 = tpu.matmul %17, %18, %cst_12 {dimension_numbers = #tpu.dot_dimension_numbers<[1], [0], [0], [1], [0, 0, 1, 1], [], []>} : vector<72x48xbf16>, vector<48x256xbf16>, vector<72x256xf32> -> vector<72x256xf32>
    %20 = arith.addf %15, %19 : vector<72x256xf32>
    %c1_13 = arith.constant 1 : index
    %c3_14 = arith.constant 3 : index
    %21 = vector.load %arg0[%c1_13, %c3_14] : memref<80x54xf32, #tpu.memory_space<vmem>>, vector<72x48xf32>
    %22 = arith.truncf %21 : vector<72x48xf32> to vector<72x48xbf16>
    %c192 = arith.constant 192 : index
    %c0_15 = arith.constant 0 : index
    %23 = vector.load %arg1[%c192, %c0_15] : memref<448x256xbf16, #tpu.memory_space<vmem>>, vector<48x256xbf16>
    %cst_16 = arith.constant dense<0.000000e+00> : vector<72x256xf32>
    %24 = tpu.matmul %22, %23, %cst_16 {dimension_numbers = #tpu.dot_dimension_numbers<[1], [0], [0], [1], [0, 0, 1, 1], [], []>} : vector<72x48xbf16>, vector<48x256xbf16>, vector<72x256xf32> -> vector<72x256xf32>
    %25 = arith.addf %20, %24 : vector<72x256xf32>
    %c1_17 = arith.constant 1 : index
    %c6_18 = arith.constant 6 : index
    %26 = vector.load %arg0[%c1_17, %c6_18] : memref<80x54xf32, #tpu.memory_space<vmem>>, vector<72x48xf32>
    %27 = arith.truncf %26 : vector<72x48xf32> to vector<72x48xbf16>
    %c240 = arith.constant 240 : index
    %c0_19 = arith.constant 0 : index
    %28 = vector.load %arg1[%c240, %c0_19] : memref<448x256xbf16, #tpu.memory_space<vmem>>, vector<48x256xbf16>
    %cst_20 = arith.constant dense<0.000000e+00> : vector<72x256xf32>
    %29 = tpu.matmul %27, %28, %cst_20 {dimension_numbers = #tpu.dot_dimension_numbers<[1], [0], [0], [1], [0, 0, 1, 1], [], []>} : vector<72x48xbf16>, vector<48x256xbf16>, vector<72x256xf32> -> vector<72x256xf32>
    %30 = arith.addf %25, %29 : vector<72x256xf32>
    %c2 = arith.constant 2 : index
    %c0_21 = arith.constant 0 : index
    %31 = vector.load %arg0[%c2, %c0_21] : memref<80x54xf32, #tpu.memory_space<vmem>>, vector<72x48xf32>
    %32 = arith.truncf %31 : vector<72x48xf32> to vector<72x48xbf16>
    %c288 = arith.constant 288 : index
    %c0_22 = arith.constant 0 : index
    %33 = vector.load %arg1[%c288, %c0_22] : memref<448x256xbf16, #tpu.memory_space<vmem>>, vector<48x256xbf16>
    %cst_23 = arith.constant dense<0.000000e+00> : vector<72x256xf32>
    %34 = tpu.matmul %32, %33, %cst_23 {dimension_numbers = #tpu.dot_dimension_numbers<[1], [0], [0], [1], [0, 0, 1, 1], [], []>} : vector<72x48xbf16>, vector<48x256xbf16>, vector<72x256xf32> -> vector<72x256xf32>
    %35 = arith.addf %30, %34 : vector<72x256xf32>
    %c2_24 = arith.constant 2 : index
    %c3_25 = arith.constant 3 : index
    %36 = vector.load %arg0[%c2_24, %c3_25] : memref<80x54xf32, #tpu.memory_space<vmem>>, vector<72x48xf32>
    %37 = arith.truncf %36 : vector<72x48xf32> to vector<72x48xbf16>
    %c336 = arith.constant 336 : index
    %c0_26 = arith.constant 0 : index
    %38 = vector.load %arg1[%c336, %c0_26] : memref<448x256xbf16, #tpu.memory_space<vmem>>, vector<48x256xbf16>
    %cst_27 = arith.constant dense<0.000000e+00> : vector<72x256xf32>
    %39 = tpu.matmul %37, %38, %cst_27 {dimension_numbers = #tpu.dot_dimension_numbers<[1], [0], [0], [1], [0, 0, 1, 1], [], []>} : vector<72x48xbf16>, vector<48x256xbf16>, vector<72x256xf32> -> vector<72x256xf32>
    %40 = arith.addf %35, %39 : vector<72x256xf32>
    %c2_28 = arith.constant 2 : index
    %c6_29 = arith.constant 6 : index
    %41 = vector.load %arg0[%c2_28, %c6_29] : memref<80x54xf32, #tpu.memory_space<vmem>>, vector<72x48xf32>
    %42 = arith.truncf %41 : vector<72x48xf32> to vector<72x48xbf16>
    %c384 = arith.constant 384 : index
    %c0_30 = arith.constant 0 : index
    %43 = vector.load %arg1[%c384, %c0_30] : memref<448x256xbf16, #tpu.memory_space<vmem>>, vector<48x256xbf16>
    %cst_31 = arith.constant dense<0.000000e+00> : vector<72x256xf32>
    %44 = tpu.matmul %42, %43, %cst_31 {dimension_numbers = #tpu.dot_dimension_numbers<[1], [0], [0], [1], [0, 0, 1, 1], [], []>} : vector<72x48xbf16>, vector<48x256xbf16>, vector<72x256xf32> -> vector<72x256xf32>
    %45 = arith.addf %40, %44 : vector<72x256xf32>
    %c432 = arith.constant 432 : index
    %c0_32 = arith.constant 0 : index
    %46 = vector.load %arg1[%c432, %c0_32] : memref<448x256xbf16, #tpu.memory_space<vmem>>, vector<1x256xbf16>
    %47 = arith.extf %46 : vector<1x256xbf16> to vector<1x256xf32>
    %48 = vector.broadcast %47 : vector<1x256xf32> to vector<72x256xf32>
    %49 = arith.addf %45, %48 : vector<72x256xf32>
    %50 = vector.extract_strided_slice %49 {offsets = [0, 0], sizes = [72, 128], strides = [1, 1]} : vector<72x256xf32> to vector<72x128xf32>
    %51 = vector.extract_strided_slice %49 {offsets = [0, 128], sizes = [72, 128], strides = [1, 1]} : vector<72x256xf32> to vector<72x128xf32>
    %52 = arith.maximumf %50, %51 : vector<72x128xf32>
    %c0_33 = arith.constant 0 : index
    %c0_34 = arith.constant 0 : index
    %53 = vector.load %arg5[%c0_33, %c0_34] : memref<72x128xf32, #tpu.memory_space<vmem>>, vector<72x128xf32>
    tpu.vector_store %arg5[%c0_33, %c0_34], %52 {strides = array<i32>} : memref<72x128xf32, #tpu.memory_space<vmem>>, vector<72x128xf32>,
    %cst_35 = arith.constant 0.000000e+00 : f32
    %54 = vector.broadcast %cst_35 : f32 to vector<48x160xf32>
    %c0_36 = arith.constant 0 : index
    %c0_37 = arith.constant 0 : index
    %55 = vector.load %arg6[%c0_36, %c0_37] : memref<48x160xf32, #tpu.memory_space<vmem>>, vector<48x160xf32>
    tpu.vector_store %arg6[%c0_36, %c0_37], %54 {strides = array<i32>} : memref<48x160xf32, #tpu.memory_space<vmem>>, vector<48x160xf32>,
    %c0_38 = arith.constant 0 : index
    %c0_39 = arith.constant 0 : index
    %56 = tpu.strided_load %arg5[%c0_38, %c0_39] {strides = array<i32: 2, 1>} : memref<72x128xf32, #tpu.memory_space<vmem>>, vector<8x128xf32>
    %c1_40 = arith.constant 1 : index
    %c0_41 = arith.constant 0 : index
    %57 = tpu.strided_load %arg5[%c1_40, %c0_41] {strides = array<i32: 2, 1>} : memref<72x128xf32, #tpu.memory_space<vmem>>, vector<8x128xf32>
    %58 = arith.maximumf %56, %57 : vector<8x128xf32>
    %cst_42 = arith.constant 0.000000e+00 : f32
    %59 = vector.broadcast %cst_42 : f32 to vector<8x128xf32>
    %60 = arith.maximumf %58, %59 : vector<8x128xf32>
    %c1_43 = arith.constant 1 : index
    %c16 = arith.constant 16 : index
    %61 = vector.load %arg6[%c1_43, %c16] : memref<48x160xf32, #tpu.memory_space<vmem>>, vector<8x128xf32>
    tpu.vector_store %arg6[%c1_43, %c16], %60 {strides = array<i32>} : memref<48x160xf32, #tpu.memory_space<vmem>>, vector<8x128xf32>,
    %c18 = arith.constant 18 : index
    %c0_44 = arith.constant 0 : index
    %62 = tpu.strided_load %arg5[%c18, %c0_44] {strides = array<i32: 2, 1>} : memref<72x128xf32, #tpu.memory_space<vmem>>, vector<8x128xf32>
    %c19 = arith.constant 19 : index
    %c0_45 = arith.constant 0 : index
    %63 = tpu.strided_load %arg5[%c19, %c0_45] {strides = array<i32: 2, 1>} : memref<72x128xf32, #tpu.memory_space<vmem>>, vector<8x128xf32>
    %64 = arith.maximumf %62, %63 : vector<8x128xf32>
    %cst_46 = arith.constant 0.000000e+00 : f32
    %65 = vector.broadcast %cst_46 : f32 to vector<8x128xf32>
    %66 = arith.maximumf %64, %65 : vector<8x128xf32>
    %c11 = arith.constant 11 : index
    %c16_47 = arith.constant 16 : index
    %67 = vector.load %arg6[%c11, %c16_47] : memref<48x160xf32, #tpu.memory_space<vmem>>, vector<8x128xf32>
    tpu.vector_store %arg6[%c11, %c16_47], %66 {strides = array<i32>} : memref<48x160xf32, #tpu.memory_space<vmem>>, vector<8x128xf32>,
    %c36 = arith.constant 36 : index
    %c0_48 = arith.constant 0 : index
    %68 = tpu.strided_load %arg5[%c36, %c0_48] {strides = array<i32: 2, 1>} : memref<72x128xf32, #tpu.memory_space<vmem>>, vector<8x128xf32>
    %c37 = arith.constant 37 : index
    %c0_49 = arith.constant 0 : index
    %69 = tpu.strided_load %arg5[%c37, %c0_49] {strides = array<i32: 2, 1>} : memref<72x128xf32, #tpu.memory_space<vmem>>, vector<8x128xf32>
    %70 = arith.maximumf %68, %69 : vector<8x128xf32>
    %cst_50 = arith.constant 0.000000e+00 : f32
    %71 = vector.broadcast %cst_50 : f32 to vector<8x128xf32>
    %72 = arith.maximumf %70, %71 : vector<8x128xf32>
    %c21 = arith.constant 21 : index
    %c16_51 = arith.constant 16 : index
    %73 = vector.load %arg6[%c21, %c16_51] : memref<48x160xf32, #tpu.memory_space<vmem>>, vector<8x128xf32>
    tpu.vector_store %arg6[%c21, %c16_51], %72 {strides = array<i32>} : memref<48x160xf32, #tpu.memory_space<vmem>>, vector<8x128xf32>,
    %c54 = arith.constant 54 : index
    %c0_52 = arith.constant 0 : index
    %74 = tpu.strided_load %arg5[%c54, %c0_52] {strides = array<i32: 2, 1>} : memref<72x128xf32, #tpu.memory_space<vmem>>, vector<8x128xf32>
    %c55 = arith.constant 55 : index
    %c0_53 = arith.constant 0 : index
    %75 = tpu.strided_load %arg5[%c55, %c0_53] {strides = array<i32: 2, 1>} : memref<72x128xf32, #tpu.memory_space<vmem>>, vector<8x128xf32>
    %76 = arith.maximumf %74, %75 : vector<8x128xf32>
    %cst_54 = arith.constant 0.000000e+00 : f32
    %77 = vector.broadcast %cst_54 : f32 to vector<8x128xf32>
    %78 = arith.maximumf %76, %77 : vector<8x128xf32>
    %c31 = arith.constant 31 : index
    %c16_55 = arith.constant 16 : index
    %79 = vector.load %arg6[%c31, %c16_55] : memref<48x160xf32, #tpu.memory_space<vmem>>, vector<8x128xf32>
    tpu.vector_store %arg6[%c31, %c16_55], %78 {strides = array<i32>} : memref<48x160xf32, #tpu.memory_space<vmem>>, vector<8x128xf32>,
    %cst_56 = arith.constant 0.000000e+00 : f32
    %80 = vector.broadcast %cst_56 : f32 to vector<40x64xf32>
    %c0_57 = arith.constant 0 : index
    %c0_58 = arith.constant 0 : index
    %81 = vector.load %arg6[%c0_57, %c0_58] : memref<48x160xf32, #tpu.memory_space<vmem>>, vector<40x128xf32>
    %82 = arith.truncf %81 : vector<40x128xf32> to vector<40x128xbf16>
    %c0_59 = arith.constant 0 : index
    %c0_60 = arith.constant 0 : index
    %83 = vector.load %arg2[%c0_59, %c0_60] : memref<1168x64xbf16, #tpu.memory_space<vmem>>, vector<128x64xbf16>
    %cst_61 = arith.constant dense<0.000000e+00> : vector<40x64xf32>
    %84 = tpu.matmul %82, %83, %cst_61 {dimension_numbers = #tpu.dot_dimension_numbers<[1], [0], [0], [1], [0, 0, 1, 1], [], []>} : vector<40x128xbf16>, vector<128x64xbf16>, vector<40x64xf32> -> vector<40x64xf32>
    %85 = arith.addf %80, %84 : vector<40x64xf32>
    %c0_62 = arith.constant 0 : index
    %c16_63 = arith.constant 16 : index
    %86 = vector.load %arg6[%c0_62, %c16_63] : memref<48x160xf32, #tpu.memory_space<vmem>>, vector<40x128xf32>
    %87 = arith.truncf %86 : vector<40x128xf32> to vector<40x128xbf16>
    %c128 = arith.constant 128 : index
    %c0_64 = arith.constant 0 : index
    %88 = vector.load %arg2[%c128, %c0_64] : memref<1168x64xbf16, #tpu.memory_space<vmem>>, vector<128x64xbf16>
    %cst_65 = arith.constant dense<0.000000e+00> : vector<40x64xf32>
    %89 = tpu.matmul %87, %88, %cst_65 {dimension_numbers = #tpu.dot_dimension_numbers<[1], [0], [0], [1], [0, 0, 1, 1], [], []>} : vector<40x128xbf16>, vector<128x64xbf16>, vector<40x64xf32> -> vector<40x64xf32>
    %90 = arith.addf %85, %89 : vector<40x64xf32>
    %c0_66 = arith.constant 0 : index
    %c32 = arith.constant 32 : index
    %91 = vector.load %arg6[%c0_66, %c32] : memref<48x160xf32, #tpu.memory_space<vmem>>, vector<40x128xf32>
    %92 = arith.truncf %91 : vector<40x128xf32> to vector<40x128xbf16>
    %c256 = arith.constant 256 : index
    %c0_67 = arith.constant 0 : index
    %93 = vector.load %arg2[%c256, %c0_67] : memref<1168x64xbf16, #tpu.memory_space<vmem>>, vector<128x64xbf16>
    %cst_68 = arith.constant dense<0.000000e+00> : vector<40x64xf32>
    %94 = tpu.matmul %92, %93, %cst_68 {dimension_numbers = #tpu.dot_dimension_numbers<[1], [0], [0], [1], [0, 0, 1, 1], [], []>} : vector<40x128xbf16>, vector<128x64xbf16>, vector<40x64xf32> -> vector<40x64xf32>
    %95 = arith.addf %90, %94 : vector<40x64xf32>
    %c1_69 = arith.constant 1 : index
    %c0_70 = arith.constant 0 : index
    %96 = vector.load %arg6[%c1_69, %c0_70] : memref<48x160xf32, #tpu.memory_space<vmem>>, vector<40x128xf32>
    %97 = arith.truncf %96 : vector<40x128xf32> to vector<40x128xbf16>
    %c384_71 = arith.constant 384 : index
    %c0_72 = arith.constant 0 : index
    %98 = vector.load %arg2[%c384_71, %c0_72] : memref<1168x64xbf16, #tpu.memory_space<vmem>>, vector<128x64xbf16>
    %cst_73 = arith.constant dense<0.000000e+00> : vector<40x64xf32>
    %99 = tpu.matmul %97, %98, %cst_73 {dimension_numbers = #tpu.dot_dimension_numbers<[1], [0], [0], [1], [0, 0, 1, 1], [], []>} : vector<40x128xbf16>, vector<128x64xbf16>, vector<40x64xf32> -> vector<40x64xf32>
    %100 = arith.addf %95, %99 : vector<40x64xf32>
    %c1_74 = arith.constant 1 : index
    %c16_75 = arith.constant 16 : index
    %101 = vector.load %arg6[%c1_74, %c16_75] : memref<48x160xf32, #tpu.memory_space<vmem>>, vector<40x128xf32>
    %102 = arith.truncf %101 : vector<40x128xf32> to vector<40x128xbf16>
    %c512 = arith.constant 512 : index
    %c0_76 = arith.constant 0 : index
    %103 = vector.load %arg2[%c512, %c0_76] : memref<1168x64xbf16, #tpu.memory_space<vmem>>, vector<128x64xbf16>
    %cst_77 = arith.constant dense<0.000000e+00> : vector<40x64xf32>
    %104 = tpu.matmul %102, %103, %cst_77 {dimension_numbers = #tpu.dot_dimension_numbers<[1], [0], [0], [1], [0, 0, 1, 1], [], []>} : vector<40x128xbf16>, vector<128x64xbf16>, vector<40x64xf32> -> vector<40x64xf32>
    %105 = arith.addf %100, %104 : vector<40x64xf32>
    %c1_78 = arith.constant 1 : index
    %c32_79 = arith.constant 32 : index
    %106 = vector.load %arg6[%c1_78, %c32_79] : memref<48x160xf32, #tpu.memory_space<vmem>>, vector<40x128xf32>
    %107 = arith.truncf %106 : vector<40x128xf32> to vector<40x128xbf16>
    %c640 = arith.constant 640 : index
    %c0_80 = arith.constant 0 : index
    %108 = vector.load %arg2[%c640, %c0_80] : memref<1168x64xbf16, #tpu.memory_space<vmem>>, vector<128x64xbf16>
    %cst_81 = arith.constant dense<0.000000e+00> : vector<40x64xf32>
    %109 = tpu.matmul %107, %108, %cst_81 {dimension_numbers = #tpu.dot_dimension_numbers<[1], [0], [0], [1], [0, 0, 1, 1], [], []>} : vector<40x128xbf16>, vector<128x64xbf16>, vector<40x64xf32> -> vector<40x64xf32>
    %110 = arith.addf %105, %109 : vector<40x64xf32>
    %c2_82 = arith.constant 2 : index
    %c0_83 = arith.constant 0 : index
    %111 = vector.load %arg6[%c2_82, %c0_83] : memref<48x160xf32, #tpu.memory_space<vmem>>, vector<40x128xf32>
    %112 = arith.truncf %111 : vector<40x128xf32> to vector<40x128xbf16>
    %c768 = arith.constant 768 : index
    %c0_84 = arith.constant 0 : index
    %113 = vector.load %arg2[%c768, %c0_84] : memref<1168x64xbf16, #tpu.memory_space<vmem>>, vector<128x64xbf16>
    %cst_85 = arith.constant dense<0.000000e+00> : vector<40x64xf32>
    %114 = tpu.matmul %112, %113, %cst_85 {dimension_numbers = #tpu.dot_dimension_numbers<[1], [0], [0], [1], [0, 0, 1, 1], [], []>} : vector<40x128xbf16>, vector<128x64xbf16>, vector<40x64xf32> -> vector<40x64xf32>
    %115 = arith.addf %110, %114 : vector<40x64xf32>
    %c2_86 = arith.constant 2 : index
    %c16_87 = arith.constant 16 : index
    %116 = vector.load %arg6[%c2_86, %c16_87] : memref<48x160xf32, #tpu.memory_space<vmem>>, vector<40x128xf32>
    %117 = arith.truncf %116 : vector<40x128xf32> to vector<40x128xbf16>
    %c896 = arith.constant 896 : index
    %c0_88 = arith.constant 0 : index
    %118 = vector.load %arg2[%c896, %c0_88] : memref<1168x64xbf16, #tpu.memory_space<vmem>>, vector<128x64xbf16>
    %cst_89 = arith.constant dense<0.000000e+00> : vector<40x64xf32>
    %119 = tpu.matmul %117, %118, %cst_89 {dimension_numbers = #tpu.dot_dimension_numbers<[1], [0], [0], [1], [0, 0, 1, 1], [], []>} : vector<40x128xbf16>, vector<128x64xbf16>, vector<40x64xf32> -> vector<40x64xf32>
    %120 = arith.addf %115, %119 : vector<40x64xf32>
    %c2_90 = arith.constant 2 : index
    %c32_91 = arith.constant 32 : index
    %121 = vector.load %arg6[%c2_90, %c32_91] : memref<48x160xf32, #tpu.memory_space<vmem>>, vector<40x128xf32>
    %122 = arith.truncf %121 : vector<40x128xf32> to vector<40x128xbf16>
    %c1024 = arith.constant 1024 : index
    %c0_92 = arith.constant 0 : index
    %123 = vector.load %arg2[%c1024, %c0_92] : memref<1168x64xbf16, #tpu.memory_space<vmem>>, vector<128x64xbf16>
    %cst_93 = arith.constant dense<0.000000e+00> : vector<40x64xf32>
    %124 = tpu.matmul %122, %123, %cst_93 {dimension_numbers = #tpu.dot_dimension_numbers<[1], [0], [0], [1], [0, 0, 1, 1], [], []>} : vector<40x128xbf16>, vector<128x64xbf16>, vector<40x64xf32> -> vector<40x64xf32>
    %125 = arith.addf %120, %124 : vector<40x64xf32>
    %c1152 = arith.constant 1152 : index
    %c0_94 = arith.constant 0 : index
    %126 = vector.load %arg2[%c1152, %c0_94] : memref<1168x64xbf16, #tpu.memory_space<vmem>>, vector<1x64xbf16>
    %127 = arith.extf %126 : vector<1x64xbf16> to vector<1x64xf32>
    %128 = vector.broadcast %127 : vector<1x64xf32> to vector<40x64xf32>
    %129 = arith.addf %125, %128 : vector<40x64xf32>
    %130 = vector.extract_strided_slice %129 {offsets = [0, 0], sizes = [40, 32], strides = [1, 1]} : vector<40x64xf32> to vector<40x32xf32>
    %131 = vector.extract_strided_slice %129 {offsets = [0, 32], sizes = [40, 32], strides = [1, 1]} : vector<40x64xf32> to vector<40x32xf32>
    %132 = arith.maximumf %130, %131 : vector<40x32xf32>
    %cst_95 = arith.constant 0.000000e+00 : f32
    %133 = vector.broadcast %cst_95 : f32 to vector<40x32xf32>
    %134 = arith.maximumf %132, %133 : vector<40x32xf32>
    %c0_96 = arith.constant 0 : index
    %c0_97 = arith.constant 0 : index
    %135 = vector.load %arg7[%c0_96, %c0_97] : memref<40x32xf32, #tpu.memory_space<vmem>>, vector<40x32xf32>
    tpu.vector_store %arg7[%c0_96, %c0_97], %134 {strides = array<i32>} : memref<40x32xf32, #tpu.memory_space<vmem>>, vector<40x32xf32>,
    %c0_98 = arith.constant 0 : index
    %c0_99 = arith.constant 0 : index
    %136 = tpu.strided_load %arg7[%c0_98, %c0_99] {strides = array<i32: 10, 1>} : memref<40x32xf32, #tpu.memory_space<vmem>>, vector<4x32xf32>
    %c1_100 = arith.constant 1 : index
    %c0_101 = arith.constant 0 : index
    %137 = tpu.strided_load %arg7[%c1_100, %c0_101] {strides = array<i32: 10, 1>} : memref<40x32xf32, #tpu.memory_space<vmem>>, vector<4x32xf32>
    %138 = arith.maximumf %136, %137 : vector<4x32xf32>
    %c2_102 = arith.constant 2 : index
    %c0_103 = arith.constant 0 : index
    %139 = tpu.strided_load %arg7[%c2_102, %c0_103] {strides = array<i32: 10, 1>} : memref<40x32xf32, #tpu.memory_space<vmem>>, vector<4x32xf32>
    %c3_104 = arith.constant 3 : index
    %c0_105 = arith.constant 0 : index
    %140 = tpu.strided_load %arg7[%c3_104, %c0_105] {strides = array<i32: 10, 1>} : memref<40x32xf32, #tpu.memory_space<vmem>>, vector<4x32xf32>
    %141 = arith.maximumf %139, %140 : vector<4x32xf32>
    %c4 = arith.constant 4 : index
    %c0_106 = arith.constant 0 : index
    %142 = tpu.strided_load %arg7[%c4, %c0_106] {strides = array<i32: 10, 1>} : memref<40x32xf32, #tpu.memory_space<vmem>>, vector<4x32xf32>
    %c5 = arith.constant 5 : index
    %c0_107 = arith.constant 0 : index
    %143 = tpu.strided_load %arg7[%c5, %c0_107] {strides = array<i32: 10, 1>} : memref<40x32xf32, #tpu.memory_space<vmem>>, vector<4x32xf32>
    %144 = arith.maximumf %142, %143 : vector<4x32xf32>
    %c6_108 = arith.constant 6 : index
    %c0_109 = arith.constant 0 : index
    %145 = tpu.strided_load %arg7[%c6_108, %c0_109] {strides = array<i32: 10, 1>} : memref<40x32xf32, #tpu.memory_space<vmem>>, vector<4x32xf32>
    %c7 = arith.constant 7 : index
    %c0_110 = arith.constant 0 : index
    %146 = tpu.strided_load %arg7[%c7, %c0_110] {strides = array<i32: 10, 1>} : memref<40x32xf32, #tpu.memory_space<vmem>>, vector<4x32xf32>
    %147 = arith.maximumf %145, %146 : vector<4x32xf32>
    %148 = tpu.concatenate %138, %141, %144, %147 in 1 : vector<4x32xf32>, vector<4x32xf32>, vector<4x32xf32>, vector<4x32xf32> -> vector<4x128xf32>
    %c0_111 = arith.constant 0 : index
    %c0_112 = arith.constant 0 : index
    %149 = vector.load %arg3[%c0_111, %c0_112] : memref<216x32xf32, #tpu.memory_space<vmem>>, vector<128x32xf32>
    %cst_113 = arith.constant dense<0.000000e+00> : vector<4x32xf32>
    %150 = tpu.matmul %148, %149, %cst_113 {dimension_numbers = #tpu.dot_dimension_numbers<[1], [0], [0], [1], [0, 0, 1, 1], [], []>} : vector<4x128xf32>, vector<128x32xf32>, vector<4x32xf32> -> vector<4x32xf32>
    %c128_114 = arith.constant 128 : index
    %c0_115 = arith.constant 0 : index
    %151 = vector.load %arg3[%c128_114, %c0_115] : memref<216x32xf32, #tpu.memory_space<vmem>>, vector<1x32xf32>
    %c129 = arith.constant 129 : index
    %c0_116 = arith.constant 0 : index
    %152 = vector.load %arg3[%c129, %c0_116] : memref<216x32xf32, #tpu.memory_space<vmem>>, vector<1x32xf32>
    %cst_117 = arith.constant dense<0.000000e+00> : vector<32xf32>
    %153 = vector.multi_reduction <add>, %150, %cst_117 [0] : vector<4x32xf32> to vector<32xf32>
    %154 = vector.shape_cast %153 : vector<32xf32> to vector<1x32xf32>
    %cst_118 = arith.constant 4.000000e+00 : f32
    %155 = vector.broadcast %cst_118 : f32 to vector<1x32xf32>
    %156 = arith.divf %154, %155 : vector<1x32xf32>
    %157 = vector.broadcast %156 : vector<1x32xf32> to vector<4x32xf32>
    %158 = arith.subf %150, %157 : vector<4x32xf32>
    %159 = arith.mulf %158, %158 : vector<4x32xf32>
    %cst_119 = arith.constant dense<0.000000e+00> : vector<32xf32>
    %160 = vector.multi_reduction <add>, %159, %cst_119 [0] : vector<4x32xf32> to vector<32xf32>
    %161 = vector.shape_cast %160 : vector<32xf32> to vector<1x32xf32>
    %cst_120 = arith.constant 4.000000e+00 : f32
    %162 = vector.broadcast %cst_120 : f32 to vector<1x32xf32>
    %163 = arith.divf %161, %162 : vector<1x32xf32>
    %164 = vector.broadcast %156 : vector<1x32xf32> to vector<4x32xf32>
    %165 = arith.subf %150, %164 : vector<4x32xf32>
    %cst_121 = arith.constant 9.99999974E-6 : f32
    %166 = vector.broadcast %cst_121 : f32 to vector<1x32xf32>
    %167 = arith.addf %163, %166 : vector<1x32xf32>
    %168 = math.rsqrt %167 : vector<1x32xf32>
    %169 = vector.broadcast %168 : vector<1x32xf32> to vector<4x32xf32>
    %170 = arith.mulf %165, %169 : vector<4x32xf32>
    %171 = vector.broadcast %151 : vector<1x32xf32> to vector<4x32xf32>
    %172 = arith.mulf %170, %171 : vector<4x32xf32>
    %173 = vector.broadcast %152 : vector<1x32xf32> to vector<4x32xf32>
    %174 = arith.addf %172, %173 : vector<4x32xf32>
    %cst_122 = arith.constant 0.000000e+00 : f32
    %175 = vector.broadcast %cst_122 : f32 to vector<4x32xf32>
    %176 = arith.maximumf %174, %175 : vector<4x32xf32>
    %c130 = arith.constant 130 : index
    %c0_123 = arith.constant 0 : index
    %177 = vector.load %arg3[%c130, %c0_123] : memref<216x32xf32, #tpu.memory_space<vmem>>, vector<32x32xf32>
    %cst_124 = arith.constant dense<0.000000e+00> : vector<4x32xf32>
    %178 = tpu.matmul %176, %177, %cst_124 {dimension_numbers = #tpu.dot_dimension_numbers<[1], [0], [0], [1], [0, 0, 1, 1], [], []>} : vector<4x32xf32>, vector<32x32xf32>, vector<4x32xf32> -> vector<4x32xf32>
    %c162 = arith.constant 162 : index
    %c0_125 = arith.constant 0 : index
    %179 = vector.load %arg3[%c162, %c0_125] : memref<216x32xf32, #tpu.memory_space<vmem>>, vector<1x32xf32>
    %c163 = arith.constant 163 : index
    %c0_126 = arith.constant 0 : index
    %180 = vector.load %arg3[%c163, %c0_126] : memref<216x32xf32, #tpu.memory_space<vmem>>, vector<1x32xf32>
    %cst_127 = arith.constant dense<0.000000e+00> : vector<32xf32>
    %181 = vector.multi_reduction <add>, %178, %cst_127 [0] : vector<4x32xf32> to vector<32xf32>
    %182 = vector.shape_cast %181 : vector<32xf32> to vector<1x32xf32>
    %cst_128 = arith.constant 4.000000e+00 : f32
    %183 = vector.broadcast %cst_128 : f32 to vector<1x32xf32>
    %184 = arith.divf %182, %183 : vector<1x32xf32>
    %185 = vector.broadcast %184 : vector<1x32xf32> to vector<4x32xf32>
    %186 = arith.subf %178, %185 : vector<4x32xf32>
    %187 = arith.mulf %186, %186 : vector<4x32xf32>
    %cst_129 = arith.constant dense<0.000000e+00> : vector<32xf32>
    %188 = vector.multi_reduction <add>, %187, %cst_129 [0] : vector<4x32xf32> to vector<32xf32>
    %189 = vector.shape_cast %188 : vector<32xf32> to vector<1x32xf32>
    %cst_130 = arith.constant 4.000000e+00 : f32
    %190 = vector.broadcast %cst_130 : f32 to vector<1x32xf32>
    %191 = arith.divf %189, %190 : vector<1x32xf32>
    %192 = vector.broadcast %184 : vector<1x32xf32> to vector<4x32xf32>
    %193 = arith.subf %178, %192 : vector<4x32xf32>
    %cst_131 = arith.constant 9.99999974E-6 : f32
    %194 = vector.broadcast %cst_131 : f32 to vector<1x32xf32>
    %195 = arith.addf %191, %194 : vector<1x32xf32>
    %196 = math.rsqrt %195 : vector<1x32xf32>
    %197 = vector.broadcast %196 : vector<1x32xf32> to vector<4x32xf32>
    %198 = arith.mulf %193, %197 : vector<4x32xf32>
    %199 = vector.broadcast %179 : vector<1x32xf32> to vector<4x32xf32>
    %200 = arith.mulf %198, %199 : vector<4x32xf32>
    %201 = vector.broadcast %180 : vector<1x32xf32> to vector<4x32xf32>
    %202 = arith.addf %200, %201 : vector<4x32xf32>
    %cst_132 = arith.constant 0.000000e+00 : f32
    %203 = vector.broadcast %cst_132 : f32 to vector<4x32xf32>
    %204 = arith.maximumf %202, %203 : vector<4x32xf32>
    %c164 = arith.constant 164 : index
    %c0_133 = arith.constant 0 : index
    %205 = vector.load %arg3[%c164, %c0_133] : memref<216x32xf32, #tpu.memory_space<vmem>>, vector<32x8xf32>
    %cst_134 = arith.constant dense<0.000000e+00> : vector<4x8xf32>
    %206 = tpu.matmul %204, %205, %cst_134 {dimension_numbers = #tpu.dot_dimension_numbers<[1], [0], [0], [1], [0, 0, 1, 1], [], []>} : vector<4x32xf32>, vector<32x8xf32>, vector<4x8xf32> -> vector<4x8xf32>
    %cst_135 = arith.constant dense<0.000000e+00> : vector<8xf32>
    %207 = vector.multi_reduction <add>, %206, %cst_135 [0] : vector<4x8xf32> to vector<8xf32>
    %208 = vector.shape_cast %207 : vector<8xf32> to vector<1x8xf32>
    %cst_136 = arith.constant 4.000000e+00 : f32
    %209 = vector.broadcast %cst_136 : f32 to vector<1x8xf32>
    %210 = arith.divf %208, %209 : vector<1x8xf32>
    %211 = vector.broadcast %210 : vector<1x8xf32> to vector<4x8xf32>
    %212 = arith.subf %206, %211 : vector<4x8xf32>
    %213 = arith.mulf %212, %212 : vector<4x8xf32>
    %cst_137 = arith.constant dense<0.000000e+00> : vector<8xf32>
    %214 = vector.multi_reduction <add>, %213, %cst_137 [0] : vector<4x8xf32> to vector<8xf32>
    %215 = vector.shape_cast %214 : vector<8xf32> to vector<1x8xf32>
    %cst_138 = arith.constant 4.000000e+00 : f32
    %216 = vector.broadcast %cst_138 : f32 to vector<1x8xf32>
    %217 = arith.divf %215, %216 : vector<1x8xf32>
    %218 = vector.broadcast %210 : vector<1x8xf32> to vector<4x8xf32>
    %219 = arith.subf %206, %218 : vector<4x8xf32>
    %cst_139 = arith.constant 9.99999974E-6 : f32
    %220 = vector.broadcast %cst_139 : f32 to vector<1x8xf32>
    %221 = arith.addf %217, %220 : vector<1x8xf32>
    %222 = math.rsqrt %221 : vector<1x8xf32>
    %223 = vector.broadcast %222 : vector<1x8xf32> to vector<4x8xf32>
    %224 = arith.mulf %219, %223 : vector<4x8xf32>
    %c196 = arith.constant 196 : index
    %c0_140 = arith.constant 0 : index
    %225 = vector.load %arg3[%c196, %c0_140] : memref<216x32xf32, #tpu.memory_space<vmem>>, vector<8x4xf32>
    %cst_141 = arith.constant dense<0.000000e+00> : vector<4x4xf32>
    %226 = tpu.matmul %224, %225, %cst_141 {dimension_numbers = #tpu.dot_dimension_numbers<[1], [0], [0], [1], [0, 0, 1, 1], [], []>} : vector<4x8xf32>, vector<8x4xf32>, vector<4x4xf32> -> vector<4x4xf32>
    %c204 = arith.constant 204 : index
    %c0_142 = arith.constant 0 : index
    %227 = vector.load %arg3[%c204, %c0_142] : memref<216x32xf32, #tpu.memory_space<vmem>>, vector<1x4xf32>
    %c205 = arith.constant 205 : index
    %c0_143 = arith.constant 0 : index
    %228 = vector.load %arg3[%c205, %c0_143] : memref<216x32xf32, #tpu.memory_space<vmem>>, vector<1x4xf32>
    %cst_144 = arith.constant dense<0.000000e+00> : vector<4xf32>
    %229 = vector.multi_reduction <add>, %226, %cst_144 [0] : vector<4x4xf32> to vector<4xf32>
    %230 = vector.shape_cast %229 : vector<4xf32> to vector<1x4xf32>
    %cst_145 = arith.constant 4.000000e+00 : f32
    %231 = vector.broadcast %cst_145 : f32 to vector<1x4xf32>
    %232 = arith.divf %230, %231 : vector<1x4xf32>
    %233 = vector.broadcast %232 : vector<1x4xf32> to vector<4x4xf32>
    %234 = arith.subf %226, %233 : vector<4x4xf32>
    %235 = arith.mulf %234, %234 : vector<4x4xf32>
    %cst_146 = arith.constant dense<0.000000e+00> : vector<4xf32>
    %236 = vector.multi_reduction <add>, %235, %cst_146 [0] : vector<4x4xf32> to vector<4xf32>
    %237 = vector.shape_cast %236 : vector<4xf32> to vector<1x4xf32>
    %cst_147 = arith.constant 4.000000e+00 : f32
    %238 = vector.broadcast %cst_147 : f32 to vector<1x4xf32>
    %239 = arith.divf %237, %238 : vector<1x4xf32>
    %240 = vector.broadcast %232 : vector<1x4xf32> to vector<4x4xf32>
    %241 = arith.subf %226, %240 : vector<4x4xf32>
    %cst_148 = arith.constant 9.99999974E-6 : f32
    %242 = vector.broadcast %cst_148 : f32 to vector<1x4xf32>
    %243 = arith.addf %239, %242 : vector<1x4xf32>
    %244 = math.rsqrt %243 : vector<1x4xf32>
    %245 = vector.broadcast %244 : vector<1x4xf32> to vector<4x4xf32>
    %246 = arith.mulf %241, %245 : vector<4x4xf32>
    %247 = vector.broadcast %227 : vector<1x4xf32> to vector<4x4xf32>
    %248 = arith.mulf %246, %247 : vector<4x4xf32>
    %249 = vector.broadcast %228 : vector<1x4xf32> to vector<4x4xf32>
    %250 = arith.addf %248, %249 : vector<4x4xf32>
    %cst_149 = arith.constant 0.000000e+00 : f32
    %251 = vector.broadcast %cst_149 : f32 to vector<4x4xf32>
    %252 = arith.maximumf %250, %251 : vector<4x4xf32>
    %c206 = arith.constant 206 : index
    %c0_150 = arith.constant 0 : index
    %253 = vector.load %arg3[%c206, %c0_150] : memref<216x32xf32, #tpu.memory_space<vmem>>, vector<4x8xf32>
    %cst_151 = arith.constant dense<0.000000e+00> : vector<4x8xf32>
    %254 = tpu.matmul %252, %253, %cst_151 {dimension_numbers = #tpu.dot_dimension_numbers<[1], [0], [0], [1], [0, 0, 1, 1], [], []>} : vector<4x4xf32>, vector<4x8xf32>, vector<4x8xf32> -> vector<4x8xf32>
    %c210 = arith.constant 210 : index
    %c0_152 = arith.constant 0 : index
    %255 = vector.load %arg3[%c210, %c0_152] : memref<216x32xf32, #tpu.memory_space<vmem>>, vector<1x8xf32>
    %256 = vector.broadcast %255 : vector<1x8xf32> to vector<4x8xf32>
    %257 = arith.addf %254, %256 : vector<4x8xf32>
    %c0_153 = arith.constant 0 : index
    %c0_154 = arith.constant 0 : index
    %258 = vector.load %arg4[%c0_153, %c0_154] : memref<4x16xf32, #tpu.memory_space<vmem>>, vector<4x8xf32>
    tpu.vector_store %arg4[%c0_153, %c0_154], %224 {strides = array<i32>} : memref<4x16xf32, #tpu.memory_space<vmem>>, vector<4x8xf32>,
    %c0_155 = arith.constant 0 : index
    %c8 = arith.constant 8 : index
    %259 = vector.load %arg4[%c0_155, %c8] : memref<4x16xf32, #tpu.memory_space<vmem>>, vector<4x8xf32>
    tpu.vector_store %arg4[%c0_155, %c8], %257 {strides = array<i32>} : memref<4x16xf32, #tpu.memory_space<vmem>>, vector<4x8xf32>,
    return
  }
}

</mosaic_0001>

<bundles_post_ra>
// kernel: forward.1
= control target key start
LH: loop header
LB: loop body
LE: loop exit
PB: predicated region body
PF: predicated region fallthrough
CT: control target
= control target key end

     0   :  { %s3676_s29 = smov 125   ;;  %vm89_vm0 = vcmask 392192   ;;  %s3677_s20 = smov 122   ;;  %vm1357_vm1 = vcmask 261120   ;;  %vm1379_vm2 = vcmask 1047681   ;;  %vm1381_vm3 = vcmask 130049   ;;  %s5233_s0 = inlined_call_operand.vmem [shape: f32[80,54], index: 0, kind: input, shape index: {}]   ;;  %s5234_s1 = inlined_call_operand.vmem [shape: bf16[448,256], index: 1, kind: input, shape index: {}]   ;;  %s5235_s2 = inlined_call_operand.vmem [shape: bf16[1168,64], index: 2, kind: input, shape index: {}]   ;;  %s5236_s3 = inlined_call_operand.vmem [shape: f32[216,32], index: 3, kind: input, shape index: {}]   ;;  %s5237_s4 = inlined_call_operand.vmem [shape: f32[4,16], index: 4, kind: output, shape index: {}]  }
   0x1   :  { %v26_v0 = vld [vmem:[%s5233_s0 + $0x40] sm:$0xff]  ;;  %v20_v2 = vld [vmem:[%s5233_s0 + $0x10] sm:$0xff]  ;;  %v21_v3 = vld [vmem:[%s5233_s0 + $0x18] sm:$0xff]  ;;  %vm1383_vm4 = vcmask 1040512   ;;  %vm1385_vm5 = vcmask 122880   ;;  %vm1417_vm6 = vcmask 1047685  }
   0x2   :  { %v3714_v1 = vpack.c.bf16 %v26_v0, %v26_v0  ;;  %v2973_v4 = vld [vmem:[%s5234_s1 + $0x20] sm:$0xf]  ;;  %v3725_v5 = vpack.c.bf16 %v21_v3, %v20_v2  ;;  %v3525_v6 = vld [vmem:[%s5234_s1 + $0x24] sm:$0xf0]  ;;  %v2965_v7 = vld [vmem:[%s5234_s1 + $0x10] sm:$0xf] }
   0x3   :  { %v3523_v8 = vld [vmem:[%s5234_s1 + $0x14] sm:$0xf0]  ;;  %v2974_v9 = vor.u32 %v3525_v6, %v2973_v4  ;;  %v18_v10 = vld [vmem:[%s5233_s0] sm:$0xff]  ;;  %v19_v11 = vld [vmem:[%s5233_s0 + $0x8] sm:$0xff]  ;;  %vm1419_vm7 = vcmask 130053   ;;  %vm1421_vm8 = vcmask 1044608  }
   0x4   :  { %57 = vrot.lane.b32.xlu0 %v3714_v1, %s3676_s29  ;;  %51 = vrot.lane.b32.xlu1 %v3725_v5, %s3676_s29  ;;  %v2966_v12 = vor.u32 %v3523_v8, %v2965_v7  ;;  %v22_v13 = vld [vmem:[%s5233_s0 + $0x20] sm:$0xff]  ;;  %v23_v14 = vld [vmem:[%s5233_s0 + $0x28] sm:$0xff]  ;;  %v27_v17 = vpack.c.bf16 %v19_v11, %v18_v10  ;;  %vm1423_vm9 = vcmask 126976   ;;  %vm1398_vm10 = vcmask 1047683   ;;  %s3681_s25 = smov 96   ;;  %s3682_s12 = smov 64  }
   0x5   :  { %221 = vmatpush.bf16.msra.mxu2 %v2974_v9  ;;  %v2957_v15 = vld [vmem:[%s5234_s1] sm:$0xf]  ;;  %v3521_v16 = vld [vmem:[%s5234_s1 + $0x4] sm:$0xf0]  ;;  %v3758_v18 = vpack.c.bf16 %v23_v14, %v22_v13  ;;  %v24_v20 = vld [vmem:[%s5233_s0 + $0x30] sm:$0xff]  ;;  %vm1400_vm11 = vcmask 130051  }
   0x6   :  { %v2958_v19 = vor.u32 %v3521_v16, %v2957_v15  ;;  %v25_v21 = vld [vmem:[%s5233_s0 + $0x38] sm:$0xff]  ;;  %v2939_v23 = vld [vmem:[%s5234_s1 + $0x50] sm:$0xf]  ;;  %v2931_v25 = vld [vmem:[%s5234_s1 + $0x40] sm:$0xf]  ;;  %vm1402_vm12 = vcmask 1042560  }
   0x7   :  { %v3770_v22 = vpack.c.bf16 %v25_v21, %v24_v20  ;;  %v3531_v24 = vld [vmem:[%s5234_s1 + $0x54] sm:$0xf0]  ;;  %v3529_v27 = vld [vmem:[%s5234_s1 + $0x44] sm:$0xf0]  ;;  %v2923_v29 = vld [vmem:[%s5234_s1 + $0x30] sm:$0xf] }
   0x8   :  { %v2940_v26 = vor.u32 %v3531_v24, %v2939_v23  ;;  %v2932_v28 = vor.u32 %v3529_v27, %v2931_v25  ;;  %v3527_v30 = vld [vmem:[%s5234_s1 + $0x34] sm:$0xf0]  ;;  %v3524_v31 = vld [vmem:[%s5234_s1 + $0x24] sm:$0xf]  ;;  %v2975_v33 = vld [vmem:[%s5234_s1 + $0x28] sm:$0xf0] }
   0x9   :  { %222 = vmatpush.bf16.msra.mxu2 %v2966_v12  ;;  %55 = vrot.lane.b32.xlu2 %v3770_v22, %s3676_s29  ;;  %v2924_v32 = vor.u32 %v3527_v30, %v2923_v29  ;;  %v2978_v34 = vor.u32 %v3524_v31, %v2975_v33  ;;  %v3530_v35 = vld [vmem:[%s5234_s1 + $0x54] sm:$0xf]  ;;  %v2941_v36 = vld [vmem:[%s5234_s1 + $0x58] sm:$0xf0]  ;;  %v3528_v40 = vld [vmem:[%s5234_s1 + $0x44] sm:$0xf] }
   0xa   :  { %3646 = vmatpush.bf16.msra.mxu1 %v2940_v26  ;;  %110 = vmatpush.bf16.msra.mxu0 %v2940_v26  ;;  %v3522_v37 = vld [vmem:[%s5234_s1 + $0x14] sm:$0xf]  ;;  %v2944_v38 = vor.u32 %v3530_v35, %v2941_v36  ;;  %v2967_v39 = vld [vmem:[%s5234_s1 + $0x18] sm:$0xf0]  ;;  %v2933_v41 = vld [vmem:[%s5234_s1 + $0x48] sm:$0xf0] }
   0xb   :  { %254 = vmatpush.bf16.msra.mxu3 %v2978_v34  ;;  %v2970_v42 = vor.u32 %v3522_v37, %v2967_v39  ;;  %v3520_v43 = vld [vmem:[%s5234_s1 + $0x4] sm:$0xf]  ;;  %v2959_v44 = vld [vmem:[%s5234_s1 + $0x8] sm:$0xf0]  ;;  %v2936_v45 = vor.u32 %v3528_v40, %v2933_v41  ;;  %v3526_v47 = vld [vmem:[%s5234_s1 + $0x34] sm:$0xf] }
   0xc   :  { %49 = vrot.lane.b32.xlu0 %v27_v17, %s3676_s29  ;;  %53 = vrot.lane.b32.xlu1 %v3758_v18, %s3676_s29  ;;  %v2962_v46 = vor.u32 %v3520_v43, %v2959_v44  ;;  %v2925_v48 = vld [vmem:[%s5234_s1 + $0x38] sm:$0xf0]  ;;  %v431_v50 = vld [vmem:[%s5233_s0 + $0x21] sm:$0xff]  ;;  %vm1404_vm13 = vcmask 124928   ;;  %vm1436_vm14 = vcmask 1047687   ;;  %vm1438_vm15 = vcmask 130055  }
   0xd   :  { %223 = vmatpush.bf16.msra.mxu2 %v2958_v19  ;;  %v2928_v49 = vor.u32 %v3526_v47, %v2925_v48  ;;  %v432_v51 = vld [vmem:[%s5233_s0 + $0x29] sm:$0xff]  ;;  %v3536_v53 = vld [vmem:[%s5234_s1 + $0x84] sm:$0xf]  ;;  %v3007_v60 = vld [vmem:[%s5234_s1 + $0x80] sm:$0xf]  ;;  %s3685_s10 = smov 8  }
   0xe   :  { %3647 = vmatpush.bf16.msra.mxu1 %v2932_v28  ;;  %111 = vmatpush.bf16.msra.mxu0 %v2932_v28  ;;  %v3852_v52 = vpack.c.bf16 %v432_v51, %v431_v50  ;;  %v3009_v54 = vld [vmem:[%s5234_s1 + $0x88] sm:$0xf0]  ;;  %v427_v56 = vld [vmem:[%s5233_s0 + $0x1] sm:$0xff]  ;;  %v433_v63 = vld [vmem:[%s5233_s0 + $0x31] sm:$0xff] }
   0xf   :  { %255 = vmatpush.bf16.msra.mxu3 %v2970_v42  ;;  %v3012_v55 = vor.u32 %v3536_v53, %v3009_v54  ;;  %v428_v57 = vld [vmem:[%s5233_s0 + $0x9] sm:$0xff]  ;;  %v434_v0 = vld [vmem:[%s5233_s0 + $0x39] sm:$0xff]  ;;  %v3534_v4 = vld [vmem:[%s5234_s1 + $0x74] sm:$0xf] }
  0x10   :  { %2979 = vmatmul.msk.bf16.vlgmr.msra.gmra.mxu2 %vm89_vm0, %v27_v17  ;;  %v3872_v59 = vpack.c.bf16 %v428_v57, %v427_v56  ;;  %v3537_v61 = vld [vmem:[%s5234_s1 + $0x84] sm:$0xf0]  ;;  %v3892_v3 = vpack.c.bf16 %v434_v0, %v433_v63  ;;  %v429_v7 = vld [vmem:[%s5233_s0 + $0x11] sm:$0xff]  ;;  %v430_v8 = vld [vmem:[%s5233_s0 + $0x19] sm:$0xff] }
  0x11   :  { %288 = vrot.lane.b32.xlu2 %v27_v17, %s3677_s20  ;;  %v3008_v62 = vor.u32 %v3537_v61, %v3007_v60  ;;  %v3913_v9 = vpack.c.bf16 %v430_v8, %v429_v7  ;;  %v2999_v10 = vld [vmem:[%s5234_s1 + $0x70] sm:$0xf]  ;;  %v3535_v11 = vld [vmem:[%s5234_s1 + $0x74] sm:$0xf0]  ;;  %v2991_v25 = vld [vmem:[%s5234_s1 + $0x60] sm:$0xf] }
  0x12   :  { %3648 = vmatpush.bf16.msra.mxu1 %v2924_v32  ;;  %112 = vmatpush.bf16.msra.mxu0 %v2924_v32  ;;  %v3000_v12 = vor.u32 %v3535_v11, %v2999_v10  ;;  %v3041_v14 = vld [vmem:[%s5234_s1 + $0xb0] sm:$0xf]  ;;  %v3543_v15 = vld [vmem:[%s5234_s1 + $0xb4] sm:$0xf0]  ;;  %v3532_v26 = vld [vmem:[%s5234_s1 + $0x64] sm:$0xf] }
  0x13   :  { %256 = vmatpush.bf16.msra.mxu3 %v2962_v46  ;;  %v3042_v16 = vor.u32 %v3543_v15, %v3041_v14  ;;  %v3025_v21 = vld [vmem:[%s5234_s1 + $0x90] sm:$0xf]  ;;  %v3539_v23 = vld [vmem:[%s5234_s1 + $0x94] sm:$0xf0]  ;;  %v2993_v28 = vld [vmem:[%s5234_s1 + $0x68] sm:$0xf0] }
  0x14   :  { %290 = vrot.lane.b32.xlu0 %v3725_v5, %s3677_s20  ;;  %292 = vrot.lane.b32.xlu1 %v3758_v18, %s3677_s20  ;;  %v3026_v24 = vor.u32 %v3539_v23, %v3025_v21  ;;  %v2996_v29 = vor.u32 %v3532_v26, %v2993_v28  ;;  %v3542_v33 = vld [vmem:[%s5234_s1 + $0xb4] sm:$0xf]  ;;  %v3043_v34 = vld [vmem:[%s5234_s1 + $0xb8] sm:$0xf0] }
  0x15   :  { %497 = vmatpush.bf16.msrb.mxu2 %v3042_v16  ;;  %v435_v35 = vld [vmem:[%s5233_s0 + $0x41] sm:$0xff]  ;;  %v3046_v36 = vor.u32 %v3542_v33, %v3043_v34  ;;  %v3538_v42 = vld [vmem:[%s5234_s1 + $0x94] sm:$0xf]  ;;  %v3027_v43 = vld [vmem:[%s5234_s1 + $0x98] sm:$0xf0] }
  0x16   :  { %143 = vmatpush.bf16.msrb.mxu1 %v2944_v38  ;;  %2984 = vmatmul.msk.bf16.vlgmr.msra.gmra.mxu3 %vm89_vm0, %v27_v17  ;;  %v3033_v17 = vld [vmem:[%s5234_s1 + $0xa0] sm:$0xf]  ;;  %v3980_v37 = vpack.c.bf16 %v435_v35, %v435_v35  ;;  %v3035_v38 = vld [vmem:[%s5234_s1 + $0xa8] sm:$0xf0]  ;;  %v3030_v44 = vor.u32 %v3538_v42, %v3027_v43  ;;  %v3549_v47 = vld [vmem:[%s5234_s1 + $0xe4] sm:$0xf0] }
  0x17   :  { %348 = vmatpush.bf16.msrb.mxu0 %v3008_v62  ;;  %530 = vmatpush.bf16.msrb.mxu3 %v3046_v36  ;;  %v3075_v46 = vld [vmem:[%s5234_s1 + $0xe0] sm:$0xf]  ;;  %v3548_v48 = vld [vmem:[%s5234_s1 + $0xe4] sm:$0xf]  ;;  %v3077_v50 = vld [vmem:[%s5234_s1 + $0xe8] sm:$0xf0] }
  0x18   :  { %v3080_v51 = vor.u32 %v3548_v48, %v3077_v50  ;;  %v3547_v60 = vld [vmem:[%s5234_s1 + $0xd4] sm:$0xf0]  ;;  %v3069_v62 = vld [vmem:[%s5234_s1 + $0xd8] sm:$0xf0]  ;;  %v871_v8 = vld [vmem:[%s5233_s0 + $0x2] sm:$0xff] }
  0x19   :  { %294 = vrot.lane.b32.xlu2 %v3770_v22, %s3677_s20  ;;  %v3109_v10 = vld [vmem:[%s5234_s1 + $0x110] sm:$0xf]  ;;  %v3101_v14 = vld [vmem:[%s5234_s1 + $0x100] sm:$0xf]  ;;  %v3553_v15 = vld [vmem:[%s5234_s1 + $0x104] sm:$0xf0] }
  0x1a   :  { %144 = vmatpush.bf16.msrb.mxu1 %v2936_v45  ;;  %v876_v21 = vld [vmem:[%s5233_s0 + $0x2a] sm:$0xff]  ;;  %v3544_v34 = vld [vmem:[%s5234_s1 + $0xc4] sm:$0xf]  ;;  %v3554_v42 = vld [vmem:[%s5234_s1 + $0x114] sm:$0xf] }
  0x1b   :  { %349 = vmatpush.bf16.msrb.mxu0 %v3000_v12  ;;  %v3555_v12 = vld [vmem:[%s5234_s1 + $0x114] sm:$0xf0]  ;;  %v3093_v23 = vld [vmem:[%s5234_s1 + $0xf0] sm:$0xf]  ;;  %v3545_v26 = vld [vmem:[%s5234_s1 + $0xc4] sm:$0xf0] }
  0x1c   :  { %296 = vrot.lane.b32.xlu0 %v3714_v1, %s3677_s20  ;;  %587 = vrot.lane.b32.xlu1 %v3872_v59, %s3676_s29  ;;  %v3061_v35 = vld [vmem:[%s5234_s1 + $0xc8] sm:$0xf0]  ;;  %v3111_v43 = vld [vmem:[%s5234_s1 + $0x118] sm:$0xf0] }
  0x1d   :  { %v3064_v36 = vor.u32 %v3544_v34, %v3061_v35 }
  0x1e   :  { %145 = vmatpush.bf16.msrb.mxu1 %v2928_v49  ;;  %v3076_v49 = vor.u32 %v3549_v47, %v3075_v46  ;;  %v3103_v47 = vld [vmem:[%s5234_s1 + $0x108] sm:$0xf0] }
  0x20   :  { %2980 = vmatmul.msk.bf16.gmra.mxu2 %vm89_vm0, %v3725_v5 }
  0x21   :  { %589 = vrot.lane.b32.xlu2 %v3913_v9, %s3676_s29 }
  0x24   :  { %591 = vrot.lane.b32.xlu0 %v3852_v52, %s3676_s29  ;;  %593 = vrot.lane.b32.xlu1 %v3892_v3, %s3676_s29 }
  0x26   :  { %2985 = vmatmul.msk.bf16.gmra.mxu3 %vm89_vm0, %v3725_v5  ;;  %v3001_v5 = vld [vmem:[%s5234_s1 + $0x78] sm:$0xf0] }
  0x27   :  { %v3004_v6 = vor.u32 %v3534_v4, %v3001_v5  ;;  %v874_v4 = vld [vmem:[%s5233_s0 + $0x1a] sm:$0xff] }
  0x29   :  { %595 = vrot.lane.b32.xlu2 %v3980_v37, %s3676_s29 }
  0x2c   :  { %732 = vrot.lane.b32.xlu0 %v3872_v59, %s3677_s20  ;;  %734 = vrot.lane.b32.xlu1 %v3913_v9, %s3677_s20 }
  0x30   :  { %2981 = vmatmul.msk.bf16.gmra.mxu2 %vm89_vm0, %v3758_v18 }
  0x31   :  { %736 = vrot.lane.b32.xlu2 %v3852_v52, %s3677_s20 }
  0x34   :  { %738 = vrot.lane.b32.xlu0 %v3892_v3, %s3677_s20  ;;  %740 = vrot.lane.b32.xlu1 %v3980_v37, %s3677_s20 }
  0x36   :  { %2986 = vmatmul.msk.bf16.gmra.mxu3 %vm89_vm0, %v3758_v18  ;;  %v3541_v18 = vld [vmem:[%s5234_s1 + $0xa4] sm:$0xf0] }
  0x37   :  { %v3034_v19 = vor.u32 %v3541_v18, %v3033_v17  ;;  %v3102_v17 = vor.u32 %v3553_v15, %v3101_v14 }
  0x39   :  { %498 = vmatpush.bf16.msrb.mxu2 %v3034_v19  ;;  %v875_v19 = vld [vmem:[%s5233_s0 + $0x22] sm:$0xff] }
  0x3d   :  { %499 = vmatpush.bf16.msrb.mxu2 %v3026_v24  ;;  %v4106_v24 = vpack.c.bf16 %v876_v21, %v875_v19  ;;  %v877_v19 = vld [vmem:[%s5233_s0 + $0x32] sm:$0xff]  ;;  %v878_v21 = vld [vmem:[%s5233_s0 + $0x3a] sm:$0xff] }
  0x40   :  { %2982 = vmatmul.msk.bf16.gmra.mxu2 %vm89_vm0, %v3770_v22 }
  0x46   :  { %2987 = vmatmul.msk.bf16.gmra.mxu3 %vm89_vm0, %v3770_v22  ;;  %v3533_v22 = vld [vmem:[%s5234_s1 + $0x64] sm:$0xf0] }
  0x47   :  { %v2992_v27 = vor.u32 %v3533_v22, %v2991_v25  ;;  %v3059_v22 = vld [vmem:[%s5234_s1 + $0xc0] sm:$0xf] }
  0x48   :  { %v3060_v28 = vor.u32 %v3545_v26, %v3059_v22 }
  0x49   :  { %350 = vmatpush.bf16.msrb.mxu0 %v2992_v27 }
  0x50   :  { %2983 = vmatmul.msk.bf16.gmra.mxu2 %vm89_vm0, %v3714_v1 }
  0x56   :  { %2988 = vmatmul.msk.bf16.gmra.mxu3 %vm89_vm0, %v3714_v1  ;;  %v3540_v1 = vld [vmem:[%s5234_s1 + $0xa4] sm:$0xf] }
  0x57   :  { %v3038_v39 = vor.u32 %v3540_v1, %v3035_v38 }
  0x59   :  { %531 = vmatpush.bf16.msrb.mxu3 %v3038_v39 }
  0x5d   :  { %532 = vmatpush.bf16.msrb.mxu3 %v3030_v44  ;;  %v3114_v44 = vor.u32 %v3554_v42, %v3111_v43  ;;  %v3137_v42 = vld [vmem:[%s5234_s1 + $0x138] sm:$0xf0] }
  0x60   :  { %3047 = vmatmul.msk.bf16.vlgmr.msrb.gmra.mxu2 %vm89_vm0, %v3872_v59 }
  0x61   :  { %825 = vmatpush.bf16.msra.mxu3 %v3114_v44 }
  0x63   :  { %v56_v40 = vpop.permute.xlu2 %55 }
  0x66   :  { %3052 = vmatmul.msk.bf16.vlgmr.msrb.gmra.mxu3 %vm89_vm0, %v3872_v59  ;;  %v3067_v59 = vld [vmem:[%s5234_s1 + $0xd0] sm:$0xf] }
  0x67   :  { %v3068_v61 = vor.u32 %v3547_v60, %v3067_v59  ;;  %v3095_v59 = vld [vmem:[%s5234_s1 + $0xf8] sm:$0xf0] }
  0x6b   :  { %v289_v53 = vpop.permute.xlu2 %288 }
  0x70   :  { %3048 = vmatmul.msk.bf16.gmra.mxu2 %vm89_vm0, %v3913_v9 }
  0x76   :  { %v3870_v58 = vpop.permute.xlu0 %57  ;;  %v52_v13 = vpop.permute.xlu1 %51  ;;  %3053 = vmatmul.msk.bf16.gmra.mxu3 %vm89_vm0, %v3913_v9  ;;  %v872_v9 = vld [vmem:[%s5233_s0 + $0xa] sm:$0xff] }
  0x77   :  { %2949 = vmatmul.msk.bf16.vlgmr.msra.gmra.mxu1 %vm89_vm0, %v3870_v58  ;;  %v4077_v11 = vpack.c.bf16 %v872_v9, %v871_v8  ;;  %v3560_v8 = vld [vmem:[%s5234_s1 + $0x144] sm:$0xf] }
  0x78   :  { %381 = vmatpush.bf16.msra.mxu1 %v3012_v55 }
  0x79   :  { %1031 = vrot.lane.b32.xlu2 %v4077_v11, %s3676_s29  ;;  %1176 = vrot.lane.b32.xlu0 %v4077_v11, %s3677_s20 }
  0x7c   :  { %382 = vmatpush.bf16.msra.mxu1 %v3004_v6 }
  0x7e   :  { %v50_v2 = vpop.permute.xlu0 %49  ;;  %v54_v30 = vpop.permute.xlu1 %53 }
  0x7f   :  { %2945 = vmatmul.msk.bf16.vlgmr.msra.gmra.mxu0 %vm89_vm0, %v50_v2 }
  0x80   :  { %383 = vmatpush.bf16.msra.mxu1 %v2996_v29  ;;  %647 = vmatpush.bf16.msra.mxu0 %v3076_v49 }
  0x81   :  { %3049 = vmatmul.msk.bf16.gmra.mxu2 %vm89_vm0, %v3852_v52  ;;  %1035 = vrot.lane.b32.xlu0 %v4106_v24, %s3676_s29 }
  0x84   :  { %648 = vmatpush.bf16.msra.mxu0 %v3068_v61 }
  0x86   :  { %v291_v56 = vpop.permute.xlu0 %290  ;;  %3054 = vmatmul.msk.bf16.gmra.mxu3 %vm89_vm0, %v3852_v52  ;;  %v293_v52 = vpop.permute.xlu1 %292 }
  0x87   :  { %2950 = vmatmul.msk.bf16.vlgmr.msrb.gmra.mxu1 %vm89_vm0, %v50_v2  ;;  %v873_v2 = vld [vmem:[%s5233_s0 + $0x12] sm:$0xff] }
  0x88   :  { %680 = vmatpush.bf16.msrb.mxu1 %v3080_v51  ;;  %v4059_v5 = vpack.c.bf16 %v874_v4, %v873_v2  ;;  %649 = vmatpush.bf16.msra.mxu0 %v3060_v28  ;;  %v879_v2 = vld [vmem:[%s5233_s0 + $0x42] sm:$0xff] }
  0x89   :  { %v4176_v4 = vpack.c.bf16 %v879_v2, %v879_v2 }
  0x8a   :  { %1033 = vrot.lane.b32.xlu1 %v4059_v5, %s3676_s29  ;;  %1178 = vrot.lane.b32.xlu2 %v4059_v5, %s3677_s20 }
  0x8e   :  { %v4064_v6 = vpop.permute.xlu0 %296  ;;  %v4124_v27 = vpop.permute.xlu1 %587 }
  0x8f   :  { %2946 = vmatmul.msk.bf16.gmra.mxu0 %vm89_vm0, %v52_v13 }
  0x91   :  { %3050 = vmatmul.msk.bf16.gmra.mxu2 %vm89_vm0, %v3892_v3 }
  0x92   :  { %1180 = vrot.lane.b32.xlu1 %v4106_v24, %s3677_s20 }
  0x93   :  { %v3941_v20 = vpop.f32.mrf.mxu2 }
  0x96   :  { %v4093_v16 = vpop.permute.xlu0 %591  ;;  %3055 = vmatmul.msk.bf16.gmra.mxu3 %vm89_vm0, %v3892_v3  ;;  %v3551_v3 = vld [vmem:[%s5234_s1 + $0xf4] sm:$0xf0]  ;;  %v4134_v1 = vpop.permute.xlu1 %593 }
  0x97   :  { %2951 = vmatmul.msk.bf16.gmra.mxu1 %vm89_vm0, %v52_v13  ;;  %v3110_v13 = vor.u32 %v3555_v12, %v3109_v10  ;;  %v3094_v25 = vor.u32 %v3551_v3, %v3093_v23  ;;  %v3145_v10 = vld [vmem:[%s5234_s1 + $0x148] sm:$0xf0]  ;;  %v4204_v23 = vpack.c.bf16 %v878_v21, %v877_v19 }
  0x98   :  { %v3148_v12 = vor.u32 %v3560_v8, %v3145_v10 }
  0x99   :  { %792 = vmatpush.bf16.msra.mxu2 %v3110_v13  ;;  %v258_v18 = vpop.f32.mrf.mxu3  ;;  %1037 = vrot.lane.b32.xlu2 %v4204_v23, %s3676_s29 }
  0x9a   :  { %1039 = vrot.lane.b32.xlu1 %v4176_v4, %s3676_s29  ;;  %1182 = vrot.lane.b32.xlu0 %v4204_v23, %s3677_s20  ;;  %s3680_s29 = smov 112  }
  0x9b   :  { %v3964_v31 = vpop.f32.mrf.mxu2 }
  0x9d   :  { %793 = vmatpush.bf16.msra.mxu2 %v3102_v17 }
  0x9e   :  { %v733_v29 = vpop.permute.xlu0 %732  ;;  %v735_v48 = vpop.permute.xlu1 %734 }
  0x9f   :  { %2947 = vmatmul.msk.bf16.gmra.mxu0 %vm89_vm0, %v54_v30 }
  0xa1   :  { %3051 = vmatmul.msk.bf16.gmra.mxu2 %vm89_vm0, %v3980_v37  ;;  %v260_v33 = vpop.f32.mrf.mxu3  ;;  %1184 = vrot.lane.b32.xlu2 %v4176_v4, %s3677_s20 }
  0xa2   :  { %794 = vmatpush.bf16.msra.mxu2 %v3094_v25 }
  0xa3   :  { %v3969_v32 = vpop.f32.mrf.mxu2 }
  0xa6   :  { %3056 = vmatmul.msk.bf16.gmra.mxu3 %vm89_vm0, %v3980_v37  ;;  %v3552_v37 = vld [vmem:[%s5234_s1 + $0x104] sm:$0xf]  ;;  %v739_v28 = vpop.permute.xlu0 %738 }
  0xa7   :  { %2952 = vmatmul.msk.bf16.gmra.mxu1 %vm89_vm0, %v54_v30  ;;  %v295_v30 = vpop.permute.xlu2 %294  ;;  %v3106_v49 = vor.u32 %v3552_v37, %v3103_v47 }
  0xa9   :  { %826 = vmatpush.bf16.msra.mxu3 %v3106_v49 }
  0xab   :  { %v3995_v41 = vpop.f32.mrf.mxu2 }
  0xaf   :  { %2948 = vmatmul.msk.bf16.gmra.mxu0 %vm89_vm0, %v56_v40  ;;  %v4147_v46 = vpop.permute.xlu2 %589 }
  0xb1   :  { %3115 = vmatmul.msk.bf16.vlgmr.msra.gmra.mxu2 %vm89_vm0, %v733_v29 }
  0xb3   :  { %v4008_v45 = vpop.f32.mrf.mxu2 }
  0xb7   :  { %2953 = vmatmul.msk.bf16.gmra.mxu1 %vm89_vm0, %v56_v40  ;;  %v263_v40 = vpop.f32.mrf.mxu3 }
  0xbb   :  { %v4025_v54 = vpop.f32.mrf.mxu2 }
  0xbf   :  { %3013 = vmatmul.msk.bf16.vlgmr.msrb.gmra.mxu0 %vm89_vm0, %v289_v53 }
  0xc1   :  { %3116 = vmatmul.msk.bf16.gmra.mxu2 %vm89_vm0, %v735_v48 }
  0xc3   :  { %v4030_v55 = vpop.f32.mrf.mxu2 }
  0xc7   :  { %2954 = vmatmul.msk.bf16.gmra.mxu1 %vm89_vm0, %v3870_v58  ;;  %v3546_v58 = vld [vmem:[%s5234_s1 + $0xd4] sm:$0xf] }
  0xc8   :  { %v3072_v63 = vor.u32 %v3546_v58, %v3069_v62  ;;  %v4166_v58 = vpop.permute.xlu2 %595 }
  0xca   :  { %681 = vmatpush.bf16.msrb.mxu1 %v3072_v63 }
  0xcb   :  { %v4036_v57 = vpop.f32.mrf.mxu2 }
  0xce   :  { %682 = vmatpush.bf16.msrb.mxu1 %v3064_v36  ;;  %v3559_v36 = vld [vmem:[%s5234_s1 + $0x134] sm:$0xf0] }
  0xcf   :  { %3014 = vmatmul.msk.bf16.gmra.mxu0 %vm89_vm0, %v291_v56 }
  0xd0   :  { %v737_v13 = vpop.permute.xlu2 %736 }
  0xd1   :  { %3117 = vmatmul.msk.bf16.gmra.mxu2 %vm89_vm0, %v737_v13 }
  0xd3   :  { %v245_v0 = vpop.f32.mrf.mxu2 }
  0xd7   :  { %3018 = vmatmul.msk.bf16.vlgmr.msra.gmra.mxu1 %vm89_vm0, %v289_v53  ;;  %v265_v53 = vpop.f32.mrf.mxu3 }
  0xd8   :  { %974 = vmatpush.bf16.msra.mxu1 %v3148_v12 }
  0xdb   :  { %v247_v7 = vpop.f32.mrf.mxu2 }
  0xdc   :  { %v3561_v7 = vld [vmem:[%s5234_s1 + $0x144] sm:$0xf0] }
  0xdf   :  { %3015 = vmatmul.msk.bf16.gmra.mxu0 %vm89_vm0, %v293_v52 }
  0xe1   :  { %3118 = vmatmul.msk.bf16.gmra.mxu2 %vm89_vm0, %v739_v28 }
  0xe3   :  { %v501_v35 = vpop.f32.mrf.mxu2 }
  0xe7   :  { %3019 = vmatmul.msk.bf16.gmra.mxu1 %vm89_vm0, %v291_v56  ;;  %v3550_v56 = vld [vmem:[%s5234_s1 + $0xf4] sm:$0xf] }
  0xe8   :  { %v3098_v60 = vor.u32 %v3550_v56, %v3095_v59 }
  0xea   :  { %827 = vmatpush.bf16.msra.mxu3 %v3098_v60 }
  0xeb   :  { %v503_v49 = vpop.f32.mrf.mxu2 }
  0xed   :  { %3120 = vmatmul.msk.bf16.vlgmr.msra.gmra.mxu3 %vm89_vm0, %v733_v29 }
  0xef   :  { %3016 = vmatmul.msk.bf16.gmra.mxu0 %vm89_vm0, %v295_v30 }
  0xf3   :  { %v4258_v2 = vpop.f32.mrf.mxu2 }
  0xf4   :  { %v134_v38 = vpop.f32.mrf.mxu1 }
  0xf5   :  { %v4138_v39 = vadd.f32 %v245_v0, %v134_v38  ;;  %v268_v0 = vpop.f32.mrf.mxu3  ;;  %v3558_v38 = vld [vmem:[%s5234_s1 + $0x134] sm:$0xf] }
  0xf6   :  { %v3140_v43 = vor.u32 %v3558_v38, %v3137_v42  ;;  %v3556_v42 = vld [vmem:[%s5234_s1 + $0x124] sm:$0xf] }
  0xf7   :  { %3020 = vmatmul.msk.bf16.gmra.mxu1 %vm89_vm0, %v293_v52  ;;  %v3143_v52 = vld [vmem:[%s5234_s1 + $0x140] sm:$0xf] }
  0xf8   :  { %v3144_v9 = vor.u32 %v3561_v7, %v3143_v52  ;;  %975 = vmatpush.bf16.msra.mxu1 %v3140_v43  ;;  %v3169_v52 = vld [vmem:[%s5234_s1 + $0x160] sm:$0xf]  ;;  %v3565_v7 = vld [vmem:[%s5234_s1 + $0x164] sm:$0xf0]  ;;  %v3129_v43 = vld [vmem:[%s5234_s1 + $0x128] sm:$0xf0] }
  0xf9   :  { %v3170_v8 = vor.u32 %v3565_v7, %v3169_v52  ;;  %v3566_v52 = vld [vmem:[%s5234_s1 + $0x174] sm:$0xf] }
  0xfa   :  { %941 = vmatpush.bf16.msrb.mxu0 %v3144_v9 }
  0xfc   :  { %v4155_v50 = vpop.f32.mrf.mxu0  ;;  %v136_v51 = vpop.f32.mrf.mxu1 }
  0xfd   :  { %3121 = vmatmul.msk.bf16.gmra.mxu3 %vm89_vm0, %v735_v48  ;;  %v741_v51 = vpop.permute.xlu1 %740 }
  0xfe   :  { %3119 = vmatmul.msk.bf16.gmra.mxu2 %vm89_vm0, %v741_v51 }
  0xff   :  { %3017 = vmatmul.msk.bf16.gmra.mxu0 %vm89_vm0, %v4064_v6 }
 0x104   :  { %v4169_v61 = vpop.f32.mrf.mxu0  ;;  %v147_v62 = vpop.f32.mrf.mxu1 }
 0x105   :  { %v4171_v63 = vadd.f32 %v258_v18, %v147_v62  ;;  %v270_v18 = vpop.f32.mrf.mxu3  ;;  %v3177_v62 = vld [vmem:[%s5234_s1 + $0x170] sm:$0xf] }
 0x107   :  { %3021 = vmatmul.msk.bf16.gmra.mxu1 %vm89_vm0, %v295_v30 }
 0x10c   :  { %v4193_v14 = vpop.f32.mrf.mxu0  ;;  %v149_v15 = vpop.f32.mrf.mxu1 }
 0x10d   :  { %v4196_v17 = vadd.f32 %v260_v33, %v149_v15  ;;  %v273_v26 = vpop.f32.mrf.mxu3  ;;  %3122 = vmatmul.msk.bf16.gmra.mxu3 %vm89_vm0, %v737_v13  ;;  %v3161_v13 = vld [vmem:[%s5234_s1 + $0x150] sm:$0xf]  ;;  %v3563_v15 = vld [vmem:[%s5234_s1 + $0x154] sm:$0xf0] }
 0x10e   :  { %v3162_v21 = vor.u32 %v3563_v15, %v3161_v13  ;;  %v231_v15 = vadd.f32 %v3969_v32, %v4193_v14  ;;  %v4349_v32 = vpop.permute.xlu0 %1176 }
 0x10f   :  { %3081 = vmatmul.msk.bf16.vlgmr.msra.gmra.mxu0 %vm89_vm0, %v4124_v27 }
 0x114   :  { %v4213_v3 = vpop.f32.mrf.mxu0  ;;  %v152_v25 = vpop.f32.mrf.mxu1 }
 0x115   :  { %v4215_v22 = vadd.f32 %v263_v40, %v152_v25  ;;  %v275_v34 = vpop.f32.mrf.mxu3  ;;  %v3127_v25 = vld [vmem:[%s5234_s1 + $0x120] sm:$0xf]  ;;  %v233_v14 = vadd.f32 %v3995_v41, %v4213_v3  ;;  %v3572_v3 = vld [vmem:[%s5234_s1 + $0x1a4] sm:$0xf] }
 0x116   :  { %v3211_v41 = vld [vmem:[%s5234_s1 + $0x1a0] sm:$0xf] }
 0x117   :  { %3022 = vmatmul.msk.bf16.gmra.mxu1 %vm89_vm0, %v4064_v6  ;;  %v3135_v6 = vld [vmem:[%s5234_s1 + $0x130] sm:$0xf] }
 0x118   :  { %v3136_v40 = vor.u32 %v3559_v36, %v3135_v6  ;;  %v226_v6 = vadd.f32 %v3941_v20, %v4155_v50 }
 0x11a   :  { %942 = vmatpush.bf16.msrb.mxu0 %v3136_v40 }
 0x11c   :  { %v4221_v29 = vpop.f32.mrf.mxu0  ;;  %v154_v30 = vpop.f32.mrf.mxu1 }
 0x11d   :  { %v4224_v33 = vadd.f32 %v265_v53, %v154_v30  ;;  %v278_v48 = vpop.f32.mrf.mxu3  ;;  %3123 = vmatmul.msk.bf16.gmra.mxu3 %vm89_vm0, %v739_v28  ;;  %v1032_v28 = vpop.permute.xlu2 %1031 }
 0x11f   :  { %3082 = vmatmul.msk.bf16.gmra.mxu0 %vm89_vm0, %v4147_v46 }
 0x124   :  { %v4241_v44 = vpop.f32.mrf.mxu0  ;;  %v157_v37 = vpop.f32.mrf.mxu1 }
 0x125   :  { %v4243_v47 = vadd.f32 %v268_v0, %v157_v37  ;;  %v280_v60 = vpop.f32.mrf.mxu3  ;;  %v3567_v0 = vld [vmem:[%s5234_s1 + $0x174] sm:$0xf0]  ;;  %v3132_v37 = vor.u32 %v3556_v42, %v3129_v43 }
 0x127   :  { %3086 = vmatmul.msk.bf16.vlgmr.msrb.gmra.mxu1 %vm89_vm0, %v4124_v27  ;;  %v3178_v27 = vor.u32 %v3567_v0, %v3177_v62 }
 0x128   :  { %976 = vmatpush.bf16.msra.mxu1 %v3132_v37 }
 0x129   :  { %1091 = vmatpush.bf16.msrb.mxu2 %v3178_v27 }
 0x12c   :  { %v4247_v53 = vpop.f32.mrf.mxu0  ;;  %v159_v56 = vpop.f32.mrf.mxu1 }
 0x12d   :  { %v4250_v59 = vadd.f32 %v270_v18, %v159_v56  ;;  %1092 = vmatpush.bf16.msrb.mxu2 %v3170_v8  ;;  %v4279_v18 = vpop.f32.mrf.mxu2  ;;  %v4281_v19 = vpop.f32.mrf.mxu3  ;;  %3124 = vmatmul.msk.bf16.gmra.mxu3 %vm89_vm0, %v741_v51  ;;  %v3171_v51 = vld [vmem:[%s5234_s1 + $0x168] sm:$0xf0] }
 0x12f   :  { %3083 = vmatmul.msk.bf16.gmra.mxu0 %vm89_vm0, %v4093_v16 }
 0x131   :  { %1093 = vmatpush.bf16.msrb.mxu2 %v3162_v21 }
 0x134   :  { %v4269_v9 = vpop.f32.mrf.mxu0  ;;  %v162_v10 = vpop.f32.mrf.mxu1  ;;  %3183 = vmatmul.msk.bf16.vlgmr.msrb.gmra.mxu2 %vm89_vm0, %v1032_v28 }
 0x135   :  { %v4271_v12 = vadd.f32 %v273_v26, %v162_v10  ;;  %v3557_v26 = vld [vmem:[%s5234_s1 + $0x124] sm:$0xf0]  ;;  %v4302_v56 = vpop.f32.mrf.mxu2  ;;  %v4304_v20 = vpop.f32.mrf.mxu3 }
 0x136   :  { %v3128_v30 = vor.u32 %v3557_v26, %v3127_v25  ;;  %v1034_v10 = vpop.permute.xlu1 %1033  ;;  %v3562_v25 = vld [vmem:[%s5234_s1 + $0x154] sm:$0xf]  ;;  %v3163_v26 = vld [vmem:[%s5234_s1 + $0x158] sm:$0xf0] }
 0x137   :  { %3087 = vmatmul.msk.bf16.gmra.mxu1 %vm89_vm0, %v4147_v46 }
 0x138   :  { %943 = vmatpush.bf16.msrb.mxu0 %v3128_v30 }
 0x13c   :  { %v164_v36 = vpop.f32.mrf.mxu1  ;;  %v352_v38 = vpop.f32.mrf.mxu0 }
 0x13d   :  { %v4294_v46 = vadd.f32 %v275_v34, %v164_v36  ;;  %v409_v40 = vadd.f32 %v352_v38, %v226_v6  ;;  %v228_v34 = vadd.f32 %v3964_v31, %v4169_v61  ;;  %v4321_v7 = vpop.f32.mrf.mxu2  ;;  %v4323_v8 = vpop.f32.mrf.mxu3  ;;  %v3166_v36 = vor.u32 %v3562_v25, %v3163_v26 }
 0x13f   :  { %v4306_v50 = vadd.f32 %v501_v35, %v409_v40  ;;  %3084 = vmatmul.msk.bf16.gmra.mxu0 %vm89_vm0, %v4134_v1  ;;  %v3179_v35 = vld [vmem:[%s5234_s1 + $0x178] sm:$0xf0] }
 0x140   :  { %v3182_v31 = vor.u32 %v3566_v52, %v3179_v35 }
 0x142   :  { %1124 = vmatpush.bf16.msrb.mxu3 %v3182_v31 }
 0x144   :  { %v167_v60 = vpop.f32.mrf.mxu1  ;;  %v354_v62 = vpop.f32.mrf.mxu0  ;;  %3184 = vmatmul.msk.bf16.gmra.mxu2 %vm89_vm0, %v1034_v10 }
 0x145   :  { %v4313_v0 = vadd.f32 %v278_v48, %v167_v60  ;;  %v411_v27 = vadd.f32 %v354_v62, %v228_v34  ;;  %v3564_v48 = vld [vmem:[%s5234_s1 + $0x164] sm:$0xf]  ;;  %v516_v30 = vpop.f32.mrf.mxu2  ;;  %v541_v6 = vpop.f32.mrf.mxu3 }
 0x146   :  { %v3174_v13 = vor.u32 %v3564_v48, %v3171_v51 }
 0x147   :  { %v4325_v61 = vadd.f32 %v503_v49, %v411_v27  ;;  %3088 = vmatmul.msk.bf16.gmra.mxu1 %vm89_vm0, %v4093_v16  ;;  %v236_v27 = vadd.f32 %v4008_v45, %v4221_v29  ;;  %v4391_v45 = vpop.permute.xlu2 %1178  ;;  %v238_v29 = vadd.f32 %v4025_v54, %v4241_v44  ;;  %v241_v54 = vadd.f32 %v4030_v55, %v4247_v53  ;;  %v3203_v55 = vld [vmem:[%s5234_s1 + $0x190] sm:$0xf]  ;;  %v3571_v53 = vld [vmem:[%s5234_s1 + $0x194] sm:$0xf0] }
 0x148   :  { %1125 = vmatpush.bf16.msrb.mxu3 %v3174_v13 }
 0x14c   :  { %v169_v21 = vpop.f32.mrf.mxu1  ;;  %v357_v49 = vpop.f32.mrf.mxu0  ;;  %1126 = vmatpush.bf16.msrb.mxu3 %v3166_v36 }
 0x14d   :  { %v413_v16 = vadd.f32 %v357_v49, %v231_v15  ;;  %v4355_v34 = vpop.f32.mrf.mxu2 }
 0x14f   :  { %v4345_v38 = vadd.f32 %v4258_v2, %v413_v16  ;;  %3085 = vmatmul.msk.bf16.gmra.mxu0 %vm89_vm0, %v4166_v58  ;;  %3188 = vmatmul.msk.bf16.vlgmr.msrb.gmra.mxu3 %vm89_vm0, %v1032_v28  ;;  %v4357_v2 = vpop.f32.mrf.mxu3 }
 0x154   :  { %v359_v40 = vpop.f32.mrf.mxu0  ;;  %v385_v42 = vpop.f32.mrf.mxu1 }
 0x155   :  { %v415_v43 = vadd.f32 %v359_v40, %v233_v14  ;;  %v410_v37 = vadd.f32 %v385_v42, %v4171_v63  ;;  %v3573_v63 = vld [vmem:[%s5234_s1 + $0x1a4] sm:$0xf0]  ;;  %v521_v51 = vpop.f32.mrf.mxu2  ;;  %v1038_v14 = vpop.permute.xlu2 %1037 }
 0x157   :  { %v4360_v60 = vadd.f32 %v4279_v18, %v415_v43  ;;  %v4363_v62 = vadd.f32 %v4281_v19, %v410_v37  ;;  %3089 = vmatmul.msk.bf16.gmra.mxu1 %vm89_vm0, %v4134_v1  ;;  %v3212_v18 = vor.u32 %v3573_v63, %v3211_v41  ;;  %v3213_v19 = vld [vmem:[%s5234_s1 + $0x1a8] sm:$0xf0]  ;;  %v1036_v1 = vpop.permute.xlu0 %1035  ;;  %v546_v13 = vpop.f32.mrf.mxu3  ;;  %v3205_v43 = vld [vmem:[%s5234_s1 + $0x198] sm:$0xf0]  ;;  %v243_v41 = vadd.f32 %v4036_v57, %v4269_v9 }
 0x158   :  { %v3216_v28 = vor.u32 %v3572_v3, %v3213_v19  ;;  %3185 = vmatmul.msk.bf16.gmra.mxu2 %vm89_vm0, %v1036_v1 }
 0x159   :  { %1236 = vmatpush.bf16.msra.mxu0 %v3212_v18 }
 0x15a   :  { %1269 = vmatpush.bf16.msrb.mxu1 %v3216_v28 }
 0x15c   :  { %v362_v52 = vpop.f32.mrf.mxu0  ;;  %v387_v35 = vpop.f32.mrf.mxu1 }
 0x15d   :  { %v417_v31 = vadd.f32 %v362_v52, %v236_v27  ;;  %v412_v48 = vadd.f32 %v387_v35, %v4196_v17 }
 0x15f   :  { %v4384_v15 = vadd.f32 %v4302_v56, %v417_v31  ;;  %v4387_v21 = vadd.f32 %v4304_v20, %v412_v48  ;;  %3149 = vmatmul.msk.bf16.vlgmr.msrb.gmra.mxu0 %vm89_vm0, %v4077_v11  ;;  %3189 = vmatmul.msk.bf16.gmra.mxu3 %vm89_vm0, %v1034_v10  ;;  %v523_v56 = vpop.f32.mrf.mxu2  ;;  %v549_v26 = vpop.f32.mrf.mxu3 }
 0x164   :  { %v364_v49 = vpop.f32.mrf.mxu0  ;;  %v390_v17 = vpop.f32.mrf.mxu1 }
 0x165   :  { %v419_v16 = vadd.f32 %v364_v49, %v238_v29  ;;  %v414_v25 = vadd.f32 %v390_v17, %v4215_v22 }
 0x167   :  { %v4398_v20 = vadd.f32 %v4321_v7, %v419_v16  ;;  %v4401_v36 = vadd.f32 %v4323_v8, %v414_v25  ;;  %3090 = vmatmul.msk.bf16.gmra.mxu1 %vm89_vm0, %v4166_v58  ;;  %v4409_v42 = vpop.f32.mrf.mxu3  ;;  %v796_v58 = vpop.f32.mrf.mxu2 }
 0x168   :  { %3186 = vmatmul.msk.bf16.gmra.mxu2 %vm89_vm0, %v1038_v14 }
 0x16c   :  { %v367_v44 = vpop.f32.mrf.mxu0  ;;  %v392_v10 = vpop.f32.mrf.mxu1 }
 0x16d   :  { %v421_v22 = vadd.f32 %v367_v44, %v241_v54  ;;  %v416_v40 = vadd.f32 %v392_v10, %v4224_v33  ;;  %v3570_v33 = vld [vmem:[%s5234_s1 + $0x194] sm:$0xf]  ;;  %v3197_v54 = vld [vmem:[%s5234_s1 + $0x188] sm:$0xf0] }
 0x16e   :  { %v3208_v37 = vor.u32 %v3570_v33, %v3205_v43 }
 0x16f   :  { %v4411_v7 = vadd.f32 %v516_v30, %v421_v22  ;;  %v4413_v8 = vadd.f32 %v541_v6, %v416_v40  ;;  %3150 = vmatmul.msk.bf16.gmra.mxu0 %vm89_vm0, %v4059_v5  ;;  %v4426_v30 = vpop.permute.xlu1 %1180  ;;  %v3204_v6 = vor.u32 %v3571_v53, %v3203_v55  ;;  %3190 = vmatmul.msk.bf16.gmra.mxu3 %vm89_vm0, %v1036_v1  ;;  %v554_v28 = vpop.f32.mrf.mxu3 }
 0x170   :  { %1270 = vmatpush.bf16.msrb.mxu1 %v3208_v37  ;;  %v4442_v52 = vpop.f32.mrf.mxu2 }
 0x171   :  { %1237 = vmatpush.bf16.msra.mxu0 %v3204_v6 }
 0x174   :  { %v369_v63 = vpop.f32.mrf.mxu0  ;;  %v395_v3 = vpop.f32.mrf.mxu1 }
 0x175   :  { %v4434_v18 = vadd.f32 %v369_v63, %v243_v41  ;;  %v418_v19 = vadd.f32 %v395_v3, %v4243_v47 }
 0x177   :  { %v4438_v27 = vadd.f32 %v4357_v2, %v418_v19  ;;  %3154 = vmatmul.msk.bf16.vlgmr.msra.gmra.mxu1 %vm89_vm0, %v4077_v11  ;;  %v1040_v35 = vpop.permute.xlu1 %1039  ;;  %v556_v48 = vpop.f32.mrf.mxu3 }
 0x178   :  { %3187 = vmatmul.msk.bf16.gmra.mxu2 %vm89_vm0, %v1040_v35  ;;  %v801_v11 = vpop.f32.mrf.mxu2 }
 0x17c   :  { %v372_v57 = vpop.f32.mrf.mxu0  ;;  %v397_v9 = vpop.f32.mrf.mxu1 }
 0x17d   :  { %v425_v1 = vadd.f32 %v372_v57, %v4138_v39  ;;  %v420_v31 = vadd.f32 %v397_v9, %v4250_v59  ;;  %v3195_v59 = vld [vmem:[%s5234_s1 + $0x180] sm:$0xf] }
 0x17f   :  { %v4447_v47 = vadd.f32 %v521_v51, %v425_v1  ;;  %v4449_v29 = vadd.f32 %v546_v13, %v420_v31  ;;  %3151 = vmatmul.msk.bf16.gmra.mxu0 %vm89_vm0, %v4106_v24  ;;  %3191 = vmatmul.msk.bf16.gmra.mxu3 %vm89_vm0, %v1038_v14  ;;  %v829_v16 = vpop.f32.mrf.mxu3  ;;  %v3569_v51 = vld [vmem:[%s5234_s1 + $0x184] sm:$0xf0] }
 0x180   :  { %v4459_v39 = vpop.f32.mrf.mxu2  ;;  %v3196_v13 = vor.u32 %v3569_v51, %v3195_v59 }
 0x182   :  { %1238 = vmatpush.bf16.msra.mxu0 %v3196_v13 }
 0x184   :  { %v374_v2 = vpop.f32.mrf.mxu0  ;;  %v400_v49 = vpop.f32.mrf.mxu1 }
 0x185   :  { %v422_v17 = vadd.f32 %v400_v49, %v4271_v12 }
 0x187   :  { %v4455_v25 = vadd.f32 %v549_v26, %v422_v17  ;;  %3155 = vmatmul.msk.bf16.gmra.mxu1 %vm89_vm0, %v4059_v5  ;;  %v3568_v5 = vld [vmem:[%s5234_s1 + $0x184] sm:$0xf]  ;;  %v4477_v10 = vpop.f32.mrf.mxu3 }
 0x188   :  { %v3200_v44 = vor.u32 %v3568_v5, %v3197_v54 }
 0x18a   :  { %1271 = vmatpush.bf16.msrb.mxu1 %v3200_v44 }
 0x18c   :  { %v402_v56 = vpop.f32.mrf.mxu1  ;;  %v651_v14 = vpop.f32.mrf.mxu0 }
 0x18d   :  { %v4468_v12 = vadd.f32 %v402_v56, %v4294_v46  ;;  %v708_v26 = vadd.f32 %v651_v14, %v4306_v50  ;;  %v806_v46 = vpop.f32.mrf.mxu2 }
 0x18f   :  { %v4479_v22 = vadd.f32 %v796_v58, %v708_v26  ;;  %3152 = vmatmul.msk.bf16.gmra.mxu0 %vm89_vm0, %v4204_v23  ;;  %3192 = vmatmul.msk.bf16.gmra.mxu3 %vm89_vm0, %v1040_v35  ;;  %v834_v33 = vpop.f32.mrf.mxu3 }
 0x194   :  { %v405_v50 = vpop.f32.mrf.mxu1  ;;  %v653_v40 = vpop.f32.mrf.mxu0 }
 0x195   :  { %v426_v55 = vadd.f32 %v405_v50, %v4313_v0  ;;  %v4486_v53 = vadd.f32 %v653_v40, %v4325_v61  ;;  %v4492_v58 = vpop.f32.mrf.mxu2 }
 0x197   :  { %v4488_v6 = vadd.f32 %v554_v28, %v426_v55  ;;  %3156 = vmatmul.msk.bf16.gmra.mxu1 %vm89_vm0, %v4106_v24  ;;  %v4495_v63 = vpop.f32.mrf.mxu3 }
 0x19c   :  { %v407_v43 = vpop.f32.mrf.mxu1  ;;  %v656_v37 = vpop.f32.mrf.mxu0 }
 0x19d   :  { %v712_v41 = vadd.f32 %v656_v37, %v4345_v38  ;;  %v811_v0 = vpop.f32.mrf.mxu2 }
 0x19f   :  { %v4497_v3 = vadd.f32 %v801_v11, %v712_v41  ;;  %3153 = vmatmul.msk.bf16.gmra.mxu0 %vm89_vm0, %v4176_v4  ;;  %v839_v35 = vpop.f32.mrf.mxu3 }
 0x1a4   :  { %v658_v61 = vpop.f32.mrf.mxu0  ;;  %v684_v19 = vpop.f32.mrf.mxu1 }
 0x1a5   :  { %v4502_v28 = vadd.f32 %v658_v61, %v4360_v60  ;;  %v709_v24 = vadd.f32 %v684_v19, %v4363_v62  ;;  %v4509_v38 = vpop.f32.mrf.mxu2 }
 0x1a7   :  { %v4505_v57 = vadd.f32 %v829_v16, %v709_v24  ;;  %3157 = vmatmul.msk.bf16.gmra.mxu1 %vm89_vm0, %v4204_v23  ;;  %v4515_v11 = vpop.f32.mrf.mxu3 }
 0x1ac   :  { %v661_v9 = vpop.f32.mrf.mxu0  ;;  %v686_v1 = vpop.f32.mrf.mxu1 }
 0x1ad   :  { %v716_v31 = vadd.f32 %v661_v9, %v4384_v15  ;;  %v4513_v48 = vadd.f32 %v686_v1, %v4387_v21  ;;  %v816_v62 = vpop.f32.mrf.mxu2 }
 0x1af   :  { %v4517_v60 = vadd.f32 %v806_v46, %v716_v31  ;;  %3217 = vmatmul.msk.bf16.vlgmr.msra.gmra.mxu0 %vm89_vm0, %v4349_v32  ;;  %v844_v16 = vpop.f32.mrf.mxu3 }
 0x1b4   :  { %v663_v2 = vpop.f32.mrf.mxu0  ;;  %v689_v49 = vpop.f32.mrf.mxu1 }
 0x1b5   :  { %v4522_v23 = vadd.f32 %v663_v2, %v4398_v20  ;;  %v713_v17 = vadd.f32 %v689_v49, %v4401_v36  ;;  %v818_v21 = vpop.f32.mrf.mxu2  ;;  %v1185_v49 = vpop.permute.xlu2 %1184 }
 0x1b7   :  { %v4525_v15 = vadd.f32 %v834_v33, %v713_v17  ;;  %3158 = vmatmul.msk.bf16.gmra.mxu1 %vm89_vm0, %v4176_v4  ;;  %v4533_v14 = vpop.f32.mrf.mxu3 }
 0x1bc   :  { %v666_v59 = vpop.f32.mrf.mxu0  ;;  %v691_v51 = vpop.f32.mrf.mxu1 }
 0x1bd   :  { %v720_v13 = vadd.f32 %v666_v59, %v4411_v7  ;;  %v4531_v56 = vadd.f32 %v691_v51, %v4413_v8  ;;  %v1095_v36 = vpop.f32.mrf.mxu2 }
 0x1bf   :  { %v4535_v20 = vadd.f32 %v811_v0, %v720_v13  ;;  %3218 = vmatmul.msk.bf16.gmra.mxu0 %vm89_vm0, %v4391_v45  ;;  %v849_v54 = vpop.f32.mrf.mxu3 }
 0x1c4   :  { %v4539_v26 = vpop.f32.mrf.mxu0  ;;  %v694_v5 = vpop.f32.mrf.mxu1 }
 0x1c5   :  { %v717_v4 = vadd.f32 %v694_v5, %v4438_v27  ;;  %v4546_v7 = vpop.f32.mrf.mxu2 }
 0x1c7   :  { %v4542_v44 = vadd.f32 %v839_v35, %v717_v4  ;;  %3222 = vmatmul.msk.bf16.vlgmr.msrb.gmra.mxu1 %vm89_vm0, %v4349_v32  ;;  %v851_v55 = vpop.f32.mrf.mxu3 }
 0x1cc   :  { %v671_v8 = vpop.f32.mrf.mxu0  ;;  %v696_v46 = vpop.f32.mrf.mxu1 }
 0x1cd   :  { %v724_v50 = vadd.f32 %v671_v8, %v4447_v47  ;;  %v4550_v40 = vadd.f32 %v696_v46, %v4449_v29  ;;  %v1100_v27 = vpop.f32.mrf.mxu2  ;;  %v1183_v29 = vpop.permute.xlu0 %1182 }
 0x1cf   :  { %v4552_v33 = vadd.f32 %v816_v62, %v724_v50  ;;  %3219 = vmatmul.msk.bf16.gmra.mxu0 %vm89_vm0, %v4426_v30 }
 0x1d2   :  { %v1128_v41 = vpop.f32.mrf.mxu3 }
 0x1d4   :  { %v673_v43 = vpop.f32.mrf.mxu0  ;;  %v699_v37 = vpop.f32.mrf.mxu1 }
 0x1d5   :  { %v721_v32 = vadd.f32 %v699_v37, %v4455_v25  ;;  %v4561_v47 = vpop.f32.mrf.mxu2 }
 0x1d7   :  { %v4557_v0 = vadd.f32 %v844_v16, %v721_v32  ;;  %3223 = vmatmul.msk.bf16.gmra.mxu1 %vm89_vm0, %v4391_v45 }
 0x1da   :  { %v4566_v35 = vpop.f32.mrf.mxu3 }
 0x1dc   :  { %v4563_v61 = vpop.f32.mrf.mxu1  ;;  %v945_v19 = vpop.f32.mrf.mxu0 }
 0x1dd   :  { %v1002_v24 = vadd.f32 %v945_v19, %v4479_v22  ;;  %v4571_v25 = vpop.f32.mrf.mxu2 }
 0x1df   :  { %v4568_v9 = vadd.f32 %v1095_v36, %v1002_v24  ;;  %3220 = vmatmul.msk.bf16.gmra.mxu0 %vm89_vm0, %v1183_v29 }
 0x1e2   :  { %v1133_v62 = vpop.f32.mrf.mxu3 }
 0x1e4   :  { %v704_v1 = vpop.f32.mrf.mxu1  ;;  %v4573_v31 = vpop.f32.mrf.mxu0 }
 0x1e5   :  { %v725_v45 = vadd.f32 %v704_v1, %v4488_v6  ;;  %v4580_v22 = vpop.f32.mrf.mxu2 }
 0x1e7   :  { %v4576_v2 = vadd.f32 %v849_v54, %v725_v45  ;;  %3224 = vmatmul.msk.bf16.gmra.mxu1 %vm89_vm0, %v4426_v30 }
 0x1ea   :  { %v4583_v59 = vpop.f32.mrf.mxu3 }
 0x1ec   :  { %v706_v17 = vpop.f32.mrf.mxu1  ;;  %v950_v16 = vpop.f32.mrf.mxu0 }
 0x1ed   :  { %v1006_v21 = vadd.f32 %v950_v16, %v4497_v3  ;;  %v1110_v6 = vpop.f32.mrf.mxu2 }
 0x1ef   :  { %v4585_v51 = vadd.f32 %v1100_v27, %v1006_v21  ;;  %3221 = vmatmul.msk.bf16.gmra.mxu0 %vm89_vm0, %v1185_v49 }
 0x1f2   :  { %v4591_v30 = vpop.f32.mrf.mxu3 }
 0x1f4   :  { %v4588_v13 = vpop.f32.mrf.mxu0  ;;  %v978_v36 = vpop.f32.mrf.mxu1 }
 0x1f5   :  { %v1003_v5 = vadd.f32 %v978_v36, %v4505_v57  ;;  %v1112_v54 = vpop.f32.mrf.mxu2 }
 0x1f7   :  { %v4593_v4 = vadd.f32 %v1128_v41, %v1003_v5  ;;  %3225 = vmatmul.msk.bf16.gmra.mxu1 %vm89_vm0, %v1183_v29 }
 0x1fa   :  { %v1140_v50 = vpop.f32.mrf.mxu3 }
 0x1fc   :  { %v955_v3 = vpop.f32.mrf.mxu0  ;;  %v980_v8 = vpop.f32.mrf.mxu1 }
 0x1fd   :  { %v4597_v46 = vadd.f32 %v955_v3, %v4517_v60  ;;  %v1115_v55 = vpop.f32.mrf.mxu2  ;;  %v572_v60 = vadd.f32 %v4355_v34, %v4434_v18  ;;  %v864_v34 = vadd.f32 %v4515_v11, %v4550_v40 }
 0x1ff   :  { %v722_v45 = vadd.f32 %v4539_v26, %v572_v60 }
 0x202   :  { %v1143_v57 = vpop.f32.mrf.mxu3 }
 0x204   :  { %v4599_v27 = vpop.f32.mrf.mxu0  ;;  %v983_v43 = vpop.f32.mrf.mxu1 }
 0x205   :  { %v1007_v37 = vadd.f32 %v983_v43, %v4525_v15  ;;  %v1117_v41 = vpop.f32.mrf.mxu2  ;;  %v867_v15 = vadd.f32 %v4509_v38, %v722_v45 }
 0x207   :  { %v4602_v32 = vadd.f32 %v1133_v62, %v1007_v37  ;;  %3226 = vmatmul.msk.bf16.gmra.mxu1 %vm89_vm0, %v1185_v49  ;;  %vm1440_vm0 = vcmask 1046656  }
 0x20a   :  { %v1145_v1 = vpop.f32.mrf.mxu3 }
 0x20c   :  { %v960_v29 = vpop.f32.mrf.mxu0  ;;  %v4605_v19 = vpop.f32.mrf.mxu1 }
 0x20d   :  { %v1014_v24 = vadd.f32 %v960_v29, %v4535_v20 }
 0x20f   :  { %v4611_v17 = vadd.f32 %v1110_v6, %v1014_v24 }
 0x212   :  { %v1148_v36 = vpop.f32.mrf.mxu3 }
 0x214   :  { %v962_v62 = vpop.f32.mrf.mxu0  ;;  %v988_v16 = vpop.f32.mrf.mxu1 }
 0x215   :  { %v1016_v21 = vadd.f32 %v962_v62, %v867_v15  ;;  %v4615_v49 = vadd.f32 %v988_v16, %v4542_v44  ;;  %v573_v44 = vadd.f32 %v4409_v42, %v4468_v12  ;;  %v1315_v42 = vld [vmem:[%s5234_s1 + $0x1b0] sm:$0x11]  ;;  %s3678_s1 = smov 16  }
 0x217   :  { %v4617_v5 = vadd.f32 %v1112_v54, %v1016_v21  ;;  %v723_v29 = vadd.f32 %v4563_v61, %v573_v44  ;;  %v1316_v61 = vunpack.c.l.bf16 %v1315_v42 }
 0x219   :  { %v868_v40 = vadd.f32 %v4533_v14, %v723_v29  ;;  %v855_v14 = vadd.f32 %v4442_v52, %v4486_v53  ;;  %v4644_v16 = vperm.slane %v1316_v61, 0 }
 0x21a   :  { %v1150_v3 = vpop.f32.mrf.mxu3 }
 0x21c   :  { %v965_v18 = vpop.f32.mrf.mxu0  ;;  %v990_v20 = vpop.f32.mrf.mxu1 }
 0x21d   :  { %v1018_v26 = vadd.f32 %v965_v18, %v4552_v33  ;;  %v1013_v6 = vadd.f32 %v990_v20, %v864_v34  ;;  %v856_v34 = vadd.f32 %v4477_v10, %v4513_v48  ;;  %v1004_v18 = vadd.f32 %v4573_v31, %v855_v14 }
 0x21e   :  { %v1161_v14 = vadd.f32 %v4591_v30, %v4615_v49 }
 0x21f   :  { %v4622_v43 = vadd.f32 %v1115_v55, %v1018_v26  ;;  %v4624_v38 = vadd.f32 %v1140_v50, %v1013_v6  ;;  %v1005_v26 = vadd.f32 %v980_v8, %v856_v34  ;;  %v1154_v53 = vadd.f32 %v4546_v7, %v1004_v18 }
 0x221   :  { %v1155_v3 = vadd.f32 %v4566_v35, %v1005_v26  ;;  %v860_v35 = vadd.f32 %v4495_v63, %v4531_v56 }
 0x224   :  { %v967_v37 = vpop.f32.mrf.mxu0  ;;  %v993_v41 = vpop.f32.mrf.mxu1 }
 0x225   :  { %v1015_v54 = vadd.f32 %v993_v41, %v4557_v0 }
 0x227   :  { %v4630_v11 = vadd.f32 %v1143_v57, %v1015_v54  ;;  %v1317_v57 = vunpack.c.h.bf16 %v1315_v42 }
 0x229   :  { %v4646_v21 = vperm.slane %v1317_v57, 0 }
 0x22c   :  { %v995_v33 = vpop.f32.mrf.mxu1  ;;  %v1240_v60 = vpop.f32.mrf.mxu0 }
 0x22d   :  { %v1017_v24 = vadd.f32 %v995_v33, %v868_v40 }
 0x22f   :  { %v4633_v55 = vadd.f32 %v1145_v1, %v1017_v24  ;;  %v1297_v1 = vadd.f32 %v1240_v60, %v4568_v9  ;;  %v1009_v60 = vadd.f32 %v4605_v19, %v860_v35 }
 0x231   :  { %v1320_v6 = vadd.f32 %v4644_v16, %v1297_v1 }
 0x234   :  { %v998_v50 = vpop.f32.mrf.mxu1  ;;  %v1242_v45 = vpop.f32.mrf.mxu0 }
 0x235   :  { %v1019_v15 = vadd.f32 %v998_v50, %v4576_v2  ;;  %v1299_v37 = vadd.f32 %v1242_v45, %v1154_v53 }
 0x237   :  { %v4636_v62 = vadd.f32 %v1148_v36, %v1019_v15  ;;  %v1322_v10 = vadd.f32 %v4644_v16, %v1299_v37  ;;  %v1159_v15 = vadd.f32 %v4583_v59, %v1009_v60  ;;  %v863_v59 = vadd.f32 %v4492_v58, %v4522_v23 }
 0x239   :  { %v1012_v34 = vadd.f32 %v4599_v27, %v863_v59 }
 0x23c   :  { %v1000_v12 = vpop.f32.mrf.mxu1  ;;  %v1245_v0 = vpop.f32.mrf.mxu0 }
 0x23d   :  { %v1301_v8 = vadd.f32 %v1245_v0, %v4585_v51 }
 0x23f   :  { %v1324_v24 = vadd.f32 %v4644_v16, %v1301_v8  ;;  %v3679_v8 = vmov 0.0  }
 0x240   :  { %1356 = vst [vmem:[#allocation3] sm:$0xff] %v3679_v8 }
 0x241   :  { %1358 = vst.msk [vmem:[#allocation3 + $0x8] sm:$0xff] %vm1357_vm1, %v3679_v8 }
 0x242   :  { %1359 = vst [vmem:[#allocation3 + $0x10] sm:$0xff] %v3679_v8 }
 0x243   :  { %1360 = vst.msk [vmem:[#allocation3 + $0x18] sm:$0xff] %vm1357_vm1, %v3679_v8 }
 0x244   :  { %v1247_v2 = vpop.f32.mrf.mxu0  ;;  %v1273_v36 = vpop.f32.mrf.mxu1  ;;  %1361 = vst [vmem:[#allocation3 + $0x20] sm:$0xff] %v3679_v8 }
 0x245   :  { %v1298_v20 = vadd.f32 %v1273_v36, %v4593_v4  ;;  %v859_v4 = vadd.f32 %v4459_v39, %v4502_v28  ;;  %1362 = vst.msk [vmem:[#allocation3 + $0x28] sm:$0xff] %vm1357_vm1, %v3679_v8 }
 0x246   :  { %1363 = vst [vmem:[#allocation3 + $0x30] sm:$0xff] %v3679_v8 }
 0x247   :  { %v1321_v52 = vadd.f32 %v4646_v21, %v1298_v20  ;;  %v1008_v40 = vadd.f32 %v4588_v13, %v859_v4  ;;  %1364 = vst.msk [vmem:[#allocation3 + $0x38] sm:$0xff] %vm1357_vm1, %v3679_v8 }
 0x248   :  { %1365 = vst [vmem:[#allocation3 + $0x40] sm:$0xff] %v3679_v8 }
 0x249   :  { %v1338_v9 = vmax.f32 %v1320_v6, %v1321_v52  ;;  %v1158_v39 = vadd.f32 %v4561_v47, %v1008_v40  ;;  %v1160_v47 = vadd.f32 %v4571_v25, %v4597_v46  ;;  %v1162_v46 = vadd.f32 %v4580_v22, %v1012_v34  ;;  %1366 = vst.msk [vmem:[#allocation3 + $0x48] sm:$0xff] %vm1357_vm1, %v3679_v8 }
 0x24a   :  { %1367 = vst [vmem:[#allocation3 + $0x50] sm:$0xff] %v3679_v8 }
 0x24b   :  { %1347 = vst [vmem:[#allocation2] sm:$0xff] %v1338_v9  ;;  %v1303_v42 = vadd.f32 %v1247_v2, %v1158_v39 }
 0x24c   :  { %v1250_v41 = vpop.f32.mrf.mxu0  ;;  %v1275_v44 = vpop.f32.mrf.mxu1  ;;  %1368 = vst.msk [vmem:[#allocation3 + $0x58] sm:$0xff] %vm1357_vm1, %v3679_v8 }
 0x24d   :  { %v1300_v54 = vadd.f32 %v1275_v44, %v1155_v3  ;;  %v1326_v19 = vadd.f32 %v4644_v16, %v1303_v42  ;;  %v1305_v1 = vadd.f32 %v1250_v41, %v1160_v47 }
 0x24f   :  { %v1323_v48 = vadd.f32 %v4646_v21, %v1300_v54  ;;  %v1328_v20 = vadd.f32 %v4644_v16, %v1305_v1 }
 0x251   :  { %v1339_v31 = vmax.f32 %v1322_v10, %v1323_v48 }
 0x253   :  { %1348 = vst [vmem:[#allocation2 + $0x8] sm:$0xff] %v1339_v31 }
 0x254   :  { %v1252_v7 = vpop.f32.mrf.mxu0  ;;  %v1278_v29 = vpop.f32.mrf.mxu1 }
 0x255   :  { %v1302_v33 = vadd.f32 %v1278_v29, %v4602_v32  ;;  %v1307_v6 = vadd.f32 %v1252_v7, %v1162_v46  ;;  %v3603_v46 = vld [vmem:[%s5235_s2 + $0xe8] sm:$0xff] }
 0x257   :  { %v1325_v50 = vadd.f32 %v4646_v21, %v1302_v33  ;;  %v1330_v52 = vadd.f32 %v4644_v16, %v1307_v6  ;;  %v3601_v6 = vld [vmem:[%s5235_s2 + $0xd8] sm:$0xff] }
 0x259   :  { %v1340_v28 = vmax.f32 %v1324_v24, %v1325_v50 }
 0x25a   :  { %v1369_v51 = vld [vmem:[#allocation2] ss:$2 sm:$0xff]  ;;  %v1371_v45 = vld [vmem:[#allocation2 + $0x1] ss:$2 sm:$0xff] }
 0x25b   :  { %1349 = vst [vmem:[#allocation2 + $0x10] sm:$0xff] %v1340_v28  ;;  %v1372_v63 = vmax.f32 %v1369_v51, %v1371_v45 }
 0x25c   :  { %v1255_v56 = vpop.f32.mrf.mxu0  ;;  %v1280_v13 = vpop.f32.mrf.mxu1 }
 0x25d   :  { %v1304_v12 = vadd.f32 %v1280_v13, %v1159_v15  ;;  %v1373_v32 = vmax.f32 %v1372_v63, 0.0  ;;  %v1309_v22 = vadd.f32 %v1255_v56, %v4611_v17  ;;  %v3579_v13 = vld [vmem:[%s5235_s2 + $0x28] sm:$0xff] }
 0x25f   :  { %v1327_v0 = vadd.f32 %v4646_v21, %v1304_v12  ;;  %v1375_v61 = vrot.slane %v1373_v32, 7  ;;  %v3578_v12 = vld [vmem:[%s5235_s2 + $0x20] sm:$0xff]  ;;  %v3577_v32 = vld [vmem:[%s5235_s2 + $0x18] sm:$0xff] }
 0x261   :  { %v1341_v57 = vmax.f32 %v1326_v19, %v1327_v0  ;;  %1376 = vrot.lane.b32.xlu0 %v1375_v61, %s3678_s1  ;;  %v3576_v19 = vld [vmem:[%s5235_s2 + $0x10] sm:$0xff]  ;;  %v3575_v0 = vld [vmem:[%s5235_s2 + $0x8] sm:$0xff]  ;;  %v3574_v61 = vld [vmem:[%s5235_s2] sm:$0xff] }
 0x263   :  { %1350 = vst [vmem:[#allocation2 + $0x18] sm:$0xff] %v1341_v57 }
 0x264   :  { %v1257_v2 = vpop.f32.mrf.mxu0  ;;  %v1283_v36 = vpop.f32.mrf.mxu1 }
 0x265   :  { %v1306_v18 = vadd.f32 %v1283_v36, %v1161_v14  ;;  %v1311_v17 = vadd.f32 %v1257_v2, %v4617_v5 }
 0x267   :  { %v1329_v25 = vadd.f32 %v4646_v21, %v1306_v18  ;;  %v1334_v29 = vadd.f32 %v4644_v16, %v1311_v17 }
 0x269   :  { %v1342_v26 = vmax.f32 %v1328_v20, %v1329_v25  ;;  %v3605_v20 = vld [vmem:[%s5235_s2 + $0xf8] sm:$0xff]  ;;  %v3604_v25 = vld [vmem:[%s5235_s2 + $0xf0] sm:$0xff] }
 0x26b   :  { %1351 = vst [vmem:[#allocation2 + $0x20] sm:$0xff] %v1342_v26  ;;  %v3602_v26 = vld [vmem:[%s5235_s2 + $0xe0] sm:$0xff] }
 0x26c   :  { %v1260_v58 = vpop.f32.mrf.mxu0  ;;  %v1285_v23 = vpop.f32.mrf.mxu1 }
 0x26d   :  { %v1313_v30 = vadd.f32 %v1260_v58, %v4622_v43  ;;  %v1308_v49 = vadd.f32 %v1285_v23, %v4624_v38  ;;  %v1332_v38 = vadd.f32 %v4644_v16, %v1309_v22  ;;  %v3589_v58 = vld [vmem:[%s5235_s2 + $0x78] sm:$0xff]  ;;  %v3600_v23 = vld [vmem:[%s5235_s2 + $0xd0] sm:$0xff] }
 0x26e   :  { %1565 = vmatpush.bf16.msra.mxu2 %v3589_v58 }
 0x26f   :  { %v1336_v27 = vadd.f32 %v4644_v16, %v1313_v30  ;;  %v1331_v53 = vadd.f32 %v4646_v21, %v1308_v49  ;;  %v3599_v49 = vld [vmem:[%s5235_s2 + $0xc8] sm:$0xff] }
 0x271   :  { %v1343_v9 = vmax.f32 %v1330_v52, %v1331_v53  ;;  %v3588_v52 = vld [vmem:[%s5235_s2 + $0x70] sm:$0xff] }
 0x272   :  { %v1388_v3 = vld [vmem:[#allocation2 + $0x12] ss:$2 sm:$0xff]  ;;  %v1390_v37 = vld [vmem:[#allocation2 + $0x13] ss:$2 sm:$0xff]  ;;  %1566 = vmatpush.bf16.msra.mxu2 %v3588_v52 }
 0x273   :  { %1352 = vst [vmem:[#allocation2 + $0x28] sm:$0xff] %v1343_v9  ;;  %v1391_v41 = vmax.f32 %v1388_v3, %v1390_v37  ;;  %v3598_v9 = vld [vmem:[%s5235_s2 + $0xc0] sm:$0xff] }
 0x274   :  { %v1288_v44 = vpop.f32.mrf.mxu1  ;;  %v1262_v54 = vpop.f32.mrf.mxu0 }
 0x275   :  { %v1310_v10 = vadd.f32 %v1288_v44, %v4630_v11  ;;  %v1392_v43 = vmax.f32 %v1391_v41, 0.0 }
 0x277   :  { %v1333_v48 = vadd.f32 %v4646_v21, %v1310_v10  ;;  %v1394_v31 = vrot.slane %v1392_v43, 5 }
 0x279   :  { %v1344_v4 = vmax.f32 %v1332_v38, %v1333_v48  ;;  %1395 = vrot.lane.b32.xlu1 %v1394_v31, %s3678_s1  ;;  %v3587_v31 = vld [vmem:[%s5235_s2 + $0x68] sm:$0xff] }
 0x27a   :  { %1567 = vmatpush.bf16.msra.mxu2 %v3587_v31 }
 0x27b   :  { %1353 = vst [vmem:[#allocation2 + $0x30] sm:$0xff] %v1344_v4 }
 0x27c   :  { %v1290_v7 = vpop.f32.mrf.mxu1 }
 0x27d   :  { %v1312_v11 = vadd.f32 %v1290_v7, %v4633_v55 }
 0x27f   :  { %v1335_v35 = vadd.f32 %v4646_v21, %v1312_v11  ;;  %v2183_v11 = vld [vmem:[#allocation3 + $0x50] sm:$0x3] }
 0x281   :  { %v1345_v40 = vmax.f32 %v1334_v29, %v1335_v35 }
 0x282   :  { %v1407_v33 = vld [vmem:[#allocation2 + $0x24] ss:$2 sm:$0xff]  ;;  %v1409_v5 = vld [vmem:[#allocation2 + $0x25] ss:$2 sm:$0xff] }
 0x283   :  { %1354 = vst [vmem:[#allocation2 + $0x38] sm:$0xff] %v1345_v40  ;;  %v1410_v60 = vmax.f32 %v1407_v33, %v1409_v5 }
 0x284   :  { %v1293_v24 = vpop.f32.mrf.mxu1 }
 0x285   :  { %v1314_v55 = vadd.f32 %v1293_v24, %v4636_v62  ;;  %v1411_v50 = vmax.f32 %v1410_v60, 0.0  ;;  %v3581_v62 = vld [vmem:[%s5235_s2 + $0x38] sm:$0xff] }
 0x286   :  { %1636 = vmatpush.bf16.msra.mxu3 %v3581_v62 }
 0x287   :  { %v1337_v16 = vadd.f32 %v4646_v21, %v1314_v55  ;;  %v1413_v39 = vrot.slane %v1411_v50, 3  ;;  %v3580_v21 = vld [vmem:[%s5235_s2 + $0x30] sm:$0xff] }
 0x289   :  { %v1346_v28 = vmax.f32 %v1336_v27, %v1337_v16  ;;  %1414 = vrot.lane.b32.xlu2 %v1413_v39, %s3678_s1 }
 0x28a   :  { %1637 = vmatpush.bf16.msra.mxu3 %v3580_v21 }
 0x28b   :  { %1355 = vst [vmem:[#allocation2 + $0x40] sm:$0xff] %v1346_v28 }
 0x28c   :  { %v1295_v51 = vpop.f32.mrf.mxu1 }
 0x28e   :  { %1638 = vmatpush.bf16.msra.mxu3 %v3579_v13 }
 0x292   :  { %v1426_v45 = vld [vmem:[#allocation2 + $0x36] ss:$2 sm:$0xff]  ;;  %v1428_v15 = vld [vmem:[#allocation2 + $0x37] ss:$2 sm:$0xff]  ;;  %1639 = vmatpush.bf16.msra.mxu3 %v3578_v12 }
 0x293   :  { %v1429_v42 = vmax.f32 %v1426_v45, %v1428_v15  ;;  %v1908_v45 = vld [vmem:[#allocation3 + $0x50] sm:$0x1] }
 0x295   :  { %v1430_v63 = vmax.f32 %v1429_v42, 0.0 }
 0x296   :  { %1640 = vmatpush.bf16.msra.mxu3 %v3577_v32 }
 0x297   :  { %v1432_v56 = vrot.slane %v1430_v63, 1  ;;  %v1909_v63 = vld [vmem:[#allocation3 + $0x58] sm:$0x1] }
 0x299   :  { %1433 = vrot.lane.b32.xlu0 %v1432_v56, %s3678_s1  ;;  %s3683_s1 = smov 32  }
 0x29a   :  { %1641 = vmatpush.bf16.msra.mxu3 %v3576_v19 }
 0x29e   :  { %1642 = vmatpush.bf16.msra.mxu3 %v3575_v0 }
 0x2a2   :  { %1643 = vmatpush.bf16.msra.mxu3 %v3574_v61 }
 0x2a6   :  { %1870 = vmatpush.bf16.msrb.mxu3 %v3605_v20 }
 0x2aa   :  { %1871 = vmatpush.bf16.msrb.mxu3 %v3604_v25 }
 0x2ae   :  { %1872 = vmatpush.bf16.msrb.mxu3 %v3603_v46 }
 0x2b2   :  { %1873 = vmatpush.bf16.msrb.mxu3 %v3602_v26 }
 0x2b6   :  { %1874 = vmatpush.bf16.msrb.mxu3 %v3601_v6 }
 0x2ba   :  { %1875 = vmatpush.bf16.msrb.mxu3 %v3600_v23 }
 0x2be   :  { %1876 = vmatpush.bf16.msrb.mxu3 %v3599_v49 }
 0x2c2   :  { %1877 = vmatpush.bf16.msrb.mxu3 %v3598_v9 }
 0x2d3   :  { %v1377_v47 = vpop.permute.xlu0 %1376 }
 0x2d4   :  { %1380 = vst.msk [vmem:[#allocation3] sm:$0xfe] %vm1379_vm2, %v1377_v47  ;;  %vm1442_vm2 = vcmask 129024  }
 0x2d5   :  { %1382 = vst.msk [vmem:[#allocation3 + $0x8] sm:$0xfe] %vm1381_vm3, %v1377_v47  ;;  %vm2205_vm3 = vcmask 1046528  }
 0x2d6   :  { %1384 = vst.msk [vmem:[#allocation3 + $0x10] sm:$0x1] %vm1383_vm4, %v1377_v47  ;;  %vm1795_vm4 = vsmask.f32 7424 }
 0x2d7   :  { %1386 = vst.msk [vmem:[#allocation3 + $0x18] sm:$0x1] %vm1385_vm5, %v1377_v47  ;;  %vm1510_vm5 = vcmask 916480  }
 0x2db   :  { %v1444_v14 = vld [vmem:[#allocation3] sm:$0xff] }
 0x2dc   :  { %v1468_v2 = vld [vmem:[#allocation3 + $0x8] sm:$0xff]  ;;  %v1898_v10 = vld [vmem:[#allocation3] sm:$0xfe] }
 0x2dd   :  { %v1899_v43 = vld [vmem:[#allocation3 + $0x8] sm:$0xfe]  ;;  %v2182_v8 = vld [vmem:[#allocation3] sm:$0xfc] }
 0x2de   :  { %v1770_v0 = vld [vmem:[#allocation3] sm:$0xfe] }
 0x2df   :  { %v2290_v9 = vld [vmem:[#allocation3] sm:$0xfc] }
 0x2e3   :  { %v1415_v57 = vpop.permute.xlu2 %1414 }
 0x2e4   :  { %1418 = vst.msk [vmem:[#allocation3 + $0x20] sm:$0xe0] %vm1417_vm6, %v1415_v57  ;;  %vm1687_vm6 = vcmask 785408  }
 0x2e5   :  { %1420 = vst.msk [vmem:[#allocation3 + $0x28] sm:$0xe0] %vm1419_vm7, %v1415_v57  ;;  %vm2609_vm7 = vcmask 523264  }
 0x2e6   :  { %1422 = vst.msk [vmem:[#allocation3 + $0x30] sm:$0x1f] %vm1421_vm8, %v1415_v57  ;;  %vm2651_vm8 = vcmask 257024  }
 0x2e7   :  { %1424 = vst.msk [vmem:[#allocation3 + $0x38] sm:$0x1f] %vm1423_vm9, %v1415_v57 }
 0x2eb   :  { %v1396_v59 = vpop.permute.xlu1 %1395 }
 0x2ec   :  { %1399 = vst.msk [vmem:[#allocation3 + $0x10] sm:$0xf8] %vm1398_vm10, %v1396_v59 }
 0x2ed   :  { %1401 = vst.msk [vmem:[#allocation3 + $0x18] sm:$0xf8] %vm1400_vm11, %v1396_v59 }
 0x2ee   :  { %1403 = vst.msk [vmem:[#allocation3 + $0x20] sm:$0x7] %vm1402_vm12, %v1396_v59 }
 0x2ef   :  { %1405 = vst.msk [vmem:[#allocation3 + $0x28] sm:$0x7] %vm1404_vm13, %v1396_v59  ;;  %v3586_v59 = vld [vmem:[%s5235_s2 + $0x60] sm:$0xff] }
 0x2f0   :  { %1568 = vmatpush.bf16.msra.mxu2 %v3586_v59  ;;  %v3607_v59 = vld [vmem:[%s5235_s2 + $0x108] sm:$0xff] }
 0x2f3   :  { %v4731_v1 = vld [vmem:[#allocation3 + $0x10] sm:$0xff] }
 0x2f4   :  { %v4733_v36 = vld [vmem:[#allocation3 + $0x18] sm:$0xff]  ;;  %v4736_v34 = vpack.c.bf16 %v4731_v1, %v1444_v14  ;;  %v1910_v38 = vpack.c.bf16 %v4731_v1, %v1898_v10  ;;  %v2184_v17 = vpack.c.bf16 %v4731_v1, %v2182_v8  ;;  %v1776_v61 = vpack.c.bf16 %v4731_v1, %v1770_v0  ;;  %v3584_v10 = vld [vmem:[%s5235_s2 + $0x50] sm:$0xff] }
 0x2f5   :  { %v4739_v18 = vpack.c.bf16 %v4733_v36, %v1468_v2  ;;  %v1446_v27 = vld [vmem:[#allocation3 + $0x20] sm:$0xff]  ;;  %v1911_v48 = vpack.c.bf16 %v4733_v36, %v1899_v43  ;;  %v3594_v0 = vld [vmem:[%s5235_s2 + $0xa0] sm:$0xff] }
 0x2f6   :  { %1498 = vrot.lane.b32.xlu1 %v4736_v34, %s3680_s29  ;;  %1644 = vmatmul.bf16.vlgmr.msra.gmra.mxu3 %v4736_v34  ;;  %v1470_v3 = vld [vmem:[#allocation3 + $0x28] sm:$0xff]  ;;  %v1935_v7 = vshll.u32 %v1910_v38, 16  ;;  %v2206_v5 = vrot.slane %v2184_v17, 1  ;;  %v1933_v28 = vshrl.u32 %v1910_v38, 16  ;;  %v1799_v20 = vshll.u32 %v1776_v61, 16 }
 0x2f7   :  { %1500 = vrot.lane.b32.xlu2 %v4739_v18, %s3680_s29  ;;  %v1947_v35 = vshll.u32 %v1911_v48, 16  ;;  %v1945_v15 = vshrl.u32 %v1911_v48, 16  ;;  %v1797_v23 = vshrl.u32 %v1776_v61, 16  ;;  %v3621_v61 = vld [vmem:[%s5235_s2 + $0x178] sm:$0xff] }
 0x2f8   :  { %v1937_v55 = vrot.slane %v1935_v7, 1  ;;  %v1801_v58 = vrot.slane %v1799_v20, 1  ;;  %2154 = vmatpush.bf16.msra.mxu1 %v3621_v61  ;;  %v3606_v20 = vld [vmem:[%s5235_s2 + $0x100] sm:$0xff] }
 0x2f9   :  { %v1949_v50 = vrot.slane %v1947_v35, 1  ;;  %v2292_v35 = vld [vmem:[#allocation3 + $0x50] sm:$0x3] }
 0x2fa   :  { %v1938_v62 = vor.u32 %v1937_v55, %v1933_v28  ;;  %v1802_v49 = vor.u32 %v1801_v58, %v1797_v23  ;;  %v3582_v55 = vld [vmem:[%s5235_s2 + $0x40] sm:$0xff]  ;;  %v3612_v28 = vld [vmem:[%s5235_s2 + $0x130] sm:$0xff]  ;;  %v3619_v23 = vld [vmem:[%s5235_s2 + $0x168] sm:$0xff] }
 0x2fb   :  { %v1950_v21 = vor.u32 %v1949_v50, %v1945_v15  ;;  %v3611_v15 = vld [vmem:[%s5235_s2 + $0x128] sm:$0xff] }
 0x30b   :  { %v1434_v30 = vpop.permute.xlu0 %1433 }
 0x30c   :  { %1437 = vst.msk [vmem:[#allocation3 + $0x30] sm:$0x80] %vm1436_vm14, %v1434_v30 }
 0x30d   :  { %1439 = vst.msk [vmem:[#allocation3 + $0x38] sm:$0x80] %vm1438_vm15, %v1434_v30 }
 0x30e   :  { %1441 = vst.msk [vmem:[#allocation3 + $0x40] sm:$0x7f] %vm1440_vm0, %v1434_v30  ;;  %vm2785_vm0 = vcmask 60416  }
 0x30f   :  { %1443 = vst.msk [vmem:[#allocation3 + $0x48] sm:$0x7f] %vm1442_vm2, %v1434_v30  ;;  %v3585_v30 = vld [vmem:[%s5235_s2 + $0x58] sm:$0xff] }
 0x310   :  { %1569 = vmatpush.bf16.msra.mxu2 %v3585_v30  ;;  %v3633_v30 = vld [vmem:[%s5235_s2 + $0x1d8] sm:$0xff] }
 0x313   :  { %v1447_v53 = vld [vmem:[#allocation3 + $0x30] sm:$0xff] }
 0x314   :  { %v1471_v37 = vld [vmem:[#allocation3 + $0x38] sm:$0xff]  ;;  %v1450_v22 = vpack.c.bf16 %v1447_v53, %v1446_v27  ;;  %1570 = vmatpush.bf16.msra.mxu2 %v3584_v10  ;;  %v3629_v10 = vld [vmem:[%s5235_s2 + $0x1b8] sm:$0xff] }
 0x315   :  { %v4776_v41 = vld [vmem:[#allocation3 + $0x40] sm:$0xff]  ;;  %v4778_v44 = vpack.c.bf16 %v1471_v37, %v1470_v3  ;;  %v2294_v3 = vpack.c.bf16 %v4731_v1, %v2290_v9  ;;  %v2291_v37 = vld [vmem:[#allocation3 + $0x8] sm:$0xfc] }
 0x316   :  { %v4782_v54 = vpack.c.bf16 %v4776_v41, %v4776_v41  ;;  %1502 = vrot.lane.b32.xlu0 %v1450_v22, %s3680_s29  ;;  %1649 = vmatmul.bf16.gmra.mxu3 %v1450_v22  ;;  %v4794_v4 = vld [vmem:[#allocation3 + $0x48] sm:$0xff]  ;;  %v1940_v40 = vshll.u32 %v1450_v22, 16  ;;  %v4801_v60 = vrot.slane %v1450_v22, 1  ;;  %v2185_v24 = vpack.c.bf16 %v2183_v11, %v4776_v41 }
 0x317   :  { %1504 = vrot.lane.b32.xlu1 %v4778_v44, %s3680_s29  ;;  %v1475_v29 = vpack.c.bf16 %v4794_v4, %v4794_v4  ;;  %v1952_v33 = vshll.u32 %v4778_v44, 16  ;;  %v1914_v13 = vpack.c.bf16 %v1908_v45, %v4776_v41  ;;  %v1915_v32 = vpack.c.bf16 %v1909_v63, %v4794_v4  ;;  %v3596_v63 = vld [vmem:[%s5235_s2 + $0xb0] sm:$0xff] }
 0x318   :  { %1506 = vrot.lane.b32.xlu2 %v4782_v54, %s3680_s29  ;;  %v4810_v16 = vsel %vm2205_vm3, %v2206_v5, %v4801_v60  ;;  %v4812_v39 = vrot.slane %v2185_v24, 1  ;;  %v1942_v51 = vrot.slane %v1940_v40, 1  ;;  %v1956_v47 = vshrl.u32 %v1450_v22, 16  ;;  %v2293_v40 = vld [vmem:[#allocation3 + $0x58] sm:$0x3] }
 0x319   :  { %v1954_v42 = vrot.slane %v1952_v33, 1  ;;  %v1960_v57 = vshll.u32 %v1914_v13, 16  ;;  %v1964_v14 = vshrl.u32 %v4778_v44, 16  ;;  %v1968_v2 = vshll.u32 %v1915_v32, 16 }
 0x31a   :  { %v4817_v56 = vsel %vm2205_vm3, %v4801_v60, %v4812_v39  ;;  %v4821_v12 = vsel %vm1795_vm4, %v1938_v62, %v1942_v51  ;;  %v1972_v52 = vshrl.u32 %v1914_v13, 16  ;;  %v1807_v27 = vsel %vm1795_vm4, %v1802_v49, %v1942_v51  ;;  %v3610_v62 = vld [vmem:[%s5235_s2 + $0x120] sm:$0xff] }
 0x31b   :  { %v4825_v19 = vsel %vm1795_vm4, %v1950_v21, %v1954_v42  ;;  %v1962_v25 = vrot.slane %v1960_v57, 1  ;;  %v1970_v46 = vrot.slane %v1968_v2, 1  ;;  %v2295_v43 = vpack.c.bf16 %v4733_v36, %v2291_v37  ;;  %v3583_v36 = vld [vmem:[%s5235_s2 + $0x48] sm:$0xff]  ;;  %v3593_v57 = vld [vmem:[%s5235_s2 + $0x98] sm:$0xff]  ;;  %v3636_v2 = vld [vmem:[%s5235_s2 + $0x1f0] sm:$0xff] }
 0x31c   :  { %v1975_v38 = vshrl.u32 %v1915_v32, 16  ;;  %v2320_v31 = vrot.slane %v2294_v3, 1  ;;  %1571 = vmatpush.bf16.msra.mxu2 %v3583_v36  ;;  %v2296_v5 = vpack.c.bf16 %v2292_v35, %v4776_v41  ;;  %v2297_v24 = vpack.c.bf16 %v2293_v40, %v4794_v4  ;;  %v3595_v21 = vld [vmem:[%s5235_s2 + $0xa8] sm:$0xff]  ;;  %v3590_v49 = vld [vmem:[%s5235_s2 + $0x80] sm:$0xff] }
 0x31d   :  { %v4854_v53 = vor.u32 %v1972_v52, %v1962_v25  ;;  %v2323_v17 = vrot.slane %v2295_v43, 1  ;;  %v3618_v52 = vld [vmem:[%s5235_s2 + $0x160] sm:$0xff]  ;;  %v3617_v43 = vld [vmem:[%s5235_s2 + $0x158] sm:$0xff]  ;;  %v3615_v36 = vld [vmem:[%s5235_s2 + $0x148] sm:$0xff] }
 0x31e   :  { %1508 = vrot.lane.b32.xlu0 %v1475_v29, %s3680_s29  ;;  %v1977_v8 = vor.u32 %v1975_v38, %v1970_v46  ;;  %v2322_v1 = vsel %vm2205_vm3, %v2320_v31, %v4801_v60  ;;  %v2326_v50 = vrot.slane %v2296_v5, 1  ;;  %v3631_v38 = vld [vmem:[%s5235_s2 + $0x1c8] sm:$0xff]  ;;  %v3628_v31 = vld [vmem:[%s5235_s2 + $0x1b0] sm:$0xff]  ;;  %v3614_v40 = vld [vmem:[%s5235_s2 + $0x140] sm:$0xff] }
 0x31f   :  { %1675 = vrot.lane.b32.xlu1 %v4736_v34, %s3681_s25  ;;  %v1958_v34 = vor.u32 %v1956_v47, %v1942_v51  ;;  %v2328_v51 = vrot.slane %v2297_v24, 1  ;;  %v3608_v47 = vld [vmem:[%s5235_s2 + $0x110] sm:$0xff] }
 0x320   :  { %1677 = vrot.lane.b32.xlu2 %v4739_v18, %s3681_s25  ;;  %v1966_v18 = vor.u32 %v1964_v14, %v1954_v42  ;;  %1572 = vmatpush.bf16.msra.mxu2 %v3582_v55  ;;  %v3637_v14 = vld [vmem:[%s5235_s2 + $0x1f8] sm:$0xff] }
 0x321   :  { %v4839_v26 = vsel %vm1795_vm4, %v1958_v34, %v1962_v25  ;;  %2396 = vmatpush.bf16.msra.mxu3 %v3637_v14 }
 0x322   :  { %v4846_v6 = vsel %vm1795_vm4, %v1966_v18, %v1970_v46  ;;  %v3620_v18 = vld [vmem:[%s5235_s2 + $0x170] sm:$0xff]  ;;  %v3635_v46 = vld [vmem:[%s5235_s2 + $0x1e8] sm:$0xff] }
 0x323   :  { %2155 = vmatpush.bf16.msra.mxu1 %v3620_v18 }
 0x325   :  { %2397 = vmatpush.bf16.msra.mxu3 %v3636_v2 }
 0x326   :  { %1978 = vrot.lane.b32.xlu0 %v4821_v12, %s3680_s29  ;;  %1654 = vmatmul.bf16.gmra.mxu3 %v4782_v54 }
 0x327   :  { %1980 = vrot.lane.b32.xlu1 %v4825_v19, %s3680_s29  ;;  %2156 = vmatpush.bf16.msra.mxu1 %v3619_v23 }
 0x328   :  { %1679 = vrot.lane.b32.xlu2 %v1450_v22, %s3681_s25  ;;  %v1775_v22 = vld [vmem:[#allocation3 + $0x50] sm:$0x1] }
 0x329   :  { %v1778_v48 = vpack.c.bf16 %v1775_v22, %v4776_v41  ;;  %v2327_v41 = vsel %vm2205_vm3, %v4801_v60, %v2326_v50  ;;  %v3597_v60 = vld [vmem:[%s5235_s2 + $0xb8] sm:$0xff]  ;;  %2398 = vmatpush.bf16.msra.mxu3 %v3635_v46 }
 0x32a   :  { %1742 = vmatpush.bf16.msrb.mxu2 %v3597_v60 }
 0x32b   :  { %v1812_v11 = vshll.u32 %v1778_v48, 16  ;;  %v1816_v45 = vshrl.u32 %v1778_v48, 16  ;;  %2157 = vmatpush.bf16.msra.mxu1 %v3618_v52  ;;  %v3616_v48 = vld [vmem:[%s5235_s2 + $0x150] sm:$0xff] }
 0x32e   :  { %1681 = vrot.lane.b32.xlu0 %v4778_v44, %s3681_s25  ;;  %1743 = vmatpush.bf16.msrb.mxu2 %v3596_v63  ;;  %v3625_v63 = vld [vmem:[%s5235_s2 + $0x198] sm:$0xff] }
 0x32f   :  { %1982 = vrot.lane.b32.xlu1 %v4839_v26, %s3680_s29  ;;  %2158 = vmatpush.bf16.msra.mxu1 %v3617_v43 }
 0x330   :  { %1984 = vrot.lane.b32.xlu2 %v4846_v6, %s3680_s29 }
 0x332   :  { %1744 = vmatpush.bf16.msrb.mxu2 %v3595_v21  ;;  %v3624_v21 = vld [vmem:[%s5235_s2 + $0x190] sm:$0xff] }
 0x333   :  { %2159 = vmatpush.bf16.msra.mxu1 %v3616_v48 }
 0x336   :  { %1683 = vrot.lane.b32.xlu0 %v4782_v54, %s3681_s25  ;;  %1878 = vmatmul.bf16.vlgmr.msrb.gmra.mxu3 %v1807_v27  ;;  %v2324_v54 = vrot.slane %v4778_v44, 1  ;;  %v3613_v44 = vld [vmem:[%s5235_s2 + $0x138] sm:$0xff]  ;;  %v3632_v27 = vld [vmem:[%s5235_s2 + $0x1d0] sm:$0xff] }
 0x337   :  { %1685 = vrot.lane.b32.xlu1 %v1475_v29, %s3681_s25  ;;  %2044 = vmatpush.bf16.msrb.mxu0 %v3613_v44  ;;  %v1814_v29 = vrot.slane %v1812_v11, 1  ;;  %v3643_v44 = vld [vmem:[%s5235_s2 + $0x228] sm:$0xff] }
 0x338   :  { %1986 = vrot.lane.b32.xlu2 %v4854_v53, %s3680_s29  ;;  %v2325_v7 = vsel %vm2205_vm3, %v2323_v17, %v2324_v54  ;;  %v2329_v4 = vsel %vm2205_vm3, %v2324_v54, %v2328_v51  ;;  %1745 = vmatpush.bf16.msrb.mxu2 %v3594_v0  ;;  %v3645_v54 = vld [vmem:[%s5235_s2 + $0x238] sm:$0xff]  ;;  %v3644_v17 = vld [vmem:[%s5235_s2 + $0x230] sm:$0xff] }
 0x339   :  { %v1815_v33 = vsel %vm1795_vm4, %v1958_v34, %v1814_v29  ;;  %v1818_v42 = vor.u32 %v1816_v45, %v1814_v29  ;;  %v3592_v34 = vld [vmem:[%s5235_s2 + $0x90] sm:$0xff]  ;;  %v3627_v29 = vld [vmem:[%s5235_s2 + $0x1a8] sm:$0xff]  ;;  %2160 = vmatpush.bf16.msra.mxu1 %v3615_v36  ;;  %vm2817_vm4 = vcmask 64512  }
 0x33a   :  { %v3640_v45 = vld [vmem:[%s5235_s2 + $0x210] sm:$0xff] }
 0x33b   :  { %2045 = vmatpush.bf16.msrb.mxu0 %v3612_v28 }
 0x33c   :  { %1746 = vmatpush.bf16.msrb.mxu2 %v3593_v57  ;;  %v3623_v57 = vld [vmem:[%s5235_s2 + $0x188] sm:$0xff] }
 0x33d   :  { %2161 = vmatpush.bf16.msra.mxu1 %v3614_v40 }
 0x33e   :  { %1988 = vrot.lane.b32.xlu0 %v1977_v8, %s3680_s29 }
 0x33f   :  { %2330 = vrot.lane.b32.xlu1 %v2322_v1, %s3680_s29  ;;  %2046 = vmatpush.bf16.msrb.mxu0 %v3611_v15 }
 0x340   :  { %2332 = vrot.lane.b32.xlu2 %v2325_v7, %s3680_s29  ;;  %1747 = vmatpush.bf16.msrb.mxu2 %v3592_v34 }
 0x343   :  { %2047 = vmatpush.bf16.msrb.mxu0 %v3610_v62  ;;  %v3639_v62 = vld [vmem:[%s5235_s2 + $0x208] sm:$0xff] }
 0x346   :  { %2088 = vrot.lane.b32.xlu0 %v4821_v12, %s3681_s25  ;;  %1883 = vmatmul.bf16.gmra.mxu3 %v1815_v33  ;;  %v3642_v33 = vld [vmem:[%s5235_s2 + $0x220] sm:$0xff] }
 0x347   :  { %2090 = vrot.lane.b32.xlu1 %v4825_v19, %s3681_s25  ;;  %v3609_v19 = vld [vmem:[%s5235_s2 + $0x118] sm:$0xff] }
 0x348   :  { %2440 = vrot.lane.b32.xlu2 %v2322_v1, %s3681_s25  ;;  %2048 = vmatpush.bf16.msrb.mxu0 %v3609_v19 }
 0x34c   :  { %2049 = vmatpush.bf16.msrb.mxu0 %v3608_v47 }
 0x34e   :  { %2442 = vrot.lane.b32.xlu0 %v2325_v7, %s3681_s25 }
 0x34f   :  { %2334 = vrot.lane.b32.xlu1 %v2327_v41, %s3680_s29 }
 0x350   :  { %2336 = vrot.lane.b32.xlu2 %v2329_v4, %s3680_s29  ;;  %2050 = vmatpush.bf16.msrb.mxu0 %v3607_v59 }
 0x351   :  { %v1501_v13 = vpop.permute.xlu2 %1500 }
 0x354   :  { %2051 = vmatpush.bf16.msrb.mxu0 %v3606_v20  ;;  %v3622_v20 = vld [vmem:[%s5235_s2 + $0x180] sm:$0xff] }
 0x356   :  { %2092 = vrot.lane.b32.xlu0 %v4839_v26, %s3681_s25  ;;  %1888 = vmatmul.bf16.gmra.mxu3 %v1818_v42  ;;  %v3591_v26 = vld [vmem:[%s5235_s2 + $0x88] sm:$0xff] }
 0x357   :  { %2094 = vrot.lane.b32.xlu1 %v4846_v6, %s3681_s25  ;;  %1748 = vmatpush.bf16.msrb.mxu2 %v3591_v26  ;;  %v3634_v6 = vld [vmem:[%s5235_s2 + $0x1e0] sm:$0xff] }
 0x358   :  { %2444 = vrot.lane.b32.xlu2 %v2327_v41, %s3681_s25  ;;  %2399 = vmatpush.bf16.msra.mxu3 %v3634_v6  ;;  %v3626_v41 = vld [vmem:[%s5235_s2 + $0x1a0] sm:$0xff] }
 0x359   :  { %2506 = vmatpush.bf16.msra.mxu0 %v3645_v54 }
 0x35b   :  { %1749 = vmatpush.bf16.msrb.mxu2 %v3590_v49 }
 0x35c   :  { %2400 = vmatpush.bf16.msra.mxu3 %v3633_v30 }
 0x35d   :  { %2507 = vmatpush.bf16.msra.mxu0 %v3644_v17 }
 0x35e   :  { %2446 = vrot.lane.b32.xlu0 %v2329_v4, %s3681_s25 }
 0x35f   :  { %2338 = vrot.lane.b32.xlu1 %v2326_v50, %s3680_s29 }
 0x360   :  { %2340 = vrot.lane.b32.xlu2 %v2328_v51, %s3680_s29  ;;  %2401 = vmatpush.bf16.msra.mxu3 %v3632_v27 }
 0x361   :  { %2508 = vmatpush.bf16.msra.mxu0 %v3643_v44 }
 0x364   :  { %2402 = vmatpush.bf16.msra.mxu3 %v3631_v38 }
 0x365   :  { %2509 = vmatpush.bf16.msra.mxu0 %v3642_v33 }
 0x366   :  { %2096 = vrot.lane.b32.xlu0 %v4854_v53, %s3681_s25 }
 0x367   :  { %2098 = vrot.lane.b32.xlu1 %v1977_v8, %s3681_s25  ;;  %v3630_v8 = vld [vmem:[%s5235_s2 + $0x1c0] sm:$0xff] }
 0x368   :  { %2448 = vrot.lane.b32.xlu2 %v2326_v50, %s3681_s25  ;;  %v1499_v12 = vpop.permute.xlu1 %1498  ;;  %2403 = vmatpush.bf16.msra.mxu3 %v3630_v8 }
 0x369   :  { %v1511_v32 = vsel %vm1510_vm5, %v1499_v12, %v1501_v13  ;;  %v3638_v13 = vld [vmem:[%s5235_s2 + $0x200] sm:$0xff] }
 0x36a   :  { %1573 = vmatmul.bf16.vlgmr.msra.gmra.mxu2 %v1511_v32 }
 0x36b   :  { %2262 = vmatpush.bf16.msra.mxu2 %v3629_v10 }
 0x36e   :  { %2450 = vrot.lane.b32.xlu0 %v2328_v51, %s3681_s25  ;;  %v3641_v51 = vld [vmem:[%s5235_s2 + $0x218] sm:$0xff] }
 0x36f   :  { %2263 = vmatpush.bf16.msra.mxu2 %v3628_v31  ;;  %2510 = vmatpush.bf16.msra.mxu0 %v3641_v51 }
 0x372   :  { %v1507_v25 = vpop.permute.xlu2 %1506 }
 0x373   :  { %2264 = vmatpush.bf16.msra.mxu2 %v3627_v29  ;;  %2511 = vmatpush.bf16.msra.mxu0 %v3640_v45 }
 0x377   :  { %2265 = vmatpush.bf16.msra.mxu2 %v3626_v41  ;;  %2512 = vmatpush.bf16.msra.mxu0 %v3639_v62 }
 0x379   :  { %v4988_v53 = vpop.f32.mrf.mxu3 }
 0x37a   :  { %v4971_v58 = vpop.permute.xlu2 %1677 }
 0x37b   :  { %2266 = vmatpush.bf16.msra.mxu2 %v3625_v63  ;;  %2513 = vmatpush.bf16.msra.mxu0 %v3638_v13 }
 0x37f   :  { %2267 = vmatpush.bf16.msra.mxu2 %v3624_v21 }
 0x381   :  { %v5017_v7 = vpop.f32.mrf.mxu3 }
 0x382   :  { %v4990_v37 = vpop.permute.xlu2 %1679 }
 0x383   :  { %2268 = vmatpush.bf16.msra.mxu2 %v3623_v57 }
 0x387   :  { %2269 = vmatpush.bf16.msra.mxu2 %v3622_v20 }
 0x388   :  { %v1503_v9 = vpop.permute.xlu0 %1502 }
 0x389   :  { %v1505_v3 = vpop.permute.xlu1 %1504 }
 0x38a   :  { %v1512_v22 = vsel %vm1510_vm5, %v1503_v9, %v1505_v3  ;;  %v1985_v35 = vpop.permute.xlu2 %1984 }
 0x38b   :  { %1578 = vmatmul.bf16.gmra.mxu2 %v1512_v22 }
 0x390   :  { %v1509_v1 = vpop.permute.xlu0 %1508 }
 0x391   :  { %v1676_v11 = vpop.permute.xlu1 %1675  ;;  %v1513_v28 = vsel %vm1510_vm5, %v1507_v25, %v1509_v1 }
 0x392   :  { %v1987_v4 = vpop.permute.xlu2 %1986  ;;  %v1688_v61 = vsel %vm1687_vm6, %v1676_v11, %v4971_v58 }
 0x398   :  { %v1979_v5 = vpop.permute.xlu0 %1978 }
 0x399   :  { %v1981_v24 = vpop.permute.xlu1 %1980  ;;  %v5034_v55 = vpop.f32.mrf.mxu3 }
 0x39a   :  { %v1990_v50 = vsel %vm1510_vm5, %v1979_v5, %v1981_v24  ;;  %v2333_v12 = vpop.permute.xlu2 %2332 }
 0x39b   :  { %1583 = vmatmul.bf16.gmra.mxu2 %v1513_v28  ;;  %2052 = vmatmul.bf16.vlgmr.msrb.gmra.mxu0 %v1990_v50 }
 0x3a0   :  { %v1682_v15 = vpop.permute.xlu0 %1681 }
 0x3a1   :  { %v1983_v42 = vpop.permute.xlu1 %1982  ;;  %v5047_v60 = vpop.f32.mrf.mxu3  ;;  %v1689_v58 = vsel %vm1687_vm6, %v4990_v37, %v1682_v15 }
 0x3a2   :  { %v1991_v47 = vsel %vm1510_vm5, %v1983_v42, %v1985_v35  ;;  %v2441_v34 = vpop.permute.xlu2 %2440 }
 0x3a8   :  { %v1684_v32 = vpop.permute.xlu0 %1683 }
 0x3a9   :  { %v1686_v19 = vpop.permute.xlu1 %1685  ;;  %v5061_v0 = vpop.f32.mrf.mxu3 }
 0x3aa   :  { %v2337_v30 = vpop.permute.xlu2 %2336  ;;  %v1690_v37 = vsel %vm1687_vm6, %v1684_v32, %v1686_v19 }
 0x3ab   :  { %1750 = vmatmul.bf16.vlgmr.msrb.gmra.mxu2 %v1688_v61  ;;  %2057 = vmatmul.bf16.gmra.mxu0 %v1991_v47 }
 0x3b0   :  { %v1989_v59 = vpop.permute.xlu0 %1988 }
 0x3b1   :  { %v2331_v14 = vpop.permute.xlu1 %2330  ;;  %v1657_v2 = vpop.f32.mrf.mxu3  ;;  %v1992_v23 = vsel %vm1510_vm5, %v1987_v4, %v1989_v59 }
 0x3b2   :  { %v2342_v18 = vsel %vm1510_vm5, %v2331_v14, %v2333_v12  ;;  %v2445_v3 = vpop.permute.xlu2 %2444 }
 0x3b3   :  { %2404 = vmatmul.bf16.vlgmr.msra.gmra.mxu3 %v2342_v18 }
 0x3b8   :  { %v2089_v25 = vpop.permute.xlu0 %2088 }
 0x3b9   :  { %v2091_v46 = vpop.permute.xlu1 %2090  ;;  %v1879_v26 = vpop.f32.mrf.mxu3 }
 0x3ba   :  { %v2100_v6 = vsel %vm1687_vm6, %v2089_v25, %v2091_v46  ;;  %v2341_v48 = vpop.permute.xlu2 %2340 }
 0x3bb   :  { %1755 = vmatmul.bf16.gmra.mxu2 %v1689_v58  ;;  %2062 = vmatmul.bf16.gmra.mxu0 %v1992_v23 }
 0x3bc   :  { %2162 = vmatmul.bf16.vlgmr.msra.gmra.mxu1 %v2100_v6 }
 0x3c0   :  { %v2443_v49 = vpop.permute.xlu0 %2442 }
 0x3c1   :  { %v2335_v52 = vpop.permute.xlu1 %2334  ;;  %v1881_v27 = vpop.f32.mrf.mxu3  ;;  %v2452_v38 = vsel %vm1687_vm6, %v2441_v34, %v2443_v49 }
 0x3c2   :  { %v2343_v9 = vsel %vm1510_vm5, %v2335_v52, %v2337_v30  ;;  %v2449_v5 = vpop.permute.xlu2 %2448 }
 0x3c3   :  { %2409 = vmatmul.bf16.gmra.mxu3 %v2343_v9 }
 0x3c8   :  { %v2093_v22 = vpop.permute.xlu0 %2092 }
 0x3c9   :  { %v2095_v10 = vpop.permute.xlu1 %2094  ;;  %v1884_v43 = vpop.f32.mrf.mxu3 }
 0x3ca   :  { %v2101_v54 = vsel %vm1687_vm6, %v2093_v22, %v2095_v10 }
 0x3cb   :  { %1760 = vmatmul.bf16.gmra.mxu2 %v1690_v37  ;;  %2514 = vmatmul.bf16.vlgmr.msra.gmra.mxu0 %v2452_v38 }
 0x3cc   :  { %2167 = vmatmul.bf16.gmra.mxu1 %v2101_v54 }
 0x3d0   :  { %v2447_v31 = vpop.permute.xlu0 %2446 }
 0x3d1   :  { %v2339_v8 = vpop.permute.xlu1 %2338  ;;  %v1886_v17 = vpop.f32.mrf.mxu3  ;;  %v2453_v35 = vsel %vm1687_vm6, %v2445_v3, %v2447_v31 }
 0x3d2   :  { %v2344_v1 = vsel %vm1510_vm5, %v2339_v8, %v2341_v48  ;;  %v2534_v8 = vld [vmem:[%s5235_s2 + $0x240] sm:$0x1]  ;;  %vm2843_vm5 = vcmask 27648  }
 0x3d3   :  { %2414 = vmatmul.bf16.gmra.mxu3 %v2344_v1  ;;  %v2535_v1 = vunpack.c.l.bf16 %v2534_v8 }
 0x3d8   :  { %v2097_v11 = vpop.permute.xlu0 %2096 }
 0x3d9   :  { %v2099_v36 = vpop.permute.xlu1 %2098  ;;  %v1889_v44 = vpop.f32.mrf.mxu3 }
 0x3da   :  { %v2102_v29 = vsel %vm1687_vm6, %v2097_v11, %v2099_v36 }
 0x3db   :  { %2270 = vmatmul.bf16.vlgmr.msra.gmra.mxu2 %v4810_v16  ;;  %2519 = vmatmul.bf16.gmra.mxu0 %v2453_v35 }
 0x3dc   :  { %2172 = vmatmul.bf16.gmra.mxu1 %v2102_v29 }
 0x3e0   :  { %v2451_v33 = vpop.permute.xlu0 %2450 }
 0x3e1   :  { %v1891_v40 = vpop.f32.mrf.mxu3  ;;  %v2454_v24 = vsel %vm1687_vm6, %v2449_v5, %v2451_v33  ;;  %v2536_v33 = vperm.slane %v2535_v1, 0 }
 0x3eb   :  { %2275 = vmatmul.bf16.gmra.mxu2 %v4817_v56  ;;  %2524 = vmatmul.bf16.gmra.mxu0 %v2454_v24 }
 0x3ed   :  { %v1574_v50 = vpop.f32.mrf.mxu2 }
 0x3ee   :  { %v1646_v63 = vadd.f32 %v4988_v53, %v1574_v50 }
 0x3f5   :  { %v1576_v28 = vpop.f32.mrf.mxu2 }
 0x3f6   :  { %v1648_v56 = vadd.f32 %v5017_v7, %v1576_v28 }
 0x3fb   :  { %2280 = vmatmul.bf16.gmra.mxu2 %v4812_v39 }
 0x40e   :  { %v1579_v51 = vpop.f32.mrf.mxu2 }
 0x40f   :  { %v1651_v2 = vadd.f32 %v5034_v55, %v1579_v51 }
 0x416   :  { %v1581_v41 = vpop.f32.mrf.mxu2 }
 0x418   :  { %v2053_v4 = vpop.f32.mrf.mxu0 }
 0x41e   :  { %v1584_v45 = vpop.f32.mrf.mxu2 }
 0x41f   :  { %v1656_v9 = vadd.f32 %v5061_v0, %v1584_v45 }
 0x420   :  { %v2055_v15 = vpop.f32.mrf.mxu0 }
 0x426   :  { %v1586_v16 = vpop.f32.mrf.mxu2 }
 0x428   :  { %v2058_v42 = vpop.f32.mrf.mxu0 }
 0x42e   :  { %v1751_v62 = vpop.f32.mrf.mxu2 }
 0x42f   :  { %v1765_v21 = vadd.f32 %v1751_v62, %v1646_v63 }
 0x430   :  { %v2060_v13 = vpop.f32.mrf.mxu0 }
 0x431   :  { %v1893_v12 = vadd.f32 %v1879_v26, %v1765_v21  ;;  %v1653_v26 = vadd.f32 %v5047_v60, %v1581_v41 }
 0x433   :  { %v2067_v32 = vadd.f32 %v2053_v4, %v1893_v12 }
 0x436   :  { %v1753_v19 = vpop.f32.mrf.mxu2  ;;  %v2405_v39 = vpop.f32.mrf.mxu3 }
 0x437   :  { %v1766_v61 = vadd.f32 %v1753_v19, %v1648_v56 }
 0x438   :  { %v2063_v47 = vpop.f32.mrf.mxu0 }
 0x439   :  { %v1894_v57 = vadd.f32 %v1881_v27, %v1766_v61  ;;  %v2163_v59 = vpop.f32.mrf.mxu1 }
 0x43b   :  { %v2068_v14 = vadd.f32 %v2055_v15, %v1894_v57 }
 0x43e   :  { %v1756_v34 = vpop.f32.mrf.mxu2  ;;  %v2407_v18 = vpop.f32.mrf.mxu3 }
 0x43f   :  { %v1767_v20 = vadd.f32 %v1756_v34, %v1651_v2 }
 0x440   :  { %v2065_v53 = vpop.f32.mrf.mxu0 }
 0x441   :  { %v1895_v25 = vadd.f32 %v1884_v43, %v1767_v20  ;;  %v2165_v46 = vpop.f32.mrf.mxu1 }
 0x442   :  { %v2178_v5 = vadd.f32 %v2165_v46, %v2068_v14 }
 0x443   :  { %v2069_v6 = vadd.f32 %v2058_v42, %v1895_v25 }
 0x446   :  { %v1758_v58 = vpop.f32.mrf.mxu2  ;;  %v2410_v7 = vpop.f32.mrf.mxu3 }
 0x447   :  { %v1768_v23 = vadd.f32 %v1758_v58, %v1653_v26 }
 0x448   :  { %v2515_v30 = vpop.f32.mrf.mxu0 }
 0x449   :  { %v1896_v49 = vadd.f32 %v1886_v17, %v1768_v23  ;;  %v2168_v52 = vpop.f32.mrf.mxu1  ;;  %v2177_v17 = vadd.f32 %v2163_v59, %v2067_v32 }
 0x44a   :  { %v2179_v45 = vadd.f32 %v2168_v52, %v2069_v6  ;;  %v2628_v52 = vld [vmem:[%s5236_s3 + $0x78] sm:$0xff] }
 0x44b   :  { %v2070_v27 = vadd.f32 %v2060_v13, %v1896_v49  ;;  %2629 = vmatpush.msrb.mxu2 %v2628_v52 }
 0x44e   :  { %v1761_v3 = vpop.f32.mrf.mxu2  ;;  %v2412_v55 = vpop.f32.mrf.mxu3 }
 0x44f   :  { %v1769_v22 = vadd.f32 %v1761_v3, %v1656_v9  ;;  %v2626_v3 = vld [vmem:[%s5236_s3 + $0x68] sm:$0xff] }
 0x450   :  { %v2517_v10 = vpop.f32.mrf.mxu0 }
 0x451   :  { %v1897_v38 = vadd.f32 %v1889_v44, %v1769_v22  ;;  %v2170_v37 = vpop.f32.mrf.mxu1  ;;  %v2624_v22 = vld [vmem:[%s5236_s3 + $0x58] sm:$0xff] }
 0x452   :  { %v2180_v13 = vadd.f32 %v2170_v37, %v2070_v27  ;;  %v2627_v27 = vld [vmem:[%s5236_s3 + $0x70] sm:$0xff] }
 0x453   :  { %v2071_v43 = vadd.f32 %v2063_v47, %v1897_v38  ;;  %2630 = vmatpush.msrb.mxu2 %v2627_v27  ;;  %v2622_v38 = vld [vmem:[%s5236_s3 + $0x48] sm:$0xff] }
 0x454   :  { %v2695_v27 = vld [vmem:[%s5236_s3 + $0x8a] sm:$0xff] }
 0x455   :  { %2631 = vmatpush.msrb.mxu2 %v2626_v3  ;;  %v2694_v3 = vld [vmem:[%s5236_s3 + $0x82] sm:$0xff] }
 0x456   :  { %v1763_v54 = vpop.f32.mrf.mxu2  ;;  %v2415_v48 = vpop.f32.mrf.mxu3 }
 0x458   :  { %v2520_v31 = vpop.f32.mrf.mxu0 }
 0x459   :  { %v2173_v60 = vpop.f32.mrf.mxu1 }
 0x45a   :  { %v2181_v61 = vadd.f32 %v2173_v60, %v2071_v43 }
 0x45e   :  { %v2271_v11 = vpop.f32.mrf.mxu2  ;;  %v2417_v36 = vpop.f32.mrf.mxu3 }
 0x45f   :  { %v2285_v0 = vadd.f32 %v2271_v11, %v2177_v17 }
 0x460   :  { %v2522_v29 = vpop.f32.mrf.mxu0 }
 0x461   :  { %v2419_v35 = vadd.f32 %v2405_v39, %v2285_v0  ;;  %v2175_v40 = vpop.f32.mrf.mxu1 }
 0x462   :  { %v2619_v40 = vld [vmem:[%s5236_s3 + $0x30] sm:$0xff] }
 0x463   :  { %v2529_v44 = vadd.f32 %v2515_v30, %v2419_v35  ;;  %v2620_v35 = vld [vmem:[%s5236_s3 + $0x38] sm:$0xff] }
 0x465   :  { %v2537_v24 = vadd.f32 %v2536_v33, %v2529_v44  ;;  %v2617_v44 = vld [vmem:[%s5236_s3 + $0x20] sm:$0xff] }
 0x466   :  { %v2273_v50 = vpop.f32.mrf.mxu2 }
 0x467   :  { %v2286_v28 = vadd.f32 %v2273_v50, %v2178_v5  ;;  %2547 = vrot.lane.b32.xlu1 %v2537_v24, %s3681_s25  ;;  %v2616_v5 = vld [vmem:[%s5236_s3 + $0x18] sm:$0xff]  ;;  %v2614_v50 = vld [vmem:[%s5236_s3 + $0x8] sm:$0xff] }
 0x468   :  { %v2525_v51 = vpop.f32.mrf.mxu0 }
 0x469   :  { %v2420_v41 = vadd.f32 %v2407_v18, %v2286_v28  ;;  %v2613_v28 = vld [vmem:[%s5236_s3] sm:$0xff] }
 0x46b   :  { %v2530_v4 = vadd.f32 %v2517_v10, %v2420_v41  ;;  %v2623_v10 = vld [vmem:[%s5236_s3 + $0x50] sm:$0xff] }
 0x46d   :  { %v2538_v15 = vadd.f32 %v2536_v33, %v2530_v4 }
 0x46e   :  { %v2276_v16 = vpop.f32.mrf.mxu2 }
 0x46f   :  { %v2287_v42 = vadd.f32 %v2276_v16, %v2179_v45  ;;  %2549 = vrot.lane.b32.xlu2 %v2538_v15, %s3681_s25 }
 0x470   :  { %v2527_v63 = vpop.f32.mrf.mxu0 }
 0x471   :  { %v2421_v62 = vadd.f32 %v2410_v7, %v2287_v42 }
 0x473   :  { %v2531_v21 = vadd.f32 %v2520_v31, %v2421_v62 }
 0x475   :  { %v2539_v12 = vadd.f32 %v2536_v33, %v2531_v21  ;;  %v3684_v21 = vmov 4.0  }
 0x476   :  { %v2278_v32 = vpop.f32.mrf.mxu2  ;;  %3666 = vrcp.f32 %v3684_v21  ;;  %v2759_v21 = vld [vmem:[%s5236_s3 + $0xac] sm:$0xff] }
 0x477   :  { %v2288_v56 = vadd.f32 %v2278_v32, %v2180_v13  ;;  %2551 = vrot.lane.b32.xlu0 %v2539_v12, %s3681_s25 }
 0x479   :  { %v2422_v19 = vadd.f32 %v2412_v55, %v2288_v56  ;;  %v2625_v55 = vld [vmem:[%s5236_s3 + $0x60] sm:$0xff] }
 0x47a   :  { %2632 = vmatpush.msrb.mxu2 %v2625_v55 }
 0x47b   :  { %v2532_v39 = vadd.f32 %v2522_v29, %v2422_v19  ;;  %v2621_v29 = vld [vmem:[%s5236_s3 + $0x40] sm:$0xff] }
 0x47c   :  { %2633 = vmatpush.msrb.mxu2 %v2624_v22  ;;  %v3667_v13 = vpop.eup %3666 }
 0x47d   :  { %v2540_v47 = vadd.f32 %v2536_v33, %v2532_v39  ;;  %vm2664_vm9 = vweird.f32 %v3667_v13 }
 0x47e   :  { %v2281_v57 = vpop.f32.mrf.mxu2  ;;  %2634 = vmatpush.msrb.mxu2 %v2623_v10 }
 0x47f   :  { %v2289_v59 = vadd.f32 %v2281_v57, %v2181_v61  ;;  %2553 = vrot.lane.b32.xlu2 %v2540_v47, %s3681_s25 }
 0x480   :  { %2635 = vmatpush.msrb.mxu2 %v2622_v38 }
 0x481   :  { %v2423_v14 = vadd.f32 %v2415_v48, %v2289_v59 }
 0x482   :  { %2636 = vmatpush.msrb.mxu2 %v2621_v29 }
 0x483   :  { %v2533_v2 = vadd.f32 %v2525_v51, %v2423_v14 }
 0x484   :  { %2637 = vmatpush.msrb.mxu2 %v2620_v35 }
 0x485   :  { %v2541_v34 = vadd.f32 %v2536_v33, %v2533_v2  ;;  %v2618_v33 = vld [vmem:[%s5236_s3 + $0x28] sm:$0xff] }
 0x486   :  { %v2283_v18 = vpop.f32.mrf.mxu2  ;;  %2638 = vmatpush.msrb.mxu2 %v2619_v40 }
 0x487   :  { %2555 = vrot.lane.b32.xlu1 %v2541_v34, %s3681_s25 }
 0x488   :  { %2639 = vmatpush.msrb.mxu2 %v2618_v33 }
 0x48a   :  { %2640 = vmatpush.msrb.mxu2 %v2617_v44 }
 0x48c   :  { %2641 = vmatpush.msrb.mxu2 %v2616_v5 }
 0x4c9   :  { %v2550_v20 = vpop.permute.xlu2 %2549 }
 0x4ca   :  { %v2563_v53 = vmax.f32 %v2538_v15, %v2550_v20 }
 0x4cc   :  { %v2568_v25 = vmax.f32 %v2563_v53, 0.0 }
 0x4ce   :  { %2573 = vst.msk [vmem:[#allocation4 + $0x8] sm:$0xff] %vm1357_vm1, %v2568_v25 }
 0x4d9   :  { %v2548_v46 = vpop.permute.xlu1 %2547  ;;  %v2554_v6 = vpop.permute.xlu2 %2553 }
 0x4da   :  { %v2562_v26 = vmax.f32 %v2537_v24, %v2548_v46  ;;  %v2565_v58 = vmax.f32 %v2540_v47, %v2554_v6  ;;  %v2615_v24 = vld [vmem:[%s5236_s3 + $0x10] sm:$0xff] }
 0x4db   :  { %2642 = vmatpush.msrb.mxu2 %v2615_v24 }
 0x4dc   :  { %v2567_v7 = vmax.f32 %v2562_v26, 0.0  ;;  %v2570_v23 = vmax.f32 %v2565_v58, 0.0 }
 0x4dd   :  { %2643 = vmatpush.msrb.mxu2 %v2614_v50 }
 0x4de   :  { %2572 = vst.msk [vmem:[#allocation4] sm:$0xff] %vm1357_vm1, %v2567_v7 }
 0x4df   :  { %2575 = vst.msk [vmem:[#allocation4 + $0x18] sm:$0xff] %vm1357_vm1, %v2570_v23  ;;  %2644 = vmatpush.msrb.mxu2 %v2613_v28 }
 0x4e9   :  { %v2552_v30 = vpop.permute.xlu0 %2551 }
 0x4ea   :  { %v2564_v49 = vmax.f32 %v2539_v12, %v2552_v30  ;;  %v2660_v12 = vmul.f32 4.0, %v3667_v13  ;;  %v2697_v30 = vld [vmem:[%s5236_s3 + $0x9a] sm:$0xff] }
 0x4eb   :  { %2713 = vmatpush.msrb.mxu1 %v2697_v30 }
 0x4ec   :  { %v2569_v9 = vmax.f32 %v2564_v49, 0.0  ;;  %v2661_v32 = vsub.f32 1.0, %v2660_v12  ;;  %v2696_v49 = vld [vmem:[%s5236_s3 + $0x92] sm:$0xff]  ;;  %v2758_v12 = vld [vmem:[%s5236_s3 + $0xa4] sm:$0xff] }
 0x4ed   :  { %2714 = vmatpush.msrb.mxu1 %v2696_v49 }
 0x4ee   :  { %2574 = vst.msk [vmem:[#allocation4 + $0x10] sm:$0xff] %vm1357_vm1, %v2569_v9  ;;  %v2662_v61 = vmul.f32 %v3667_v13, %v2661_v32 }
 0x4ef   :  { %2715 = vmatpush.msrb.mxu1 %v2695_v27 }
 0x4f0   :  { %v2663_v59 = vadd.f32 %v3667_v13, %v2662_v61 }
 0x4f1   :  { %2716 = vmatpush.msrb.mxu1 %v2694_v3 }
 0x4f5   :  { %v2577_v51 = vld [vmem:[#allocation4] ss:$10 sm:$0xf]  ;;  %v2579_v41 = vld [vmem:[#allocation4 + $0x1] ss:$10 sm:$0xf] }
 0x4f6   :  { %v2580_v45 = vmax.f32 %v2577_v51, %v2579_v41 }
 0x4f9   :  { %v2556_v37 = vpop.permute.xlu1 %2555 }
 0x4fa   :  { %v2566_v43 = vmax.f32 %v2541_v34, %v2556_v37  ;;  %v5158_v34 = vsel %vm2664_vm9, %v3667_v13, %v2663_v59  ;;  %v3661_v59 = vld [vmem:[%s5236_s3 + $0xa2] ss:$0 sm:$0xff] }
 0x4fc   :  { %v2571_v54 = vmax.f32 %v2566_v43, 0.0 }
 0x4fe   :  { %2576 = vst.msk [vmem:[#allocation4 + $0x20] sm:$0xff] %vm1357_vm1, %v2571_v54 }
 0x505   :  { %v2587_v48 = vld [vmem:[#allocation4 + $0x4] ss:$10 sm:$0xf]  ;;  %v2589_v31 = vld [vmem:[#allocation4 + $0x5] ss:$10 sm:$0xf] }
 0x506   :  { %v2590_v60 = vmax.f32 %v2587_v48, %v2589_v31  ;;  %v2592_v8 = vld [vmem:[#allocation4 + $0x6] ss:$10 sm:$0xf]  ;;  %v2594_v17 = vld [vmem:[#allocation4 + $0x7] ss:$10 sm:$0xf] }
 0x507   :  { %v2595_v1 = vmax.f32 %v2592_v8, %v2594_v17  ;;  %v2582_v11 = vld [vmem:[#allocation4 + $0x2] ss:$10 sm:$0xf]  ;;  %v2584_v36 = vld [vmem:[#allocation4 + $0x3] ss:$10 sm:$0xf] }
 0x508   :  { %2601 = vrot.lane.b32.xlu1 %v2590_v60, %s3682_s12  ;;  %v2585_v0 = vmax.f32 %v2582_v11, %v2584_v36  ;;  %v3659_v48 = vld [vmem:[%s5236_s3 + $0x80] ss:$0 sm:$0xff]  ;;  %v3660_v8 = vld [vmem:[%s5236_s3 + $0x81] ss:$0 sm:$0xff] }
 0x509   :  { %2605 = vrot.lane.b32.xlu2 %v2595_v1, %s3681_s25 }
 0x50a   :  { %2597 = vrot.lane.b32.xlu0 %v2585_v0, %s3683_s1 }
 0x563   :  { %v2606_v42 = vpop.permute.xlu2 %2605 }
 0x57a   :  { %v2602_v4 = vpop.permute.xlu1 %2601 }
 0x57c   :  { %v2598_v15 = vpop.permute.xlu0 %2597 }
 0x57d   :  { %v2608_v16 = vsel %vm1357_vm1, %v2580_v45, %v2598_v15 }
 0x57e   :  { %v2610_v63 = vsel %vm2609_vm7, %v2608_v16, %v2602_v4 }
 0x57f   :  { %v2612_v62 = vsel %vm1687_vm6, %v2610_v63, %v2606_v42  ;;  %v2761_v42 = vld [vmem:[%s5236_s3 + $0xbc] sm:$0xff]  ;;  %v2760_v63 = vld [vmem:[%s5236_s3 + $0xb4] sm:$0xff]  ;;  %vm2886_vm6 = vcmask 1043456  }
 0x580   :  { %2645 = vmatmul.f32.vlgmr.msrb.gmra.mxu2 %v2612_v62  ;;  %2777 = vmatpush.msra.mxu1 %v2761_v42 }
 0x582   :  { %2778 = vmatpush.msra.mxu1 %v2760_v63 }
 0x584   :  { %2779 = vmatpush.msra.mxu1 %v2759_v21  ;;  %v2879_v21 = vld [vmem:[%s5236_s3 + $0xce] sm:$0xf] }
 0x585   :  { %3518 = vmatpush.msk.msrb.mxu3 %vm2886_vm6, %v2879_v21 }
 0x586   :  { %2780 = vmatpush.msra.mxu1 %v2758_v12 }
 0x603   :  { %v2646_v56 = vpop.f32.mrf.mxu2 }
 0x604   :  { %v2652_v19 = vsel %vm2651_vm8, %v2646_v56, 0.0 }
 0x605   :  { %v2653_v39 = vrot.slane %v2652_v19, 4 }
 0x607   :  { %v2654_v47 = vadd.f32 %v2653_v39, %v2652_v19 }
 0x609   :  { %v2655_v57 = vrot.slane %v2654_v47, 2 }
 0x60b   :  { %v2656_v14 = vadd.f32 %v2655_v57, %v2654_v47 }
 0x60d   :  { %v2657_v2 = vrot.slane %v2656_v14, 1 }
 0x60f   :  { %v2658_v18 = vadd.f32 %v2657_v2, %v2656_v14 }
 0x611   :  { %v2666_v20 = vmul.f32 %v5158_v34, %v2658_v18  ;;  %v3662_v18 = vld [vmem:[%s5236_s3 + $0xa3] ss:$0 sm:$0xff] }
 0x613   :  { %v2667_v53 = vsub.f32 %v2646_v56, %v2666_v20 }
 0x615   :  { %v2668_v25 = vmul.f32 %v2667_v53, %v2667_v53 }
 0x617   :  { %v2669_v46 = vsel %vm2651_vm8, %v2668_v25, 0.0 }
 0x618   :  { %v2670_v6 = vrot.slane %v2669_v46, 4 }
 0x61a   :  { %v2671_v26 = vadd.f32 %v2670_v6, %v2669_v46 }
 0x61c   :  { %v2672_v58 = vrot.slane %v2671_v26, 2 }
 0x61e   :  { %v2673_v7 = vadd.f32 %v2672_v58, %v2671_v26 }
 0x620   :  { %v2674_v23 = vrot.slane %v2673_v7, 1 }
 0x622   :  { %v2675_v52 = vadd.f32 %v2674_v23, %v2673_v7 }
 0x624   :  { %v2676_v9 = vmul.f32 %v2675_v52, %v5158_v34 }
 0x626   :  { %v2677_v55 = vadd.f32 1e-05, %v2676_v9 }
 0x628   :  { %3668 = vrsqrt.f32 %v2677_v55  ;;  %vm2684_vm11 = vweird.f32 %v2677_v55 }
 0x62e   :  { %v3669_v22 = vpop.eup %3668 }
 0x62f   :  { %v2679_v10 = vmul.f32 %v3669_v22, %v2677_v55  ;;  %vm2685_vm10 = vweird.f32 %v3669_v22 }
 0x630   :  { %vm2686_vm12 = vmor %vm2684_vm11, %vm2685_vm10  ;;  %vm2882_vm10 = vcmask 31744   ;;  %vm2915_vm11 = vcmask 126016  }
 0x631   :  { %v2680_v38 = vmul.f32 %v3669_v22, %v2679_v10 }
 0x633   :  { %v2681_v37 = vmul.f32 0.5, %v2680_v38  ;;  %v2816_v38 = vld [vmem:[%s5236_s3 + $0xc4] sm:$0xff] }
 0x634   :  { %2836 = vmatpush.msra.mxu2 %v2816_v38 }
 0x635   :  { %v2682_v43 = vsub.f32 1.5, %v2681_v37 }
 0x637   :  { %v2683_v54 = vmul.f32 %v3669_v22, %v2682_v43 }
 0x639   :  { %v2687_v31 = vsel %vm2686_vm12, %v3669_v22, %v2683_v54 }
 0x63a   :  { %v2688_v60 = vmul.f32 %v2687_v31, %v2667_v53 }
 0x63c   :  { %v2690_v17 = vmul.f32 %v3659_v48, %v2688_v60 }
 0x63e   :  { %v2692_v1 = vadd.f32 %v3660_v8, %v2690_v17 }
 0x640   :  { %v2693_v11 = vmax.f32 %v2692_v1, 0.0 }
 0x642   :  { %3515 = vmatmul.msk.f32.vlgmr.msrb.gmra.mxu1 %vm1357_vm1, %v2693_v11 }
 0x6bf   :  { %v2718_v36 = vpop.f32.mrf.mxu1 }
 0x6c0   :  { %v2723_v0 = vsel %vm2651_vm8, %v2718_v36, 0.0 }
 0x6c1   :  { %v2724_v29 = vrot.slane %v2723_v0, 4 }
 0x6c3   :  { %v2725_v35 = vadd.f32 %v2724_v29, %v2723_v0 }
 0x6c5   :  { %v2726_v40 = vrot.slane %v2725_v35, 2 }
 0x6c7   :  { %v2727_v33 = vadd.f32 %v2726_v40, %v2725_v35 }
 0x6c9   :  { %v2728_v44 = vrot.slane %v2727_v33, 1 }
 0x6cb   :  { %v2729_v5 = vadd.f32 %v2728_v44, %v2727_v33 }
 0x6cd   :  { %v2730_v24 = vmul.f32 %v2729_v5, %v5158_v34 }
 0x6cf   :  { %v2731_v50 = vsub.f32 %v2718_v36, %v2730_v24 }
 0x6d1   :  { %v2732_v28 = vmul.f32 %v2731_v50, %v2731_v50 }
 0x6d3   :  { %v2733_v51 = vsel %vm2651_vm8, %v2732_v28, 0.0 }
 0x6d4   :  { %v2734_v41 = vrot.slane %v2733_v51, 4 }
 0x6d6   :  { %v2735_v4 = vadd.f32 %v2734_v41, %v2733_v51 }
 0x6d8   :  { %v2736_v45 = vrot.slane %v2735_v4, 2 }
 0x6da   :  { %v2737_v15 = vadd.f32 %v2736_v45, %v2735_v4 }
 0x6dc   :  { %v2738_v16 = vrot.slane %v2737_v15, 1 }
 0x6de   :  { %v2739_v62 = vadd.f32 %v2738_v16, %v2737_v15 }
 0x6e0   :  { %v2740_v13 = vmul.f32 %v2739_v62, %v5158_v34 }
 0x6e2   :  { %v2741_v32 = vadd.f32 1e-05, %v2740_v13 }
 0x6e4   :  { %3670 = vrsqrt.f32 %v2741_v32  ;;  %vm2748_vm14 = vweird.f32 %v2741_v32 }
 0x6ea   :  { %v3671_v56 = vpop.eup %3670 }
 0x6eb   :  { %v2743_v19 = vmul.f32 %v3671_v56, %v2741_v32  ;;  %vm2749_vm13 = vweird.f32 %v3671_v56 }
 0x6ec   :  { %vm2750_vm15 = vmor %vm2748_vm14, %vm2749_vm13 }
 0x6ed   :  { %v2744_v39 = vmul.f32 %v3671_v56, %v2743_v19 }
 0x6ef   :  { %v2745_v61 = vmul.f32 0.5, %v2744_v39 }
 0x6f1   :  { %v2746_v47 = vsub.f32 1.5, %v2745_v61 }
 0x6f3   :  { %v2747_v57 = vmul.f32 %v3671_v56, %v2746_v47 }
 0x6f5   :  { %v2751_v14 = vsel %vm2750_vm15, %v3671_v56, %v2747_v57 }
 0x6f6   :  { %v2752_v2 = vmul.f32 %v2751_v14, %v2731_v50 }
 0x6f8   :  { %v2754_v20 = vmul.f32 %v3661_v59, %v2752_v2  ;;  %v3663_v59 = vld [vmem:[%s5236_s3 + $0xcc] ss:$0 sm:$0xff] }
 0x6fa   :  { %v2756_v53 = vadd.f32 %v3662_v18, %v2754_v20 }
 0x6fc   :  { %v2757_v25 = vmax.f32 %v2756_v53, 0.0 }
 0x6fe   :  { %3516 = vmatmul.msk.f32.vlgmr.msra.gmra.mxu1 %vm1357_vm1, %v2757_v25  ;;  %v3665_v25 = vld [vmem:[%s5236_s3 + $0xd2] ss:$0 sm:$0xff] }
 0x77b   :  { %v2782_v46 = vpop.f32.mrf.mxu1 }
 0x77c   :  { %v2786_v6 = vsel %vm2785_vm0, %v2782_v46, 0.0 }
 0x77d   :  { %v2787_v26 = vrot.slane %v2786_v6, 4 }
 0x77f   :  { %v2788_v58 = vadd.f32 %v2787_v26, %v2786_v6 }
 0x781   :  { %v2789_v7 = vrot.slane %v2788_v58, 2 }
 0x783   :  { %v2790_v23 = vadd.f32 %v2789_v7, %v2788_v58 }
 0x785   :  { %v2791_v30 = vrot.slane %v2790_v23, 1 }
 0x787   :  { %v2792_v49 = vadd.f32 %v2791_v30, %v2790_v23 }
 0x789   :  { %v2793_v52 = vmul.f32 %v2792_v49, %v5158_v34 }
 0x78b   :  { %v2794_v27 = vsub.f32 %v2782_v46, %v2793_v52 }
 0x78d   :  { %v2795_v9 = vmul.f32 %v2794_v27, %v2794_v27 }
 0x78f   :  { %v2796_v3 = vsel %vm2785_vm0, %v2795_v9, 0.0 }
 0x790   :  { %v2797_v55 = vrot.slane %v2796_v3, 4 }
 0x792   :  { %v2798_v22 = vadd.f32 %v2797_v55, %v2796_v3 }
 0x794   :  { %v2799_v10 = vrot.slane %v2798_v22, 2 }
 0x796   :  { %v2800_v37 = vadd.f32 %v2799_v10, %v2798_v22 }
 0x798   :  { %v2801_v43 = vrot.slane %v2800_v37, 1 }
 0x79a   :  { %v2802_v54 = vadd.f32 %v2801_v43, %v2800_v37 }
 0x79c   :  { %v2803_v48 = vmul.f32 %v2802_v54, %v5158_v34 }
 0x79e   :  { %v2804_v31 = vadd.f32 1e-05, %v2803_v48 }
 0x7a0   :  { %3672 = vrsqrt.f32 %v2804_v31  ;;  %vm2811_vm2 = vweird.f32 %v2804_v31 }
 0x7a6   :  { %v3673_v60 = vpop.eup %3672 }
 0x7a7   :  { %v2806_v8 = vmul.f32 %v3673_v60, %v2804_v31  ;;  %vm2812_vm1 = vweird.f32 %v3673_v60 }
 0x7a8   :  { %vm2813_vm3 = vmor %vm2811_vm2, %vm2812_vm1 }
 0x7a9   :  { %v2807_v17 = vmul.f32 %v3673_v60, %v2806_v8 }
 0x7ab   :  { %v2808_v1 = vmul.f32 0.5, %v2807_v17 }
 0x7ad   :  { %v2809_v11 = vsub.f32 1.5, %v2808_v1 }
 0x7af   :  { %v2810_v36 = vmul.f32 %v3673_v60, %v2809_v11 }
 0x7b1   :  { %v2814_v0 = vsel %vm2813_vm3, %v3673_v60, %v2810_v36 }
 0x7b2   :  { %v2815_v29 = vmul.f32 %v2814_v0, %v2794_v27 }
 0x7b4   :  { %2910 = vst.msk [vmem:[%s5237_s4] sm:$0xf] %vm2785_vm0, %v2815_v29  ;;  %3517 = vmatmul.msk.f32.vlgmr.msra.gmra.mxu2 %vm2817_vm4, %v2815_v29 }
 0x837   :  { %v2838_v35 = vpop.f32.mrf.mxu2 }
 0x838   :  { %v2844_v40 = vsel %vm2843_vm5, %v2838_v35, 0.0 }
 0x839   :  { %v2845_v33 = vrot.slane %v2844_v40, 4 }
 0x83b   :  { %v2846_v44 = vadd.f32 %v2845_v33, %v2844_v40 }
 0x83d   :  { %v2847_v5 = vrot.slane %v2846_v44, 2 }
 0x83f   :  { %v2848_v24 = vadd.f32 %v2847_v5, %v2846_v44 }
 0x841   :  { %v2849_v50 = vrot.slane %v2848_v24, 1 }
 0x843   :  { %v2850_v28 = vadd.f32 %v2849_v50, %v2848_v24 }
 0x845   :  { %v2851_v51 = vmul.f32 %v2850_v28, %v5158_v34 }
 0x847   :  { %v2852_v41 = vsub.f32 %v2838_v35, %v2851_v51 }
 0x849   :  { %v2853_v4 = vmul.f32 %v2852_v41, %v2852_v41 }
 0x84b   :  { %v2854_v45 = vsel %vm2843_vm5, %v2853_v4, 0.0 }
 0x84c   :  { %v2855_v15 = vrot.slane %v2854_v45, 4 }
 0x84e   :  { %v2856_v16 = vadd.f32 %v2855_v15, %v2854_v45 }
 0x850   :  { %v2857_v42 = vrot.slane %v2856_v16, 2 }
 0x852   :  { %v2858_v63 = vadd.f32 %v2857_v42, %v2856_v16 }
 0x854   :  { %v2859_v62 = vrot.slane %v2858_v63, 1 }
 0x856   :  { %v2860_v13 = vadd.f32 %v2859_v62, %v2858_v63 }
 0x858   :  { %v2861_v12 = vmul.f32 %v2860_v13, %v5158_v34  ;;  %v3664_v34 = vld [vmem:[%s5236_s3 + $0xcd] ss:$0 sm:$0xff] }
 0x85a   :  { %v2862_v32 = vadd.f32 1e-05, %v2861_v12 }
 0x85c   :  { %3674 = vrsqrt.f32 %v2862_v32  ;;  %vm2869_vm8 = vweird.f32 %v2862_v32 }
 0x862   :  { %v3675_v56 = vpop.eup %3674 }
 0x863   :  { %v2864_v19 = vmul.f32 %v3675_v56, %v2862_v32  ;;  %vm2870_vm7 = vweird.f32 %v3675_v56 }
 0x864   :  { %vm2871_vm9 = vmor %vm2869_vm8, %vm2870_vm7 }
 0x865   :  { %v2865_v39 = vmul.f32 %v3675_v56, %v2864_v19 }
 0x867   :  { %v2866_v61 = vmul.f32 0.5, %v2865_v39 }
 0x869   :  { %v2867_v47 = vsub.f32 1.5, %v2866_v61 }
 0x86b   :  { %v2868_v57 = vmul.f32 %v3675_v56, %v2867_v47 }
 0x86d   :  { %v2872_v14 = vsel %vm2871_vm9, %v3675_v56, %v2868_v57 }
 0x86e   :  { %v2873_v2 = vmul.f32 %v2872_v14, %v2852_v41 }
 0x870   :  { %v2875_v18 = vmul.f32 %v3663_v59, %v2873_v2 }
 0x872   :  { %v2877_v20 = vadd.f32 %v3664_v34, %v2875_v18 }
 0x874   :  { %v2878_v53 = vmax.f32 %v2877_v20, 0.0 }
 0x876   :  { %3519 = vmatmul.msk.f32.vlgmr.msrb.gmra.mxu3 %vm2882_vm10, %v2878_v53 }
 0x8f9   :  { %v2907_v46 = vpop.f32.mrf.mxu3 }
 0x8fa   :  { %v2908_v6 = vadd.f32 %v3665_v25, %v2907_v46 }
 0x8fc   :  { %2912 = vrot.lane.b32.xlu0 %v2908_v6, %s3685_s10 }
 0x96e   :  { %v2913_v26 = vpop.permute.xlu0 %2912 }
 0x96f   :  { %2916 = vst.msk [vmem:[%s5237_s4] sm:$0xf] %vm2915_vm11, %v2913_v26 }

</bundles_post_ra>
